<compile_context>
chip_gen: v6e
topology: v6e:2x2x1
jax: 0.10.0
libtpu: 0.0.40
codegen_flags: <defaults>
</compile_context>

<pallas_src>
import jax
import jax.numpy as jnp
from jax import lax
from jax.experimental import pallas as pl
from jax.experimental.pallas import tpu as pltpu

# ---------------- config (synthetic, small) ----------------
CFG = dict(
    vocab_size=20,
    glove_embedding_size=16,     # emb_size (numberbatch=False)
    elmo_embedding_size=32,
    word_embedding_size=16,
    lstm_hidden_size=32,
    lstm_num_layers=1,           # single layer (DynamicRNN returns last-layer h_n)
    dropout=0.0,                 # eval-mode forward -> identity
)


def disc_decoder_kernel(emb_ref, len_ref, enc_ref, wx_ref, whh_ref, b_ref,
                        scores_ref, gin_ref):
    # emb_ref   : (T, E2, bn)  f32   feature-major [glove ; elmo] per timestep
    # len_ref   : (1, bn)      i32
    # enc_ref   : (H, bn)      f32   encoder output (repeated over options), feature-major
    # wx_ref    : (4H, E2)     f32   [W_ih_glove | W_ih_elmo @ lin_w]   (embed_change fused)
    # whh_ref   : (4H, H)      f32
    # b_ref     : (4H, 1)      f32   b_ih + b_hh + W_ih_elmo @ lin_b
    # scores_ref: (1, bn)      f32   lane-dense output block
    # gin_ref   : (T, 4H, bn)  f32   VMEM scratch: hoisted input projections
    T = emb_ref.shape[0]
    bn = emb_ref.shape[2]
    H = whh_ref.shape[1]

    wx = wx_ref[...]
    b = b_ref[...]

    # ---- Stage 1: hoisted input projection (fused embed_change + W_ih), outside the
    # serial recurrence. Each matmul is (4H, E2) @ (E2, bn) -> full MXU M/N dims.
    def proj(t, val):
        gin_ref[t] = jnp.dot(wx, emb_ref[t], preferred_element_type=jnp.float32) + b
        return val

    lax.fori_loop(0, T, proj, 0, unroll=(T <= 16))

    whh = whh_ref[...]
    lens = len_ref[...]                          # (1, bn) int32

    # ---- Stage 2: recurrence. Only W_hh @ h + elementwise per step; gate splits are
    # sublane slices; length-masked freeze gives DynamicRNN "hidden at last step".
    def step(t, carry):
        h, c = carry                             # (H, bn) each
        gates = gin_ref[t] + jnp.dot(whh, h, preferred_element_type=jnp.float32)  # (4H, bn)
        i_g = jax.nn.sigmoid(gates[0 * H:1 * H, :])
        f_g = jax.nn.sigmoid(gates[1 * H:2 * H, :])
        g_g = jnp.tanh(gates[2 * H:3 * H, :])
        o_g = jax.nn.sigmoid(gates[3 * H:4 * H, :])
        c_new = f_g * c + i_g * g_g
        h_new = o_g * jnp.tanh(c_new)
        upd = t < lens                           # (1, bn) broadcast over sublanes
        h = jnp.where(upd, h_new, h)
        c = jnp.where(upd, c_new, c)
        return (h, c)

    h0 = jnp.zeros((H, bn), jnp.float32)
    c0 = jnp.zeros((H, bn), jnp.float32)
    h, _ = lax.fori_loop(0, T, step, (h0, c0), unroll=(T <= 16))

    # Score: sum over H (sublanes) -> naturally lane-dense (1, bn).
    scores_ref[...] = jnp.sum(h * enc_ref[...], axis=0, keepdims=True)


def _gather_feature_major(table, tokens_tm):
    # table: (V, E); tokens_tm: (T, Np). Returns (T, E, Np) keeping the large N axis
    # minor throughout (cheap / fusable gather+transpose, no full-tensor minor relayout).
    return jnp.transpose(table.T[:, tokens_tm], (1, 0, 2))


def discriminative_decoder_forward(encoder_output, options, options_length, params,
                                   block_n=128):
    """encoder_output: (B, R, H) f32; options: (B, R, O, T) i32; options_length: (B, R, O) i32."""
    B, R, O, T = options.shape
    H = params['w_hh'].shape[1]
    Eg = params['glove_table'].shape[1]
    Ee = params['elmo_table'].shape[1]
    E2 = Eg + Ee
    N = B * R * O
    Np = ((N + block_n - 1) // block_n) * block_n
    pad = Np - N

    opts = options.reshape(N, T).astype(jnp.int32)
    lens = options_length.reshape(N).astype(jnp.int32)
    # encoder_output.unsqueeze(2).repeat(1,1,O,1).view(N, H)
    enc = jnp.broadcast_to(encoder_output[:, :, None, :], (B, R, O, H)).reshape(N, H)

    if pad:
        # Padded rows: token 0, length 0, encoder 0 -> h stays 0 -> score 0; sliced off below.
        opts = jnp.concatenate([opts, jnp.zeros((pad, T), jnp.int32)], axis=0)
        lens = jnp.concatenate([lens, jnp.zeros((pad,), jnp.int32)], axis=0)
        enc = jnp.concatenate([enc, jnp.zeros((pad, H), enc.dtype)], axis=0)

    tokens_tm = opts.T                                                   # (T, Np)
    glove_T = _gather_feature_major(params['glove_table'], tokens_tm)    # (T, Eg, Np)
    elmo_T = _gather_feature_major(params['elmo_table'], tokens_tm)      # (T, Ee, Np)
    emb_T = jnp.concatenate([glove_T, elmo_T], axis=1)                   # (T, E2, Np)

    enc_T = enc.T                                                        # (H, Np)
    lens2 = lens.reshape(1, Np)

    # --- Host-side weight fusion (done once): fold embed_change into the LSTM input weights.
    w_ih = params['w_ih']                        # (4H, Eg + Wd)
    w_ih_g = w_ih[:, :Eg]                        # (4H, Eg)
    w_ih_e = w_ih[:, Eg:]                        # (4H, Wd)
    w_e_fused = w_ih_e @ params['lin_w']         # (4H, Ee)
    wx = jnp.concatenate([w_ih_g, w_e_fused], axis=1)                    # (4H, E2)
    b_fused = (params['b_ih'] + params['b_hh'] + w_ih_e @ params['lin_b']).reshape(4 * H, 1)
    w_hh = params['w_hh']                        # (4H, H), used as stored (no .T anywhere)

    num_blocks = Np // block_n
    grid = (num_blocks,)

    scores = pl.pallas_call(
        disc_decoder_kernel,
        out_shape=jax.ShapeDtypeStruct((num_blocks, block_n), jnp.float32),
        grid_spec=pltpu.PrefetchScalarGridSpec(
            num_scalar_prefetch=0,
            grid=grid,
            in_specs=[
                pl.BlockSpec((T, E2, block_n), lambda i: (0, 0, i)),     # embeddings (feature-major)
                pl.BlockSpec((1, block_n), lambda i: (0, i)),            # lengths
                pl.BlockSpec((H, block_n), lambda i: (0, i)),            # encoder (repeated)
                pl.BlockSpec((4 * H, E2), lambda i: (0, 0)),             # fused W_ih
                pl.BlockSpec((4 * H, H), lambda i: (0, 0)),              # W_hh
                pl.BlockSpec((4 * H, 1), lambda i: (0, 0)),              # fused bias (column)
            ],
            out_specs=pl.BlockSpec((1, block_n), lambda i: (i, 0)),      # lane-dense scores
            scratch_shapes=[pltpu.VMEM((T, 4 * H, block_n), jnp.float32)],
        ),
        compiler_params=pltpu.CompilerParams(
            dimension_semantics=("parallel",)),
    )(emb_T, lens2, enc_T, wx, w_hh, b_fused)

    return scores.reshape(Np)[:N].reshape(B, R, O)


# ---------------- pure-JAX reference (unfused, for a sanity check) ----------------
def reference_forward(encoder_output, options, options_length, params):
    B, R, O, T = options.shape
    H = CFG['lstm_hidden_size']
    N = B * R * O
    opts = options.reshape(N, T)
    lens = options_length.reshape(N)
    glove = params['glove_table'][opts]
    elmo = params['elmo_table'][opts]
    changed = jnp.einsum('nte,we->ntw', elmo, params['lin_w']) + params['lin_b']
    x = jnp.concatenate([glove, changed], axis=-1)            # (N, T, Din)
    b = params['b_ih'] + params['b_hh']

    def step(carry, xt_and_t):
        h, c = carry
        x_t, t = xt_and_t
        gates = x_t @ params['w_ih'].T + h @ params['w_hh'].T + b
        i_g = jax.nn.sigmoid(gates[:, 0:H])
        f_g = jax.nn.sigmoid(gates[:, H:2 * H])
        g_g = jnp.tanh(gates[:, 2 * H:3 * H])
        o_g = jax.nn.sigmoid(gates[:, 3 * H:4 * H])
        c_new = f_g * c + i_g * g_g
        h_new = o_g * jnp.tanh(c_new)
        mask = (t < lens)[:, None]
        return (jnp.where(mask, h_new, h), jnp.where(mask, c_new, c)), None

    h0 = jnp.zeros((N, H), jnp.float32)
    (h, _), _ = lax.scan(step, (h0, h0),
                         (jnp.transpose(x, (1, 0, 2)), jnp.arange(T)))
    enc = jnp.broadcast_to(encoder_output[:, :, None, :], (B, R, O, H)).reshape(N, H)
    return jnp.sum(h * enc, axis=-1).reshape(B, R, O)


if __name__ == "__main__":
    key = jax.random.PRNGKey(0)
    ks = jax.random.split(key, 10)

    B, R, O, T = 2, 3, 4, 8
    V = CFG['vocab_size']
    Eg, Ee, Wd, H = (CFG['glove_embedding_size'], CFG['elmo_embedding_size'],
                     CFG['word_embedding_size'], CFG['lstm_hidden_size'])

    params = {
        'glove_table': jax.random.normal(ks[0], (V, Eg), jnp.float32) * 0.1,
        'elmo_table':  jax.random.normal(ks[1], (V, Ee), jnp.float32) * 0.1,
        'lin_w':       jax.random.normal(ks[2], (Wd, Ee), jnp.float32) * 0.1,
        'lin_b':       jax.random.normal(ks[3], (Wd,), jnp.float32) * 0.1,
        'w_ih':        jax.random.normal(ks[4], (4 * H, Eg + Wd), jnp.float32) * 0.1,
        'w_hh':        jax.random.normal(ks[5], (4 * H, H), jnp.float32) * 0.1,
        'b_ih':        jax.random.normal(ks[6], (4 * H,), jnp.float32) * 0.1,
        'b_hh':        jax.random.normal(ks[7], (4 * H,), jnp.float32) * 0.1,
    }

    options = jax.random.randint(ks[8], (B, R, O, T), 0, V, dtype=jnp.int32)
    # lengths in [0, T]; include some zeros (those options get score 0)
    opt_len = jax.random.randint(ks[9], (B, R, O), 0, T + 1, dtype=jnp.int32)
    encoder_output = jax.random.normal(key, (B, R, H), jnp.float32)

    scores = discriminative_decoder_forward(encoder_output, options, opt_len, params)
    scores = jax.block_until_ready(scores)

    ref = reference_forward(encoder_output, options, opt_len, params)
    assert scores.shape == (B, R, O)
    assert jnp.allclose(scores, ref, atol=1e-4, rtol=1e-4), "mismatch vs reference"

    print("KERNEL_OK")
</pallas_src>

<mosaic_0001>
module attributes {stable_mosaic.version = 11 : i64} {
  func.func @disc_decoder_kernel(%arg0: i32, %arg1: memref<8x48x128xf32, #tpu.memory_space<vmem>>, %arg2: memref<1x128xi32, #tpu.memory_space<vmem>>, %arg3: memref<32x128xf32, #tpu.memory_space<vmem>>, %arg4: memref<128x48xf32, #tpu.memory_space<vmem>>, %arg5: memref<128x32xf32, #tpu.memory_space<vmem>>, %arg6: memref<128x1xf32, #tpu.memory_space<vmem>>, %arg7: memref<1x128xf32, #tpu.memory_space<vmem>>, %arg8: memref<8x128x128xf32, #tpu.memory_space<vmem>>) attributes {dimension_semantics = [#tpu.dimension_semantics<parallel>], iteration_bounds = array<i64: 1>, scalar_prefetch = 0 : i64, scratch_operands = 1 : i64, tpu.core_type = #tpu.core_type<tc>, window_params = [{transform_indices = @transform_0, window_bounds = array<i64: 8, 48, 128>}, {transform_indices = @transform_1, window_bounds = array<i64: 1, 128>}, {transform_indices = @transform_2, window_bounds = array<i64: 32, 128>}, {pipeline_mode = #tpu.pipeline_mode<synchronous>, transform_indices = @transform_3, window_bounds = array<i64: 128, 48>}, {pipeline_mode = #tpu.pipeline_mode<synchronous>, transform_indices = @transform_4, window_bounds = array<i64: 128, 32>}, {pipeline_mode = #tpu.pipeline_mode<synchronous>, transform_indices = @transform_5, window_bounds = array<i64: 128, 1>}, {transform_indices = @transform_6, window_bounds = array<i64: 1, 128>}]} {
    %c0 = arith.constant 0 : index
    %c0_0 = arith.constant 0 : index
    %0 = vector.load %arg4[%c0, %c0_0] : memref<128x48xf32, #tpu.memory_space<vmem>>, vector<128x48xf32>
    %c0_1 = arith.constant 0 : index
    %c0_2 = arith.constant 0 : index
    %1 = vector.load %arg6[%c0_1, %c0_2] : memref<128x1xf32, #tpu.memory_space<vmem>>, vector<128x1xf32>
    %c0_i32 = arith.constant 0 : i32
    %2 = arith.index_cast %c0_i32 : i32 to index
    %c0_3 = arith.constant 0 : index
    %c0_4 = arith.constant 0 : index
    %3 = vector.load %arg1[%2, %c0_3, %c0_4] : memref<8x48x128xf32, #tpu.memory_space<vmem>>, vector<1x48x128xf32>
    %4 = vector.shape_cast %3 : vector<1x48x128xf32> to vector<48x128xf32>
    %cst = arith.constant dense<0.000000e+00> : vector<128x128xf32>
    %5 = tpu.matmul %0, %4, %cst {dimension_numbers = #tpu.dot_dimension_numbers<[1], [0], [0], [1], [0, 0, 1, 1], [], []>} : vector<128x48xf32>, vector<48x128xf32>, vector<128x128xf32> -> vector<128x128xf32>
    %6 = vector.broadcast %1 : vector<128x1xf32> to vector<128x128xf32>
    %7 = arith.addf %5, %6 : vector<128x128xf32>
    %8 = arith.index_cast %c0_i32 : i32 to index
    %c0_5 = arith.constant 0 : index
    %c0_6 = arith.constant 0 : index
    %9 = vector.load %arg8[%8, %c0_5, %c0_6] : memref<8x128x128xf32, #tpu.memory_space<vmem>>, vector<1x128x128xf32>
    %10 = vector.shape_cast %9 : vector<1x128x128xf32> to vector<128x128xf32>
    %11 = vector.shape_cast %7 : vector<128x128xf32> to vector<1x128x128xf32>
    tpu.vector_store %arg8[%8, %c0_5, %c0_6], %11 {strides = array<i32>} : memref<8x128x128xf32, #tpu.memory_space<vmem>>, vector<1x128x128xf32>,
    %c1_i32 = arith.constant 1 : i32
    %12 = arith.index_cast %c1_i32 : i32 to index
    %c0_7 = arith.constant 0 : index
    %c0_8 = arith.constant 0 : index
    %13 = vector.load %arg1[%12, %c0_7, %c0_8] : memref<8x48x128xf32, #tpu.memory_space<vmem>>, vector<1x48x128xf32>
    %14 = vector.shape_cast %13 : vector<1x48x128xf32> to vector<48x128xf32>
    %cst_9 = arith.constant dense<0.000000e+00> : vector<128x128xf32>
    %15 = tpu.matmul %0, %14, %cst_9 {dimension_numbers = #tpu.dot_dimension_numbers<[1], [0], [0], [1], [0, 0, 1, 1], [], []>} : vector<128x48xf32>, vector<48x128xf32>, vector<128x128xf32> -> vector<128x128xf32>
    %16 = vector.broadcast %1 : vector<128x1xf32> to vector<128x128xf32>
    %17 = arith.addf %15, %16 : vector<128x128xf32>
    %18 = arith.index_cast %c1_i32 : i32 to index
    %c0_10 = arith.constant 0 : index
    %c0_11 = arith.constant 0 : index
    %19 = vector.load %arg8[%18, %c0_10, %c0_11] : memref<8x128x128xf32, #tpu.memory_space<vmem>>, vector<1x128x128xf32>
    %20 = vector.shape_cast %19 : vector<1x128x128xf32> to vector<128x128xf32>
    %21 = vector.shape_cast %17 : vector<128x128xf32> to vector<1x128x128xf32>
    tpu.vector_store %arg8[%18, %c0_10, %c0_11], %21 {strides = array<i32>} : memref<8x128x128xf32, #tpu.memory_space<vmem>>, vector<1x128x128xf32>,
    %c2_i32 = arith.constant 2 : i32
    %22 = arith.index_cast %c2_i32 : i32 to index
    %c0_12 = arith.constant 0 : index
    %c0_13 = arith.constant 0 : index
    %23 = vector.load %arg1[%22, %c0_12, %c0_13] : memref<8x48x128xf32, #tpu.memory_space<vmem>>, vector<1x48x128xf32>
    %24 = vector.shape_cast %23 : vector<1x48x128xf32> to vector<48x128xf32>
    %cst_14 = arith.constant dense<0.000000e+00> : vector<128x128xf32>
    %25 = tpu.matmul %0, %24, %cst_14 {dimension_numbers = #tpu.dot_dimension_numbers<[1], [0], [0], [1], [0, 0, 1, 1], [], []>} : vector<128x48xf32>, vector<48x128xf32>, vector<128x128xf32> -> vector<128x128xf32>
    %26 = vector.broadcast %1 : vector<128x1xf32> to vector<128x128xf32>
    %27 = arith.addf %25, %26 : vector<128x128xf32>
    %28 = arith.index_cast %c2_i32 : i32 to index
    %c0_15 = arith.constant 0 : index
    %c0_16 = arith.constant 0 : index
    %29 = vector.load %arg8[%28, %c0_15, %c0_16] : memref<8x128x128xf32, #tpu.memory_space<vmem>>, vector<1x128x128xf32>
    %30 = vector.shape_cast %29 : vector<1x128x128xf32> to vector<128x128xf32>
    %31 = vector.shape_cast %27 : vector<128x128xf32> to vector<1x128x128xf32>
    tpu.vector_store %arg8[%28, %c0_15, %c0_16], %31 {strides = array<i32>} : memref<8x128x128xf32, #tpu.memory_space<vmem>>, vector<1x128x128xf32>,
    %c3_i32 = arith.constant 3 : i32
    %32 = arith.index_cast %c3_i32 : i32 to index
    %c0_17 = arith.constant 0 : index
    %c0_18 = arith.constant 0 : index
    %33 = vector.load %arg1[%32, %c0_17, %c0_18] : memref<8x48x128xf32, #tpu.memory_space<vmem>>, vector<1x48x128xf32>
    %34 = vector.shape_cast %33 : vector<1x48x128xf32> to vector<48x128xf32>
    %cst_19 = arith.constant dense<0.000000e+00> : vector<128x128xf32>
    %35 = tpu.matmul %0, %34, %cst_19 {dimension_numbers = #tpu.dot_dimension_numbers<[1], [0], [0], [1], [0, 0, 1, 1], [], []>} : vector<128x48xf32>, vector<48x128xf32>, vector<128x128xf32> -> vector<128x128xf32>
    %36 = vector.broadcast %1 : vector<128x1xf32> to vector<128x128xf32>
    %37 = arith.addf %35, %36 : vector<128x128xf32>
    %38 = arith.index_cast %c3_i32 : i32 to index
    %c0_20 = arith.constant 0 : index
    %c0_21 = arith.constant 0 : index
    %39 = vector.load %arg8[%38, %c0_20, %c0_21] : memref<8x128x128xf32, #tpu.memory_space<vmem>>, vector<1x128x128xf32>
    %40 = vector.shape_cast %39 : vector<1x128x128xf32> to vector<128x128xf32>
    %41 = vector.shape_cast %37 : vector<128x128xf32> to vector<1x128x128xf32>
    tpu.vector_store %arg8[%38, %c0_20, %c0_21], %41 {strides = array<i32>} : memref<8x128x128xf32, #tpu.memory_space<vmem>>, vector<1x128x128xf32>,
    %c4_i32 = arith.constant 4 : i32
    %42 = arith.index_cast %c4_i32 : i32 to index
    %c0_22 = arith.constant 0 : index
    %c0_23 = arith.constant 0 : index
    %43 = vector.load %arg1[%42, %c0_22, %c0_23] : memref<8x48x128xf32, #tpu.memory_space<vmem>>, vector<1x48x128xf32>
    %44 = vector.shape_cast %43 : vector<1x48x128xf32> to vector<48x128xf32>
    %cst_24 = arith.constant dense<0.000000e+00> : vector<128x128xf32>
    %45 = tpu.matmul %0, %44, %cst_24 {dimension_numbers = #tpu.dot_dimension_numbers<[1], [0], [0], [1], [0, 0, 1, 1], [], []>} : vector<128x48xf32>, vector<48x128xf32>, vector<128x128xf32> -> vector<128x128xf32>
    %46 = vector.broadcast %1 : vector<128x1xf32> to vector<128x128xf32>
    %47 = arith.addf %45, %46 : vector<128x128xf32>
    %48 = arith.index_cast %c4_i32 : i32 to index
    %c0_25 = arith.constant 0 : index
    %c0_26 = arith.constant 0 : index
    %49 = vector.load %arg8[%48, %c0_25, %c0_26] : memref<8x128x128xf32, #tpu.memory_space<vmem>>, vector<1x128x128xf32>
    %50 = vector.shape_cast %49 : vector<1x128x128xf32> to vector<128x128xf32>
    %51 = vector.shape_cast %47 : vector<128x128xf32> to vector<1x128x128xf32>
    tpu.vector_store %arg8[%48, %c0_25, %c0_26], %51 {strides = array<i32>} : memref<8x128x128xf32, #tpu.memory_space<vmem>>, vector<1x128x128xf32>,
    %c5_i32 = arith.constant 5 : i32
    %52 = arith.index_cast %c5_i32 : i32 to index
    %c0_27 = arith.constant 0 : index
    %c0_28 = arith.constant 0 : index
    %53 = vector.load %arg1[%52, %c0_27, %c0_28] : memref<8x48x128xf32, #tpu.memory_space<vmem>>, vector<1x48x128xf32>
    %54 = vector.shape_cast %53 : vector<1x48x128xf32> to vector<48x128xf32>
    %cst_29 = arith.constant dense<0.000000e+00> : vector<128x128xf32>
    %55 = tpu.matmul %0, %54, %cst_29 {dimension_numbers = #tpu.dot_dimension_numbers<[1], [0], [0], [1], [0, 0, 1, 1], [], []>} : vector<128x48xf32>, vector<48x128xf32>, vector<128x128xf32> -> vector<128x128xf32>
    %56 = vector.broadcast %1 : vector<128x1xf32> to vector<128x128xf32>
    %57 = arith.addf %55, %56 : vector<128x128xf32>
    %58 = arith.index_cast %c5_i32 : i32 to index
    %c0_30 = arith.constant 0 : index
    %c0_31 = arith.constant 0 : index
    %59 = vector.load %arg8[%58, %c0_30, %c0_31] : memref<8x128x128xf32, #tpu.memory_space<vmem>>, vector<1x128x128xf32>
    %60 = vector.shape_cast %59 : vector<1x128x128xf32> to vector<128x128xf32>
    %61 = vector.shape_cast %57 : vector<128x128xf32> to vector<1x128x128xf32>
    tpu.vector_store %arg8[%58, %c0_30, %c0_31], %61 {strides = array<i32>} : memref<8x128x128xf32, #tpu.memory_space<vmem>>, vector<1x128x128xf32>,
    %c6_i32 = arith.constant 6 : i32
    %62 = arith.index_cast %c6_i32 : i32 to index
    %c0_32 = arith.constant 0 : index
    %c0_33 = arith.constant 0 : index
    %63 = vector.load %arg1[%62, %c0_32, %c0_33] : memref<8x48x128xf32, #tpu.memory_space<vmem>>, vector<1x48x128xf32>
    %64 = vector.shape_cast %63 : vector<1x48x128xf32> to vector<48x128xf32>
    %cst_34 = arith.constant dense<0.000000e+00> : vector<128x128xf32>
    %65 = tpu.matmul %0, %64, %cst_34 {dimension_numbers = #tpu.dot_dimension_numbers<[1], [0], [0], [1], [0, 0, 1, 1], [], []>} : vector<128x48xf32>, vector<48x128xf32>, vector<128x128xf32> -> vector<128x128xf32>
    %66 = vector.broadcast %1 : vector<128x1xf32> to vector<128x128xf32>
    %67 = arith.addf %65, %66 : vector<128x128xf32>
    %68 = arith.index_cast %c6_i32 : i32 to index
    %c0_35 = arith.constant 0 : index
    %c0_36 = arith.constant 0 : index
    %69 = vector.load %arg8[%68, %c0_35, %c0_36] : memref<8x128x128xf32, #tpu.memory_space<vmem>>, vector<1x128x128xf32>
    %70 = vector.shape_cast %69 : vector<1x128x128xf32> to vector<128x128xf32>
    %71 = vector.shape_cast %67 : vector<128x128xf32> to vector<1x128x128xf32>
    tpu.vector_store %arg8[%68, %c0_35, %c0_36], %71 {strides = array<i32>} : memref<8x128x128xf32, #tpu.memory_space<vmem>>, vector<1x128x128xf32>,
    %c7_i32 = arith.constant 7 : i32
    %72 = arith.index_cast %c7_i32 : i32 to index
    %c0_37 = arith.constant 0 : index
    %c0_38 = arith.constant 0 : index
    %73 = vector.load %arg1[%72, %c0_37, %c0_38] : memref<8x48x128xf32, #tpu.memory_space<vmem>>, vector<1x48x128xf32>
    %74 = vector.shape_cast %73 : vector<1x48x128xf32> to vector<48x128xf32>
    %cst_39 = arith.constant dense<0.000000e+00> : vector<128x128xf32>
    %75 = tpu.matmul %0, %74, %cst_39 {dimension_numbers = #tpu.dot_dimension_numbers<[1], [0], [0], [1], [0, 0, 1, 1], [], []>} : vector<128x48xf32>, vector<48x128xf32>, vector<128x128xf32> -> vector<128x128xf32>
    %76 = vector.broadcast %1 : vector<128x1xf32> to vector<128x128xf32>
    %77 = arith.addf %75, %76 : vector<128x128xf32>
    %78 = arith.index_cast %c7_i32 : i32 to index
    %c0_40 = arith.constant 0 : index
    %c0_41 = arith.constant 0 : index
    %79 = vector.load %arg8[%78, %c0_40, %c0_41] : memref<8x128x128xf32, #tpu.memory_space<vmem>>, vector<1x128x128xf32>
    %80 = vector.shape_cast %79 : vector<1x128x128xf32> to vector<128x128xf32>
    %81 = vector.shape_cast %77 : vector<128x128xf32> to vector<1x128x128xf32>
    tpu.vector_store %arg8[%78, %c0_40, %c0_41], %81 {strides = array<i32>} : memref<8x128x128xf32, #tpu.memory_space<vmem>>, vector<1x128x128xf32>,
    %c8_i32 = arith.constant 8 : i32
    %c0_42 = arith.constant 0 : index
    %c0_43 = arith.constant 0 : index
    %82 = vector.load %arg5[%c0_42, %c0_43] : memref<128x32xf32, #tpu.memory_space<vmem>>, vector<128x32xf32>
    %c0_44 = arith.constant 0 : index
    %c0_45 = arith.constant 0 : index
    %83 = vector.load %arg2[%c0_44, %c0_45] : memref<1x128xi32, #tpu.memory_space<vmem>>, vector<1x128xi32>
    %cst_46 = arith.constant 0.000000e+00 : f32
    %84 = vector.broadcast %cst_46 : f32 to vector<32x128xf32>
    %cst_47 = arith.constant 0.000000e+00 : f32
    %85 = vector.broadcast %cst_47 : f32 to vector<32x128xf32>
    %c0_i32_48 = arith.constant 0 : i32
    %86 = arith.index_cast %c0_i32_48 : i32 to index
    %c0_49 = arith.constant 0 : index
    %c0_50 = arith.constant 0 : index
    %87 = vector.load %arg8[%86, %c0_49, %c0_50] : memref<8x128x128xf32, #tpu.memory_space<vmem>>, vector<1x128x128xf32>
    %88 = vector.shape_cast %87 : vector<1x128x128xf32> to vector<128x128xf32>
    %cst_51 = arith.constant dense<0.000000e+00> : vector<128x128xf32>
    %89 = tpu.matmul %82, %84, %cst_51 {dimension_numbers = #tpu.dot_dimension_numbers<[1], [0], [0], [1], [0, 0, 1, 1], [], []>} : vector<128x32xf32>, vector<32x128xf32>, vector<128x128xf32> -> vector<128x128xf32>
    %90 = arith.addf %88, %89 : vector<128x128xf32>
    %91 = vector.extract_strided_slice %90 {offsets = [0, 0], sizes = [32, 128], strides = [1, 1]} : vector<128x128xf32> to vector<32x128xf32>
    %92 = arith.negf %91 : vector<32x128xf32>
    %93 = math.exp %92 : vector<32x128xf32>
    %cst_52 = arith.constant 1.000000e+00 : f32
    %94 = vector.broadcast %cst_52 : f32 to vector<32x128xf32>
    %95 = arith.addf %94, %93 : vector<32x128xf32>
    %96 = arith.divf %94, %95 : vector<32x128xf32>
    %97 = vector.extract_strided_slice %90 {offsets = [32, 0], sizes = [32, 128], strides = [1, 1]} : vector<128x128xf32> to vector<32x128xf32>
    %98 = arith.negf %97 : vector<32x128xf32>
    %99 = math.exp %98 : vector<32x128xf32>
    %cst_53 = arith.constant 1.000000e+00 : f32
    %100 = vector.broadcast %cst_53 : f32 to vector<32x128xf32>
    %101 = arith.addf %100, %99 : vector<32x128xf32>
    %102 = arith.divf %100, %101 : vector<32x128xf32>
    %103 = vector.extract_strided_slice %90 {offsets = [64, 0], sizes = [32, 128], strides = [1, 1]} : vector<128x128xf32> to vector<32x128xf32>
    %104 = math.tanh %103 : vector<32x128xf32>
    %105 = vector.extract_strided_slice %90 {offsets = [96, 0], sizes = [32, 128], strides = [1, 1]} : vector<128x128xf32> to vector<32x128xf32>
    %106 = arith.negf %105 : vector<32x128xf32>
    %107 = math.exp %106 : vector<32x128xf32>
    %cst_54 = arith.constant 1.000000e+00 : f32
    %108 = vector.broadcast %cst_54 : f32 to vector<32x128xf32>
    %109 = arith.addf %108, %107 : vector<32x128xf32>
    %110 = arith.divf %108, %109 : vector<32x128xf32>
    %111 = arith.mulf %102, %85 : vector<32x128xf32>
    %112 = arith.mulf %96, %104 : vector<32x128xf32>
    %113 = arith.addf %111, %112 : vector<32x128xf32>
    %114 = math.tanh %113 : vector<32x128xf32>
    %115 = arith.mulf %110, %114 : vector<32x128xf32>
    %116 = vector.broadcast %c0_i32_48 : i32 to vector<1x128xi32>
    %117 = arith.cmpi slt, %116, %83 : vector<1x128xi32>
    %118 = vector.shape_cast %117 : vector<1x128xi1> to vector<1x128xi1>
    %119 = vector.broadcast %118 : vector<1x128xi1> to vector<32x128xi1>
    %120 = arith.select %119, %115, %84 : vector<32x128xi1>, vector<32x128xf32>
    %121 = vector.shape_cast %117 : vector<1x128xi1> to vector<1x128xi1>
    %122 = vector.broadcast %121 : vector<1x128xi1> to vector<32x128xi1>
    %123 = arith.select %122, %113, %85 : vector<32x128xi1>, vector<32x128xf32>
    %c1_i32_55 = arith.constant 1 : i32
    %124 = arith.index_cast %c1_i32_55 : i32 to index
    %c0_56 = arith.constant 0 : index
    %c0_57 = arith.constant 0 : index
    %125 = vector.load %arg8[%124, %c0_56, %c0_57] : memref<8x128x128xf32, #tpu.memory_space<vmem>>, vector<1x128x128xf32>
    %126 = vector.shape_cast %125 : vector<1x128x128xf32> to vector<128x128xf32>
    %cst_58 = arith.constant dense<0.000000e+00> : vector<128x128xf32>
    %127 = tpu.matmul %82, %120, %cst_58 {dimension_numbers = #tpu.dot_dimension_numbers<[1], [0], [0], [1], [0, 0, 1, 1], [], []>} : vector<128x32xf32>, vector<32x128xf32>, vector<128x128xf32> -> vector<128x128xf32>
    %128 = arith.addf %126, %127 : vector<128x128xf32>
    %129 = vector.extract_strided_slice %128 {offsets = [0, 0], sizes = [32, 128], strides = [1, 1]} : vector<128x128xf32> to vector<32x128xf32>
    %130 = arith.negf %129 : vector<32x128xf32>
    %131 = math.exp %130 : vector<32x128xf32>
    %cst_59 = arith.constant 1.000000e+00 : f32
    %132 = vector.broadcast %cst_59 : f32 to vector<32x128xf32>
    %133 = arith.addf %132, %131 : vector<32x128xf32>
    %134 = arith.divf %132, %133 : vector<32x128xf32>
    %135 = vector.extract_strided_slice %128 {offsets = [32, 0], sizes = [32, 128], strides = [1, 1]} : vector<128x128xf32> to vector<32x128xf32>
    %136 = arith.negf %135 : vector<32x128xf32>
    %137 = math.exp %136 : vector<32x128xf32>
    %cst_60 = arith.constant 1.000000e+00 : f32
    %138 = vector.broadcast %cst_60 : f32 to vector<32x128xf32>
    %139 = arith.addf %138, %137 : vector<32x128xf32>
    %140 = arith.divf %138, %139 : vector<32x128xf32>
    %141 = vector.extract_strided_slice %128 {offsets = [64, 0], sizes = [32, 128], strides = [1, 1]} : vector<128x128xf32> to vector<32x128xf32>
    %142 = math.tanh %141 : vector<32x128xf32>
    %143 = vector.extract_strided_slice %128 {offsets = [96, 0], sizes = [32, 128], strides = [1, 1]} : vector<128x128xf32> to vector<32x128xf32>
    %144 = arith.negf %143 : vector<32x128xf32>
    %145 = math.exp %144 : vector<32x128xf32>
    %cst_61 = arith.constant 1.000000e+00 : f32
    %146 = vector.broadcast %cst_61 : f32 to vector<32x128xf32>
    %147 = arith.addf %146, %145 : vector<32x128xf32>
    %148 = arith.divf %146, %147 : vector<32x128xf32>
    %149 = arith.mulf %140, %123 : vector<32x128xf32>
    %150 = arith.mulf %134, %142 : vector<32x128xf32>
    %151 = arith.addf %149, %150 : vector<32x128xf32>
    %152 = math.tanh %151 : vector<32x128xf32>
    %153 = arith.mulf %148, %152 : vector<32x128xf32>
    %154 = vector.broadcast %c1_i32_55 : i32 to vector<1x128xi32>
    %155 = arith.cmpi slt, %154, %83 : vector<1x128xi32>
    %156 = vector.shape_cast %155 : vector<1x128xi1> to vector<1x128xi1>
    %157 = vector.broadcast %156 : vector<1x128xi1> to vector<32x128xi1>
    %158 = arith.select %157, %153, %120 : vector<32x128xi1>, vector<32x128xf32>
    %159 = vector.shape_cast %155 : vector<1x128xi1> to vector<1x128xi1>
    %160 = vector.broadcast %159 : vector<1x128xi1> to vector<32x128xi1>
    %161 = arith.select %160, %151, %123 : vector<32x128xi1>, vector<32x128xf32>
    %c2_i32_62 = arith.constant 2 : i32
    %162 = arith.index_cast %c2_i32_62 : i32 to index
    %c0_63 = arith.constant 0 : index
    %c0_64 = arith.constant 0 : index
    %163 = vector.load %arg8[%162, %c0_63, %c0_64] : memref<8x128x128xf32, #tpu.memory_space<vmem>>, vector<1x128x128xf32>
    %164 = vector.shape_cast %163 : vector<1x128x128xf32> to vector<128x128xf32>
    %cst_65 = arith.constant dense<0.000000e+00> : vector<128x128xf32>
    %165 = tpu.matmul %82, %158, %cst_65 {dimension_numbers = #tpu.dot_dimension_numbers<[1], [0], [0], [1], [0, 0, 1, 1], [], []>} : vector<128x32xf32>, vector<32x128xf32>, vector<128x128xf32> -> vector<128x128xf32>
    %166 = arith.addf %164, %165 : vector<128x128xf32>
    %167 = vector.extract_strided_slice %166 {offsets = [0, 0], sizes = [32, 128], strides = [1, 1]} : vector<128x128xf32> to vector<32x128xf32>
    %168 = arith.negf %167 : vector<32x128xf32>
    %169 = math.exp %168 : vector<32x128xf32>
    %cst_66 = arith.constant 1.000000e+00 : f32
    %170 = vector.broadcast %cst_66 : f32 to vector<32x128xf32>
    %171 = arith.addf %170, %169 : vector<32x128xf32>
    %172 = arith.divf %170, %171 : vector<32x128xf32>
    %173 = vector.extract_strided_slice %166 {offsets = [32, 0], sizes = [32, 128], strides = [1, 1]} : vector<128x128xf32> to vector<32x128xf32>
    %174 = arith.negf %173 : vector<32x128xf32>
    %175 = math.exp %174 : vector<32x128xf32>
    %cst_67 = arith.constant 1.000000e+00 : f32
    %176 = vector.broadcast %cst_67 : f32 to vector<32x128xf32>
    %177 = arith.addf %176, %175 : vector<32x128xf32>
    %178 = arith.divf %176, %177 : vector<32x128xf32>
    %179 = vector.extract_strided_slice %166 {offsets = [64, 0], sizes = [32, 128], strides = [1, 1]} : vector<128x128xf32> to vector<32x128xf32>
    %180 = math.tanh %179 : vector<32x128xf32>
    %181 = vector.extract_strided_slice %166 {offsets = [96, 0], sizes = [32, 128], strides = [1, 1]} : vector<128x128xf32> to vector<32x128xf32>
    %182 = arith.negf %181 : vector<32x128xf32>
    %183 = math.exp %182 : vector<32x128xf32>
    %cst_68 = arith.constant 1.000000e+00 : f32
    %184 = vector.broadcast %cst_68 : f32 to vector<32x128xf32>
    %185 = arith.addf %184, %183 : vector<32x128xf32>
    %186 = arith.divf %184, %185 : vector<32x128xf32>
    %187 = arith.mulf %178, %161 : vector<32x128xf32>
    %188 = arith.mulf %172, %180 : vector<32x128xf32>
    %189 = arith.addf %187, %188 : vector<32x128xf32>
    %190 = math.tanh %189 : vector<32x128xf32>
    %191 = arith.mulf %186, %190 : vector<32x128xf32>
    %192 = vector.broadcast %c2_i32_62 : i32 to vector<1x128xi32>
    %193 = arith.cmpi slt, %192, %83 : vector<1x128xi32>
    %194 = vector.shape_cast %193 : vector<1x128xi1> to vector<1x128xi1>
    %195 = vector.broadcast %194 : vector<1x128xi1> to vector<32x128xi1>
    %196 = arith.select %195, %191, %158 : vector<32x128xi1>, vector<32x128xf32>
    %197 = vector.shape_cast %193 : vector<1x128xi1> to vector<1x128xi1>
    %198 = vector.broadcast %197 : vector<1x128xi1> to vector<32x128xi1>
    %199 = arith.select %198, %189, %161 : vector<32x128xi1>, vector<32x128xf32>
    %c3_i32_69 = arith.constant 3 : i32
    %200 = arith.index_cast %c3_i32_69 : i32 to index
    %c0_70 = arith.constant 0 : index
    %c0_71 = arith.constant 0 : index
    %201 = vector.load %arg8[%200, %c0_70, %c0_71] : memref<8x128x128xf32, #tpu.memory_space<vmem>>, vector<1x128x128xf32>
    %202 = vector.shape_cast %201 : vector<1x128x128xf32> to vector<128x128xf32>
    %cst_72 = arith.constant dense<0.000000e+00> : vector<128x128xf32>
    %203 = tpu.matmul %82, %196, %cst_72 {dimension_numbers = #tpu.dot_dimension_numbers<[1], [0], [0], [1], [0, 0, 1, 1], [], []>} : vector<128x32xf32>, vector<32x128xf32>, vector<128x128xf32> -> vector<128x128xf32>
    %204 = arith.addf %202, %203 : vector<128x128xf32>
    %205 = vector.extract_strided_slice %204 {offsets = [0, 0], sizes = [32, 128], strides = [1, 1]} : vector<128x128xf32> to vector<32x128xf32>
    %206 = arith.negf %205 : vector<32x128xf32>
    %207 = math.exp %206 : vector<32x128xf32>
    %cst_73 = arith.constant 1.000000e+00 : f32
    %208 = vector.broadcast %cst_73 : f32 to vector<32x128xf32>
    %209 = arith.addf %208, %207 : vector<32x128xf32>
    %210 = arith.divf %208, %209 : vector<32x128xf32>
    %211 = vector.extract_strided_slice %204 {offsets = [32, 0], sizes = [32, 128], strides = [1, 1]} : vector<128x128xf32> to vector<32x128xf32>
    %212 = arith.negf %211 : vector<32x128xf32>
    %213 = math.exp %212 : vector<32x128xf32>
    %cst_74 = arith.constant 1.000000e+00 : f32
    %214 = vector.broadcast %cst_74 : f32 to vector<32x128xf32>
    %215 = arith.addf %214, %213 : vector<32x128xf32>
    %216 = arith.divf %214, %215 : vector<32x128xf32>
    %217 = vector.extract_strided_slice %204 {offsets = [64, 0], sizes = [32, 128], strides = [1, 1]} : vector<128x128xf32> to vector<32x128xf32>
    %218 = math.tanh %217 : vector<32x128xf32>
    %219 = vector.extract_strided_slice %204 {offsets = [96, 0], sizes = [32, 128], strides = [1, 1]} : vector<128x128xf32> to vector<32x128xf32>
    %220 = arith.negf %219 : vector<32x128xf32>
    %221 = math.exp %220 : vector<32x128xf32>
    %cst_75 = arith.constant 1.000000e+00 : f32
    %222 = vector.broadcast %cst_75 : f32 to vector<32x128xf32>
    %223 = arith.addf %222, %221 : vector<32x128xf32>
    %224 = arith.divf %222, %223 : vector<32x128xf32>
    %225 = arith.mulf %216, %199 : vector<32x128xf32>
    %226 = arith.mulf %210, %218 : vector<32x128xf32>
    %227 = arith.addf %225, %226 : vector<32x128xf32>
    %228 = math.tanh %227 : vector<32x128xf32>
    %229 = arith.mulf %224, %228 : vector<32x128xf32>
    %230 = vector.broadcast %c3_i32_69 : i32 to vector<1x128xi32>
    %231 = arith.cmpi slt, %230, %83 : vector<1x128xi32>
    %232 = vector.shape_cast %231 : vector<1x128xi1> to vector<1x128xi1>
    %233 = vector.broadcast %232 : vector<1x128xi1> to vector<32x128xi1>
    %234 = arith.select %233, %229, %196 : vector<32x128xi1>, vector<32x128xf32>
    %235 = vector.shape_cast %231 : vector<1x128xi1> to vector<1x128xi1>
    %236 = vector.broadcast %235 : vector<1x128xi1> to vector<32x128xi1>
    %237 = arith.select %236, %227, %199 : vector<32x128xi1>, vector<32x128xf32>
    %c4_i32_76 = arith.constant 4 : i32
    %238 = arith.index_cast %c4_i32_76 : i32 to index
    %c0_77 = arith.constant 0 : index
    %c0_78 = arith.constant 0 : index
    %239 = vector.load %arg8[%238, %c0_77, %c0_78] : memref<8x128x128xf32, #tpu.memory_space<vmem>>, vector<1x128x128xf32>
    %240 = vector.shape_cast %239 : vector<1x128x128xf32> to vector<128x128xf32>
    %cst_79 = arith.constant dense<0.000000e+00> : vector<128x128xf32>
    %241 = tpu.matmul %82, %234, %cst_79 {dimension_numbers = #tpu.dot_dimension_numbers<[1], [0], [0], [1], [0, 0, 1, 1], [], []>} : vector<128x32xf32>, vector<32x128xf32>, vector<128x128xf32> -> vector<128x128xf32>
    %242 = arith.addf %240, %241 : vector<128x128xf32>
    %243 = vector.extract_strided_slice %242 {offsets = [0, 0], sizes = [32, 128], strides = [1, 1]} : vector<128x128xf32> to vector<32x128xf32>
    %244 = arith.negf %243 : vector<32x128xf32>
    %245 = math.exp %244 : vector<32x128xf32>
    %cst_80 = arith.constant 1.000000e+00 : f32
    %246 = vector.broadcast %cst_80 : f32 to vector<32x128xf32>
    %247 = arith.addf %246, %245 : vector<32x128xf32>
    %248 = arith.divf %246, %247 : vector<32x128xf32>
    %249 = vector.extract_strided_slice %242 {offsets = [32, 0], sizes = [32, 128], strides = [1, 1]} : vector<128x128xf32> to vector<32x128xf32>
    %250 = arith.negf %249 : vector<32x128xf32>
    %251 = math.exp %250 : vector<32x128xf32>
    %cst_81 = arith.constant 1.000000e+00 : f32
    %252 = vector.broadcast %cst_81 : f32 to vector<32x128xf32>
    %253 = arith.addf %252, %251 : vector<32x128xf32>
    %254 = arith.divf %252, %253 : vector<32x128xf32>
    %255 = vector.extract_strided_slice %242 {offsets = [64, 0], sizes = [32, 128], strides = [1, 1]} : vector<128x128xf32> to vector<32x128xf32>
    %256 = math.tanh %255 : vector<32x128xf32>
    %257 = vector.extract_strided_slice %242 {offsets = [96, 0], sizes = [32, 128], strides = [1, 1]} : vector<128x128xf32> to vector<32x128xf32>
    %258 = arith.negf %257 : vector<32x128xf32>
    %259 = math.exp %258 : vector<32x128xf32>
    %cst_82 = arith.constant 1.000000e+00 : f32
    %260 = vector.broadcast %cst_82 : f32 to vector<32x128xf32>
    %261 = arith.addf %260, %259 : vector<32x128xf32>
    %262 = arith.divf %260, %261 : vector<32x128xf32>
    %263 = arith.mulf %254, %237 : vector<32x128xf32>
    %264 = arith.mulf %248, %256 : vector<32x128xf32>
    %265 = arith.addf %263, %264 : vector<32x128xf32>
    %266 = math.tanh %265 : vector<32x128xf32>
    %267 = arith.mulf %262, %266 : vector<32x128xf32>
    %268 = vector.broadcast %c4_i32_76 : i32 to vector<1x128xi32>
    %269 = arith.cmpi slt, %268, %83 : vector<1x128xi32>
    %270 = vector.shape_cast %269 : vector<1x128xi1> to vector<1x128xi1>
    %271 = vector.broadcast %270 : vector<1x128xi1> to vector<32x128xi1>
    %272 = arith.select %271, %267, %234 : vector<32x128xi1>, vector<32x128xf32>
    %273 = vector.shape_cast %269 : vector<1x128xi1> to vector<1x128xi1>
    %274 = vector.broadcast %273 : vector<1x128xi1> to vector<32x128xi1>
    %275 = arith.select %274, %265, %237 : vector<32x128xi1>, vector<32x128xf32>
    %c5_i32_83 = arith.constant 5 : i32
    %276 = arith.index_cast %c5_i32_83 : i32 to index
    %c0_84 = arith.constant 0 : index
    %c0_85 = arith.constant 0 : index
    %277 = vector.load %arg8[%276, %c0_84, %c0_85] : memref<8x128x128xf32, #tpu.memory_space<vmem>>, vector<1x128x128xf32>
    %278 = vector.shape_cast %277 : vector<1x128x128xf32> to vector<128x128xf32>
    %cst_86 = arith.constant dense<0.000000e+00> : vector<128x128xf32>
    %279 = tpu.matmul %82, %272, %cst_86 {dimension_numbers = #tpu.dot_dimension_numbers<[1], [0], [0], [1], [0, 0, 1, 1], [], []>} : vector<128x32xf32>, vector<32x128xf32>, vector<128x128xf32> -> vector<128x128xf32>
    %280 = arith.addf %278, %279 : vector<128x128xf32>
    %281 = vector.extract_strided_slice %280 {offsets = [0, 0], sizes = [32, 128], strides = [1, 1]} : vector<128x128xf32> to vector<32x128xf32>
    %282 = arith.negf %281 : vector<32x128xf32>
    %283 = math.exp %282 : vector<32x128xf32>
    %cst_87 = arith.constant 1.000000e+00 : f32
    %284 = vector.broadcast %cst_87 : f32 to vector<32x128xf32>
    %285 = arith.addf %284, %283 : vector<32x128xf32>
    %286 = arith.divf %284, %285 : vector<32x128xf32>
    %287 = vector.extract_strided_slice %280 {offsets = [32, 0], sizes = [32, 128], strides = [1, 1]} : vector<128x128xf32> to vector<32x128xf32>
    %288 = arith.negf %287 : vector<32x128xf32>
    %289 = math.exp %288 : vector<32x128xf32>
    %cst_88 = arith.constant 1.000000e+00 : f32
    %290 = vector.broadcast %cst_88 : f32 to vector<32x128xf32>
    %291 = arith.addf %290, %289 : vector<32x128xf32>
    %292 = arith.divf %290, %291 : vector<32x128xf32>
    %293 = vector.extract_strided_slice %280 {offsets = [64, 0], sizes = [32, 128], strides = [1, 1]} : vector<128x128xf32> to vector<32x128xf32>
    %294 = math.tanh %293 : vector<32x128xf32>
    %295 = vector.extract_strided_slice %280 {offsets = [96, 0], sizes = [32, 128], strides = [1, 1]} : vector<128x128xf32> to vector<32x128xf32>
    %296 = arith.negf %295 : vector<32x128xf32>
    %297 = math.exp %296 : vector<32x128xf32>
    %cst_89 = arith.constant 1.000000e+00 : f32
    %298 = vector.broadcast %cst_89 : f32 to vector<32x128xf32>
    %299 = arith.addf %298, %297 : vector<32x128xf32>
    %300 = arith.divf %298, %299 : vector<32x128xf32>
    %301 = arith.mulf %292, %275 : vector<32x128xf32>
    %302 = arith.mulf %286, %294 : vector<32x128xf32>
    %303 = arith.addf %301, %302 : vector<32x128xf32>
    %304 = math.tanh %303 : vector<32x128xf32>
    %305 = arith.mulf %300, %304 : vector<32x128xf32>
    %306 = vector.broadcast %c5_i32_83 : i32 to vector<1x128xi32>
    %307 = arith.cmpi slt, %306, %83 : vector<1x128xi32>
    %308 = vector.shape_cast %307 : vector<1x128xi1> to vector<1x128xi1>
    %309 = vector.broadcast %308 : vector<1x128xi1> to vector<32x128xi1>
    %310 = arith.select %309, %305, %272 : vector<32x128xi1>, vector<32x128xf32>
    %311 = vector.shape_cast %307 : vector<1x128xi1> to vector<1x128xi1>
    %312 = vector.broadcast %311 : vector<1x128xi1> to vector<32x128xi1>
    %313 = arith.select %312, %303, %275 : vector<32x128xi1>, vector<32x128xf32>
    %c6_i32_90 = arith.constant 6 : i32
    %314 = arith.index_cast %c6_i32_90 : i32 to index
    %c0_91 = arith.constant 0 : index
    %c0_92 = arith.constant 0 : index
    %315 = vector.load %arg8[%314, %c0_91, %c0_92] : memref<8x128x128xf32, #tpu.memory_space<vmem>>, vector<1x128x128xf32>
    %316 = vector.shape_cast %315 : vector<1x128x128xf32> to vector<128x128xf32>
    %cst_93 = arith.constant dense<0.000000e+00> : vector<128x128xf32>
    %317 = tpu.matmul %82, %310, %cst_93 {dimension_numbers = #tpu.dot_dimension_numbers<[1], [0], [0], [1], [0, 0, 1, 1], [], []>} : vector<128x32xf32>, vector<32x128xf32>, vector<128x128xf32> -> vector<128x128xf32>
    %318 = arith.addf %316, %317 : vector<128x128xf32>
    %319 = vector.extract_strided_slice %318 {offsets = [0, 0], sizes = [32, 128], strides = [1, 1]} : vector<128x128xf32> to vector<32x128xf32>
    %320 = arith.negf %319 : vector<32x128xf32>
    %321 = math.exp %320 : vector<32x128xf32>
    %cst_94 = arith.constant 1.000000e+00 : f32
    %322 = vector.broadcast %cst_94 : f32 to vector<32x128xf32>
    %323 = arith.addf %322, %321 : vector<32x128xf32>
    %324 = arith.divf %322, %323 : vector<32x128xf32>
    %325 = vector.extract_strided_slice %318 {offsets = [32, 0], sizes = [32, 128], strides = [1, 1]} : vector<128x128xf32> to vector<32x128xf32>
    %326 = arith.negf %325 : vector<32x128xf32>
    %327 = math.exp %326 : vector<32x128xf32>
    %cst_95 = arith.constant 1.000000e+00 : f32
    %328 = vector.broadcast %cst_95 : f32 to vector<32x128xf32>
    %329 = arith.addf %328, %327 : vector<32x128xf32>
    %330 = arith.divf %328, %329 : vector<32x128xf32>
    %331 = vector.extract_strided_slice %318 {offsets = [64, 0], sizes = [32, 128], strides = [1, 1]} : vector<128x128xf32> to vector<32x128xf32>
    %332 = math.tanh %331 : vector<32x128xf32>
    %333 = vector.extract_strided_slice %318 {offsets = [96, 0], sizes = [32, 128], strides = [1, 1]} : vector<128x128xf32> to vector<32x128xf32>
    %334 = arith.negf %333 : vector<32x128xf32>
    %335 = math.exp %334 : vector<32x128xf32>
    %cst_96 = arith.constant 1.000000e+00 : f32
    %336 = vector.broadcast %cst_96 : f32 to vector<32x128xf32>
    %337 = arith.addf %336, %335 : vector<32x128xf32>
    %338 = arith.divf %336, %337 : vector<32x128xf32>
    %339 = arith.mulf %330, %313 : vector<32x128xf32>
    %340 = arith.mulf %324, %332 : vector<32x128xf32>
    %341 = arith.addf %339, %340 : vector<32x128xf32>
    %342 = math.tanh %341 : vector<32x128xf32>
    %343 = arith.mulf %338, %342 : vector<32x128xf32>
    %344 = vector.broadcast %c6_i32_90 : i32 to vector<1x128xi32>
    %345 = arith.cmpi slt, %344, %83 : vector<1x128xi32>
    %346 = vector.shape_cast %345 : vector<1x128xi1> to vector<1x128xi1>
    %347 = vector.broadcast %346 : vector<1x128xi1> to vector<32x128xi1>
    %348 = arith.select %347, %343, %310 : vector<32x128xi1>, vector<32x128xf32>
    %349 = vector.shape_cast %345 : vector<1x128xi1> to vector<1x128xi1>
    %350 = vector.broadcast %349 : vector<1x128xi1> to vector<32x128xi1>
    %351 = arith.select %350, %341, %313 : vector<32x128xi1>, vector<32x128xf32>
    %c7_i32_97 = arith.constant 7 : i32
    %352 = arith.index_cast %c7_i32_97 : i32 to index
    %c0_98 = arith.constant 0 : index
    %c0_99 = arith.constant 0 : index
    %353 = vector.load %arg8[%352, %c0_98, %c0_99] : memref<8x128x128xf32, #tpu.memory_space<vmem>>, vector<1x128x128xf32>
    %354 = vector.shape_cast %353 : vector<1x128x128xf32> to vector<128x128xf32>
    %cst_100 = arith.constant dense<0.000000e+00> : vector<128x128xf32>
    %355 = tpu.matmul %82, %348, %cst_100 {dimension_numbers = #tpu.dot_dimension_numbers<[1], [0], [0], [1], [0, 0, 1, 1], [], []>} : vector<128x32xf32>, vector<32x128xf32>, vector<128x128xf32> -> vector<128x128xf32>
    %356 = arith.addf %354, %355 : vector<128x128xf32>
    %357 = vector.extract_strided_slice %356 {offsets = [0, 0], sizes = [32, 128], strides = [1, 1]} : vector<128x128xf32> to vector<32x128xf32>
    %358 = arith.negf %357 : vector<32x128xf32>
    %359 = math.exp %358 : vector<32x128xf32>
    %cst_101 = arith.constant 1.000000e+00 : f32
    %360 = vector.broadcast %cst_101 : f32 to vector<32x128xf32>
    %361 = arith.addf %360, %359 : vector<32x128xf32>
    %362 = arith.divf %360, %361 : vector<32x128xf32>
    %363 = vector.extract_strided_slice %356 {offsets = [32, 0], sizes = [32, 128], strides = [1, 1]} : vector<128x128xf32> to vector<32x128xf32>
    %364 = arith.negf %363 : vector<32x128xf32>
    %365 = math.exp %364 : vector<32x128xf32>
    %cst_102 = arith.constant 1.000000e+00 : f32
    %366 = vector.broadcast %cst_102 : f32 to vector<32x128xf32>
    %367 = arith.addf %366, %365 : vector<32x128xf32>
    %368 = arith.divf %366, %367 : vector<32x128xf32>
    %369 = vector.extract_strided_slice %356 {offsets = [64, 0], sizes = [32, 128], strides = [1, 1]} : vector<128x128xf32> to vector<32x128xf32>
    %370 = math.tanh %369 : vector<32x128xf32>
    %371 = vector.extract_strided_slice %356 {offsets = [96, 0], sizes = [32, 128], strides = [1, 1]} : vector<128x128xf32> to vector<32x128xf32>
    %372 = arith.negf %371 : vector<32x128xf32>
    %373 = math.exp %372 : vector<32x128xf32>
    %cst_103 = arith.constant 1.000000e+00 : f32
    %374 = vector.broadcast %cst_103 : f32 to vector<32x128xf32>
    %375 = arith.addf %374, %373 : vector<32x128xf32>
    %376 = arith.divf %374, %375 : vector<32x128xf32>
    %377 = arith.mulf %368, %351 : vector<32x128xf32>
    %378 = arith.mulf %362, %370 : vector<32x128xf32>
    %379 = arith.addf %377, %378 : vector<32x128xf32>
    %380 = math.tanh %379 : vector<32x128xf32>
    %381 = arith.mulf %376, %380 : vector<32x128xf32>
    %382 = vector.broadcast %c7_i32_97 : i32 to vector<1x128xi32>
    %383 = arith.cmpi slt, %382, %83 : vector<1x128xi32>
    %384 = vector.shape_cast %383 : vector<1x128xi1> to vector<1x128xi1>
    %385 = vector.broadcast %384 : vector<1x128xi1> to vector<32x128xi1>
    %386 = arith.select %385, %381, %348 : vector<32x128xi1>, vector<32x128xf32>
    %387 = vector.shape_cast %383 : vector<1x128xi1> to vector<1x128xi1>
    %388 = vector.broadcast %387 : vector<1x128xi1> to vector<32x128xi1>
    %389 = arith.select %388, %379, %351 : vector<32x128xi1>, vector<32x128xf32>
    %c8_i32_104 = arith.constant 8 : i32
    %c0_105 = arith.constant 0 : index
    %c0_106 = arith.constant 0 : index
    %390 = vector.load %arg3[%c0_105, %c0_106] : memref<32x128xf32, #tpu.memory_space<vmem>>, vector<32x128xf32>
    %391 = arith.mulf %386, %390 : vector<32x128xf32>
    %cst_107 = arith.constant dense<0.000000e+00> : vector<128xf32>
    %392 = vector.multi_reduction <add>, %391, %cst_107 [0] : vector<32x128xf32> to vector<128xf32>
    %393 = vector.shape_cast %392 : vector<128xf32> to vector<1x128xf32>
    %c0_108 = arith.constant 0 : index
    %c0_109 = arith.constant 0 : index
    %394 = vector.load %arg7[%c0_108, %c0_109] : memref<1x128xf32, #tpu.memory_space<vmem>>, vector<1x128xf32>
    tpu.vector_store %arg7[%c0_108, %c0_109], %393 {strides = array<i32>} : memref<1x128xf32, #tpu.memory_space<vmem>>, vector<1x128xf32>,
    return
  }
  func.func @transform_0(%arg0: i32) -> (i32, i32, i32) {
    %c0_i32 = arith.constant 0 : i32
    %c0_i32_0 = arith.constant 0 : i32
    %c0_i32_1 = arith.constant 0 : i32
    return %c0_i32, %c0_i32_0, %arg0 : i32, i32, i32
  }
  func.func @transform_1(%arg0: i32) -> (i32, i32) {
    %c0_i32 = arith.constant 0 : i32
    %c0_i32_0 = arith.constant 0 : i32
    return %c0_i32, %arg0 : i32, i32
  }
  func.func @transform_2(%arg0: i32) -> (i32, i32) {
    %c0_i32 = arith.constant 0 : i32
    %c0_i32_0 = arith.constant 0 : i32
    return %c0_i32, %arg0 : i32, i32
  }
  func.func @transform_3(%arg0: i32) -> (i32, i32) {
    %c0_i32 = arith.constant 0 : i32
    %c0_i32_0 = arith.constant 0 : i32
    %c0_i32_1 = arith.constant 0 : i32
    return %c0_i32, %c0_i32_0 : i32, i32
  }
  func.func @transform_4(%arg0: i32) -> (i32, i32) {
    %c0_i32 = arith.constant 0 : i32
    %c0_i32_0 = arith.constant 0 : i32
    %c0_i32_1 = arith.constant 0 : i32
    return %c0_i32, %c0_i32_0 : i32, i32
  }
  func.func @transform_5(%arg0: i32) -> (i32, i32) {
    %c0_i32 = arith.constant 0 : i32
    %c0_i32_0 = arith.constant 0 : i32
    %c0_i32_1 = arith.constant 0 : i32
    return %c0_i32, %c0_i32_0 : i32, i32
  }
  func.func @transform_6(%arg0: i32) -> (i32, i32) {
    %c0_i32 = arith.constant 0 : i32
    %c0_i32_0 = arith.constant 0 : i32
    return %arg0, %c0_i32 : i32, i32
  }
}

</mosaic_0001>

<bundles_post_ra>
// kernel: tpu_custom_call.1
= control target key start
LH: loop header
LB: loop body
LE: loop exit
PB: predicated region body
PF: predicated region fallthrough
CT: control target
= control target key end

     0   :  { %v7899_v3 = vmov 0   ;;  %vm142_vm0 = vcmask 392192   ;;  %s7892_s0 = inlined_call_operand.vmem [shape: f32[8,48,128], index: 0, kind: input, shape index: {}]   ;;  %s7893_s1 = inlined_call_operand.vmem [shape: s32[1,128], index: 1, kind: input, shape index: {}]   ;;  %s7894_s2 = inlined_call_operand.vmem [shape: f32[32,128], index: 2, kind: input, shape index: {}]   ;;  %s7895_s3 = inlined_call_operand.vmem [shape: f32[128,48], index: 3, kind: input, shape index: {}]   ;;  %s7896_s4 = inlined_call_operand.vmem [shape: f32[128,32], index: 4, kind: input, shape index: {}]   ;;  %s7897_s5 = inlined_call_operand.vmem [shape: f32[128,1], index: 5, kind: input, shape index: {}]   ;;  %s7898_s6 = inlined_call_operand.hbm [shape: f32[1,128], index: 6, kind: output, shape index: {}]  }
   0x1   :  { %v61_v0 = vld [vmem:[%s7892_s0 + $0x28] sm:$0xff]  ;;  %v60_v1 = vld [vmem:[%s7892_s0 + $0x20] sm:$0xff]  ;;  %v3954_v2 = vld [vmem:[%s7892_s0 + $0x58] sm:$0xff]  ;;  %5205 = vset.pattern.permute.xlu0 %v7899_v3 }
   0x2   :  { %4664 = vmatprep.subr.mxu0 %v61_v0  ;;  %v59_v4 = vld [vmem:[%s7892_s0 + $0x18] sm:$0xff]  ;;  %4700 = vmatprep.subr.mxu1 %v3954_v2  ;;  %v3953_v5 = vld [vmem:[%s7892_s0 + $0x50] sm:$0xff]  ;;  %v3952_v6 = vld [vmem:[%s7892_s0 + $0x48] sm:$0xff] }
   0x3   :  { %4665 = vmatpush3.msra.mxu0 %v61_v0  ;;  %4701 = vmatpush3.msra.mxu1 %v3954_v2  ;;  %v58_v7 = vld [vmem:[%s7892_s0 + $0x10] sm:$0xff]  ;;  %v5838_v8 = vld [vmem:[%s7895_s3] sm:$0xff]  ;;  %v57_v9 = vld [vmem:[%s7892_s0 + $0x8] sm:$0xff] }
   0x4   :  { %4666 = vmatprep.subr.mxu0 %v60_v1  ;;  %4702 = vmatprep.subr.mxu1 %v3953_v5  ;;  %v3951_v10 = vld [vmem:[%s7892_s0 + $0x40] sm:$0xff]  ;;  %v3950_v12 = vld [vmem:[%s7892_s0 + $0x38] sm:$0xff]  ;;  %v5857_v13 = vld [vmem:[%s7895_s3 + $0x8] sm:$0xff] }
   0x5   :  { %4667 = vmatpush3.msra.mxu0 %v60_v1  ;;  %4703 = vmatpush3.msra.mxu1 %v3953_v5  ;;  %v56_v11 = vld [vmem:[%s7892_s0] sm:$0xff]  ;;  %v3949_v14 = vld [vmem:[%s7892_s0 + $0x30] sm:$0xff]  ;;  %v3976_v16 = vld [vmem:[%s7892_s0 + $0x88] sm:$0xff] }
   0x6   :  { %4668 = vmatprep.subr.mxu0 %v59_v4  ;;  %4704 = vmatprep.subr.mxu1 %v3952_v6  ;;  %v5865_v15 = vld [vmem:[%s7895_s3 + $0x10] sm:$0xff]  ;;  %v5877_v17 = vld [vmem:[%s7895_s3 + $0x18] sm:$0xff]  ;;  %v5884_v18 = vld [vmem:[%s7895_s3 + $0x20] sm:$0xff] }
   0x7   :  { %4669 = vmatpush3.msra.mxu0 %v59_v4  ;;  %4676 = vmatprep.mubr.msk.f32.mxu0 %vm142_vm0, %v5838_v8  ;;  %v3975_v19 = vld [vmem:[%s7892_s0 + $0x80] sm:$0xff]  ;;  %v3998_v20 = vld [vmem:[%s7892_s0 + $0xb8] sm:$0xff]  ;;  %v5906_v22 = vld [vmem:[%s7895_s3 + $0x28] sm:$0xff] }
   0x8   :  { %4670 = vmatprep.subr.mxu0 %v58_v7  ;;  %4705 = vmatpush3.msra.mxu1 %v3952_v6  ;;  %v3974_v21 = vld [vmem:[%s7892_s0 + $0x78] sm:$0xff]  ;;  %v5911_v23 = vld [vmem:[%s7895_s3 + $0x30] sm:$0xff]  ;;  %v5932_v26 = vld [vmem:[%s7895_s3 + $0x40] sm:$0xff] }
   0x9   :  { %4671 = vmatpush3.msra.mxu0 %v58_v7  ;;  %4706 = vmatprep.subr.mxu1 %v3951_v10  ;;  %v3973_v24 = vld [vmem:[%s7892_s0 + $0x70] sm:$0xff]  ;;  %v5927_v25 = vld [vmem:[%s7895_s3 + $0x38] sm:$0xff]  ;;  %v3972_v27 = vld [vmem:[%s7892_s0 + $0x68] sm:$0xff] }
   0xa   :  { %4672 = vmatprep.subr.mxu0 %v57_v9  ;;  %4707 = vmatpush3.msra.mxu1 %v3951_v10  ;;  %v3997_v28 = vld [vmem:[%s7892_s0 + $0xb0] sm:$0xff]  ;;  %v3971_v29 = vld [vmem:[%s7892_s0 + $0x60] sm:$0xff]  ;;  %v5954_v30 = vld [vmem:[%s7895_s3 + $0x48] sm:$0xff] }
   0xb   :  { %4673 = vmatpush3.msra.mxu0 %v57_v9  ;;  %4708 = vmatprep.subr.mxu1 %v3950_v12  ;;  %v5959_v31 = vld [vmem:[%s7895_s3 + $0x50] sm:$0xff]  ;;  %v3996_v32 = vld [vmem:[%s7892_s0 + $0xa8] sm:$0xff]  ;;  %v5978_v34 = vld [vmem:[%s7895_s3 + $0x58] sm:$0xff] }
   0xc   :  { %4674 = vmatprep.subr.mxu0 %v56_v11  ;;  %4709 = vmatpush3.msra.mxu1 %v3950_v12  ;;  %v4020_v33 = vld [vmem:[%s7892_s0 + $0xe8] sm:$0xff]  ;;  %v5983_v35 = vld [vmem:[%s7895_s3 + $0x60] sm:$0xff] }
   0xd   :  { %4675 = vmatpush3.msra.mxu0 %v56_v11  ;;  %4710 = vmatprep.subr.mxu1 %v3949_v14 }
   0xe   :  { %4677 = vmatmul.mubr.msk.f32.vlgmr.msra.gmra.mxu0 %vm142_vm0, %v5857_v13  ;;  %4711 = vmatpush3.msra.mxu1 %v3949_v14 }
   0xf   :  { %4679 = vmatprep.mubr.msk.f32.mxu0 %vm142_vm0, %v5865_v15  ;;  %4712 = vmatprep.mubr.msk.f32.mxu1 %vm142_vm0, %v5838_v8 }
  0x10   :  { %4736 = vmatprep.subr.mxu0 %v3976_v16  ;;  %4713 = vmatmul.mubr.msk.f32.vlgmr.msra.gmra.mxu1 %vm142_vm0, %v5857_v13 }
  0x11   :  { %4737 = vmatpush3.msra.mxu0 %v3976_v16  ;;  %4715 = vmatprep.mubr.msk.f32.mxu1 %vm142_vm0, %v5865_v15 }
  0x12   :  { %4680 = vmatmul.mubr.msk.f32.gmra.mxu0 %vm142_vm0, %v5877_v17  ;;  %4738 = vmatprep.subr.mxu0 %v3975_v19 }
  0x13   :  { %4682 = vmatprep.mubr.msk.f32.mxu0 %vm142_vm0, %v5884_v18  ;;  %4739 = vmatpush3.msra.mxu0 %v3975_v19 }
  0x14   :  { %4772 = vmatprep.subr.mxu1 %v3998_v20  ;;  %4716 = vmatmul.mubr.msk.f32.gmra.mxu1 %vm142_vm0, %v5877_v17 }
  0x15   :  { %4740 = vmatprep.subr.mxu0 %v3974_v21  ;;  %4718 = vmatprep.mubr.msk.f32.mxu1 %vm142_vm0, %v5884_v18 }
  0x16   :  { %4683 = vmatmul.mubr.msk.f32.gmra.mxu0 %vm142_vm0, %v5906_v22  ;;  %4773 = vmatpush3.msra.mxu1 %v3998_v20 }
  0x17   :  { %4685 = vmatprep.mubr.msk.f32.mxu0 %vm142_vm0, %v5911_v23  ;;  %4741 = vmatpush3.msra.mxu0 %v3974_v21 }
  0x18   :  { %4742 = vmatprep.subr.mxu0 %v3973_v24  ;;  %4719 = vmatmul.mubr.msk.f32.gmra.mxu1 %vm142_vm0, %v5906_v22 }
  0x19   :  { %4743 = vmatpush3.msra.mxu0 %v3973_v24  ;;  %4721 = vmatprep.mubr.msk.f32.mxu1 %vm142_vm0, %v5911_v23 }
  0x1a   :  { %4686 = vmatmul.mubr.msk.f32.gmra.mxu0 %vm142_vm0, %v5927_v25  ;;  %4744 = vmatprep.subr.mxu0 %v3972_v27 }
  0x1b   :  { %4688 = vmatprep.mubr.msk.f32.mxu0 %vm142_vm0, %v5932_v26  ;;  %4774 = vmatprep.subr.mxu1 %v3997_v28 }
  0x1c   :  { %4745 = vmatpush3.msra.mxu0 %v3972_v27  ;;  %4722 = vmatmul.mubr.msk.f32.gmra.mxu1 %vm142_vm0, %v5927_v25 }
  0x1d   :  { %4746 = vmatprep.subr.mxu0 %v3971_v29  ;;  %4724 = vmatprep.mubr.msk.f32.mxu1 %vm142_vm0, %v5932_v26 }
  0x1e   :  { %4689 = vmatmul.mubr.msk.f32.gmra.mxu0 %vm142_vm0, %v5954_v30  ;;  %4775 = vmatpush3.msra.mxu1 %v3997_v28 }
  0x1f   :  { %4691 = vmatprep.mubr.msk.f32.mxu0 %vm142_vm0, %v5959_v31  ;;  %4776 = vmatprep.subr.mxu1 %v3996_v32 }
  0x20   :  { %4747 = vmatpush3.msra.mxu0 %v3971_v29 }
  0x21   :  { %11 = vsyncpa [#allocation4], 0  ;;  %4725 = vmatmul.mubr.msk.f32.gmra.mxu1 %vm142_vm0, %v5954_v30  ;;  %v3995_v36 = vld [vmem:[%s7892_s0 + $0xa0] sm:$0xff]  ;;  %4808 = vmatprep.subr.mxu0 %v4020_v33  ;;  %v43_v37 = vld [vmem:[%s7897_s5 + $0x18] sm:$0xff]  ;;  %v5776_v21 = vmov 0.0   ;;  %vm1568_vm1 = vcmask 261120  }
  0x22   :  { %4692 = vmatmul.mubr.msk.f32.gmra.mxu0 %vm142_vm0, %v5978_v34  ;;  %4727 = vmatprep.mubr.msk.f32.mxu1 %vm142_vm0, %v5959_v31  ;;  %v6002_v38 = vld [vmem:[%s7895_s3 + $0x68] sm:$0xff]  ;;  %v6007_v39 = vld [vmem:[%s7895_s3 + $0x70] sm:$0xff]  ;;  %v3994_v40 = vld [vmem:[%s7892_s0 + $0x98] sm:$0xff] }
  0x23   :  { %4694 = vmatprep.mubr.msk.f32.mxu0 %vm142_vm0, %v5983_v35  ;;  %4777 = vmatpush3.msra.mxu1 %v3996_v32  ;;  %v47_v41 = vld [vmem:[%s7897_s5 + $0x38] sm:$0xff]  ;;  %v42_v42 = vld [vmem:[%s7897_s5 + $0x10] sm:$0xff]  ;;  %v41_v45 = vld [vmem:[%s7897_s5 + $0x8] sm:$0xff] }
  0x24   :  { %4778 = vmatprep.subr.mxu1 %v3995_v36  ;;  %79 = vperm.xlu0 %5205, %v43_v37   ;;  %v6030_v43 = vld [vmem:[%s7895_s3 + $0x78] sm:$0xff]  ;;  %v3993_v44 = vld [vmem:[%s7892_s0 + $0x90] sm:$0xff]  ;;  %v4019_v48 = vld [vmem:[%s7892_s0 + $0xe0] sm:$0xff] }
  0x25   :  { %4728 = vmatmul.mubr.msk.f32.gmra.mxu1 %vm142_vm0, %v5978_v34  ;;  %5206 = vset.pattern.permute.xlu1 %v7899_v3  ;;  %v46_v46 = vld [vmem:[%s7897_s5 + $0x30] sm:$0xff]  ;;  %v4042_v47 = vld [vmem:[%s7892_s0 + $0x118] sm:$0xff]  ;;  %v4016_v52 = vld [vmem:[%s7892_s0 + $0xc8] sm:$0xff] }
  0x26   :  { %4695 = vmatmul.mubr.msk.f32.gmra.mxu0 %vm142_vm0, %v6002_v38  ;;  %4730 = vmatprep.mubr.msk.f32.mxu1 %vm142_vm0, %v5983_v35  ;;  %v4018_v49 = vld [vmem:[%s7892_s0 + $0xd8] sm:$0xff]  ;;  %v4017_v50 = vld [vmem:[%s7892_s0 + $0xd0] sm:$0xff]  ;;  %v4015_v53 = vld [vmem:[%s7892_s0 + $0xc0] sm:$0xff] }
  0x27   :  { %4697 = vmatprep.mubr.msk.f32.mxu0 %vm142_vm0, %v6007_v39  ;;  %4779 = vmatpush3.msra.mxu1 %v3995_v36  ;;  %v4041_v51 = vld [vmem:[%s7892_s0 + $0x110] sm:$0xff]  ;;  %v4040_v54 = vld [vmem:[%s7892_s0 + $0x108] sm:$0xff]  ;;  %v40_v55 = vld [vmem:[%s7897_s5] sm:$0xff] }
  0x28   :  { %4780 = vmatprep.subr.mxu1 %v3994_v40  ;;  %99 = vperm.xlu0 %5205, %v47_v41   ;;  %v4039_v56 = vld [vmem:[%s7892_s0 + $0x100] sm:$0xff]  ;;  %v4038_v57 = vld [vmem:[%s7892_s0 + $0xf8] sm:$0xff]  ;;  %v45_v58 = vld [vmem:[%s7897_s5 + $0x28] sm:$0xff] }
  0x29   :  { %4731 = vmatmul.mubr.msk.f32.gmra.mxu1 %vm142_vm0, %v6002_v38  ;;  %74 = vperm.xlu1 %5206, %v42_v42   ;;  %v51_v59 = vld [vmem:[%s7897_s5 + $0x58] sm:$0xff]  ;;  %v4037_v60 = vld [vmem:[%s7892_s0 + $0xf0] sm:$0xff]  ;;  %v44_v61 = vld [vmem:[%s7897_s5 + $0x20] sm:$0xff] }
  0x2a   :  { %4698 = vmatmul.mubr.msk.f32.gmra.mxu0 %vm142_vm0, %v6030_v43  ;;  %4733 = vmatprep.mubr.msk.f32.mxu1 %vm142_vm0, %v6007_v39  ;;  %v50_v62 = vld [vmem:[%s7897_s5 + $0x50] sm:$0xff]  ;;  %v55_v63 = vld [vmem:[%s7897_s5 + $0x78] sm:$0xff]  ;;  %v4064_v0 = vld [vmem:[%s7892_s0 + $0x148] sm:$0xff] }
  0x2b   :  { %4748 = vmatprep.mubr.msk.f32.mxu0 %vm142_vm0, %v5838_v8  ;;  %4781 = vmatpush3.msra.mxu1 %v3994_v40  ;;  %v49_v1 = vld [vmem:[%s7897_s5 + $0x48] sm:$0xff]  ;;  %v4063_v2 = vld [vmem:[%s7892_s0 + $0x140] sm:$0xff]  ;;  %v54_v4 = vld [vmem:[%s7897_s5 + $0x70] sm:$0xff] }
  0x2c   :  { %4782 = vmatprep.subr.mxu1 %v3993_v44  ;;  %69 = vperm.xlu0 %5205, %v41_v45   ;;  %v48_v5 = vld [vmem:[%s7897_s5 + $0x40] sm:$0xff]  ;;  %v4062_v6 = vld [vmem:[%s7892_s0 + $0x138] sm:$0xff]  ;;  %v4061_v9 = vld [vmem:[%s7892_s0 + $0x130] sm:$0xff] }
  0x2d   :  { %4734 = vmatmul.mubr.msk.f32.gmra.mxu1 %vm142_vm0, %v6030_v43  ;;  %94 = vperm.xlu1 %5206, %v46_v46   ;;  %v4086_v7 = vld [vmem:[%s7892_s0 + $0x178] sm:$0xff]  ;;  %v53_v10 = vld [vmem:[%s7897_s5 + $0x68] sm:$0xff]  ;;  %v4085_v12 = vld [vmem:[%s7892_s0 + $0x170] sm:$0xff] }
  0x2e   :  { %4749 = vmatmul.mubr.msk.f32.vlgmr.msra.gmra.mxu0 %vm142_vm0, %v5857_v13  ;;  %4783 = vmatpush3.msra.mxu1 %v3993_v44  ;;  %v4060_v11 = vld [vmem:[%s7892_s0 + $0x128] sm:$0xff]  ;;  %v4059_v14 = vld [vmem:[%s7892_s0 + $0x120] sm:$0xff]  ;;  %v4082_v24 = vld [vmem:[%s7892_s0 + $0x158] sm:$0xff] }
  0x2f   :  { %4751 = vmatprep.mubr.msk.f32.mxu0 %vm142_vm0, %v5865_v15  ;;  %4784 = vmatprep.mubr.msk.f32.mxu1 %vm142_vm0, %v5838_v8  ;;  %v4084_v16 = vld [vmem:[%s7892_s0 + $0x168] sm:$0xff]  ;;  %v52_v19 = vld [vmem:[%s7897_s5 + $0x60] sm:$0xff]  ;;  %v4081_v27 = vld [vmem:[%s7892_s0 + $0x150] sm:$0xff] }
  0x30   :  { %4809 = vmatpush3.msra.mxu0 %v4020_v33  ;;  %4844 = vmatprep.subr.mxu1 %v4042_v47  ;;  %v4083_v20 = vld [vmem:[%s7892_s0 + $0x160] sm:$0xff]  ;;  %v6411_v28 = vld [vmem:[%s7896_s4 + $0x48] sm:$0xff]  ;;  %v6416_v29 = vld [vmem:[%s7896_s4 + $0x50] sm:$0xff]  ;;  %s5777_s0 = smov [#allocation3]  }
  0x31   :  { %4785 = vmatmul.mubr.msk.f32.vlgmr.msra.gmra.mxu1 %vm142_vm0, %v5857_v13  ;;  %4810 = vmatprep.subr.mxu0 %v4019_v48  ;;  %v6439_v32 = vld [vmem:[%s7896_s4 + $0x68] sm:$0xff]  ;;  %v6444_v33 = vld [vmem:[%s7896_s4 + $0x70] sm:$0xff]  ;;  %s3925_s9 = sshll.u32 %s5777_s0, 4  ;;  %s3926_s9 = int_to_ptr.vmem [resolvable:$true] %s3925_s9 }
  0x32   :  { %4752 = vmatmul.mubr.msk.f32.gmra.mxu0 %vm142_vm0, %v5877_v17  ;;  %4787 = vmatprep.mubr.msk.f32.mxu1 %vm142_vm0, %v5865_v15  ;;  %s5753_s10 = scalar_lea.vmem %s3926_s9, 16  ;;  %s5757_s11 = scalar_lea.vmem %s3926_s9, 32 }
  0x33   :  { %4754 = vmatprep.mubr.msk.f32.mxu0 %vm142_vm0, %v5884_v18  ;;  %4811 = vmatpush3.msra.mxu0 %v4019_v48  ;;  %p5754_p0 = scmp.ne.s32.totalorder %s3926_s9, %s5753_s10  ;;  %p5758_p1 = scmp.lt.s32.totalorder %s3926_s9, %s3926_s9 }
  0x34   :  { %4812 = vmatprep.subr.mxu0 %v4018_v49  ;;  %4845 = vmatpush3.msra.mxu1 %v4042_v47  ;;  %p5759_p2 = scmp.lt.s32.totalorder %s5757_s11, %s5753_s10 }
  0x35   :  { %4788 = vmatmul.mubr.msk.f32.gmra.mxu1 %vm142_vm0, %v5877_v17  ;;  %4813 = vmatpush3.msra.mxu0 %v4018_v49 }
  0x36   :  { %4755 = vmatmul.mubr.msk.f32.gmra.mxu0 %vm142_vm0, %v5906_v22  ;;  %4790 = vmatprep.mubr.msk.f32.mxu1 %vm142_vm0, %v5884_v18  ;;  %p5760_p3 = por %p5759_p2, %p5758_p1 }
  0x37   :  { %4757 = vmatprep.mubr.msk.f32.mxu0 %vm142_vm0, %v5911_v23  ;;  %4814 = vmatprep.subr.mxu0 %v4017_v50 }
  0x38   :  { %4815 = vmatpush3.msra.mxu0 %v4017_v50  ;;  %4846 = vmatprep.subr.mxu1 %v4041_v51  ;;  %p5761_p4 = pnand %p5760_p3, %p5754_p0 }
  0x39   :  { %4791 = vmatmul.mubr.msk.f32.gmra.mxu1 %vm142_vm0, %v5906_v22  ;;  %4816 = vmatprep.subr.mxu0 %v4016_v52 }
  0x3a   :  { %4758 = vmatmul.mubr.msk.f32.gmra.mxu0 %vm142_vm0, %v5927_v25  ;;  %4793 = vmatprep.mubr.msk.f32.mxu1 %vm142_vm0, %v5911_v23 }
  0x3b   :  { %4760 = vmatprep.mubr.msk.f32.mxu0 %vm142_vm0, %v5932_v26  ;;  %4817 = vmatpush3.msra.mxu0 %v4016_v52 }
  0x3c   :  { %4847 = vmatpush3.msra.mxu1 %v4041_v51  ;;  %4818 = vmatprep.subr.mxu0 %v4015_v53 }
  0x3d   :  { %4794 = vmatmul.mubr.msk.f32.gmra.mxu1 %vm142_vm0, %v5927_v25  ;;  %4848 = vmatprep.subr.mxu1 %v4040_v54 }
  0x3e   :  { %4761 = vmatmul.mubr.msk.f32.gmra.mxu0 %vm142_vm0, %v5954_v30  ;;  %4796 = vmatprep.mubr.msk.f32.mxu1 %vm142_vm0, %v5932_v26 }
  0x3f   :  { %4763 = vmatprep.mubr.msk.f32.mxu0 %vm142_vm0, %v5959_v31  ;;  %4819 = vmatpush3.msra.mxu0 %v4015_v53 }
  0x40   :  { %4849 = vmatpush3.msra.mxu1 %v4040_v54  ;;  %64 = vperm.xlu0 %5205, %v40_v55  }
  0x41   :  { %4797 = vmatmul.mubr.msk.f32.gmra.mxu1 %vm142_vm0, %v5954_v30  ;;  %4850 = vmatprep.subr.mxu1 %v4039_v56 }
  0x42   :  { %4764 = vmatmul.mubr.msk.f32.gmra.mxu0 %vm142_vm0, %v5978_v34  ;;  %4799 = vmatprep.mubr.msk.f32.mxu1 %vm142_vm0, %v5959_v31 }
  0x43   :  { %4766 = vmatprep.mubr.msk.f32.mxu0 %vm142_vm0, %v5983_v35  ;;  %4851 = vmatpush3.msra.mxu1 %v4039_v56 }
  0x44   :  { %4852 = vmatprep.subr.mxu1 %v4038_v57  ;;  %89 = vperm.xlu1 %5206, %v45_v58  }
  0x45   :  { %4800 = vmatmul.mubr.msk.f32.gmra.mxu1 %vm142_vm0, %v5978_v34  ;;  %119 = vperm.xlu0 %5205, %v51_v59  }
  0x46   :  { %4767 = vmatmul.mubr.msk.f32.gmra.mxu0 %vm142_vm0, %v6002_v38  ;;  %4802 = vmatprep.mubr.msk.f32.mxu1 %vm142_vm0, %v5983_v35 }
  0x47   :  { %4769 = vmatprep.mubr.msk.f32.mxu0 %vm142_vm0, %v6007_v39  ;;  %4853 = vmatpush3.msra.mxu1 %v4038_v57 }
  0x48   :  { %4854 = vmatprep.subr.mxu1 %v4037_v60  ;;  %84 = vperm.xlu1 %5206, %v44_v61  }
  0x49   :  { %4803 = vmatmul.mubr.msk.f32.gmra.mxu1 %vm142_vm0, %v6002_v38  ;;  %114 = vperm.xlu0 %5205, %v50_v62  }
  0x4a   :  { %4770 = vmatmul.mubr.msk.f32.gmra.mxu0 %vm142_vm0, %v6030_v43  ;;  %4805 = vmatprep.mubr.msk.f32.mxu1 %vm142_vm0, %v6007_v39 }
  0x4b   :  { %4820 = vmatprep.mubr.msk.f32.mxu0 %vm142_vm0, %v5838_v8  ;;  %4855 = vmatpush3.msra.mxu1 %v4037_v60 }
  0x4c   :  { %139 = vperm.xlu1 %5206, %v55_v63   ;;  %4880 = vmatprep.subr.mxu0 %v4064_v0 }
  0x4d   :  { %4806 = vmatmul.mubr.msk.f32.gmra.mxu1 %vm142_vm0, %v6030_v43  ;;  %109 = vperm.xlu0 %5205, %v49_v1  }
  0x4e   :  { %4821 = vmatmul.mubr.msk.f32.vlgmr.msra.gmra.mxu0 %vm142_vm0, %v5857_v13  ;;  %4856 = vmatprep.mubr.msk.f32.mxu1 %vm142_vm0, %v5838_v8 }
  0x4f   :  { %4823 = vmatprep.mubr.msk.f32.mxu0 %vm142_vm0, %v5865_v15  ;;  %4881 = vmatpush3.msra.mxu0 %v4064_v0 }
  0x50   :  { %4882 = vmatprep.subr.mxu0 %v4063_v2  ;;  %134 = vperm.xlu1 %5206, %v54_v4  }
  0x51   :  { %4857 = vmatmul.mubr.msk.f32.vlgmr.msra.gmra.mxu1 %vm142_vm0, %v5857_v13  ;;  %104 = vperm.xlu0 %5205, %v48_v5  }
  0x52   :  { %4824 = vmatmul.mubr.msk.f32.gmra.mxu0 %vm142_vm0, %v5877_v17  ;;  %4859 = vmatprep.mubr.msk.f32.mxu1 %vm142_vm0, %v5865_v15 }
  0x53   :  { %4826 = vmatprep.mubr.msk.f32.mxu0 %vm142_vm0, %v5884_v18  ;;  %4883 = vmatpush3.msra.mxu0 %v4063_v2 }
  0x54   :  { %4884 = vmatprep.subr.mxu0 %v4062_v6  ;;  %4916 = vmatprep.subr.mxu1 %v4086_v7 }
  0x55   :  { %4860 = vmatmul.mubr.msk.f32.gmra.mxu1 %vm142_vm0, %v5877_v17  ;;  %4885 = vmatpush3.msra.mxu0 %v4062_v6 }
  0x56   :  { %4827 = vmatmul.mubr.msk.f32.gmra.mxu0 %vm142_vm0, %v5906_v22  ;;  %4862 = vmatprep.mubr.msk.f32.mxu1 %vm142_vm0, %v5884_v18 }
  0x57   :  { %4829 = vmatprep.mubr.msk.f32.mxu0 %vm142_vm0, %v5911_v23  ;;  %4886 = vmatprep.subr.mxu0 %v4061_v9 }
  0x58   :  { %129 = vperm.xlu1 %5206, %v53_v10   ;;  %4887 = vmatpush3.msra.mxu0 %v4061_v9 }
  0x59   :  { %4863 = vmatmul.mubr.msk.f32.gmra.mxu1 %vm142_vm0, %v5906_v22  ;;  %4888 = vmatprep.subr.mxu0 %v4060_v11 }
  0x5a   :  { %4830 = vmatmul.mubr.msk.f32.gmra.mxu0 %vm142_vm0, %v5927_v25  ;;  %4865 = vmatprep.mubr.msk.f32.mxu1 %vm142_vm0, %v5911_v23 }
  0x5b   :  { %4832 = vmatprep.mubr.msk.f32.mxu0 %vm142_vm0, %v5932_v26  ;;  %4917 = vmatpush3.msra.mxu1 %v4086_v7 }
  0x5c   :  { %4918 = vmatprep.subr.mxu1 %v4085_v12  ;;  %4889 = vmatpush3.msra.mxu0 %v4060_v11 }
  0x5d   :  { %4866 = vmatmul.mubr.msk.f32.gmra.mxu1 %vm142_vm0, %v5927_v25  ;;  %4890 = vmatprep.subr.mxu0 %v4059_v14 }
  0x5e   :  { %4833 = vmatmul.mubr.msk.f32.gmra.mxu0 %vm142_vm0, %v5954_v30  ;;  %4868 = vmatprep.mubr.msk.f32.mxu1 %vm142_vm0, %v5932_v26 }
  0x5f   :  { %4835 = vmatprep.mubr.msk.f32.mxu0 %vm142_vm0, %v5959_v31  ;;  %4919 = vmatpush3.msra.mxu1 %v4085_v12 }
  0x60   :  { %4920 = vmatprep.subr.mxu1 %v4084_v16  ;;  %124 = vperm.xlu1 %5206, %v52_v19  }
  0x61   :  { %4869 = vmatmul.mubr.msk.f32.gmra.mxu1 %vm142_vm0, %v5954_v30  ;;  %4891 = vmatpush3.msra.mxu0 %v4059_v14 }
  0x62   :  { %4836 = vmatmul.mubr.msk.f32.gmra.mxu0 %vm142_vm0, %v5978_v34  ;;  %4871 = vmatprep.mubr.msk.f32.mxu1 %vm142_vm0, %v5959_v31 }
  0x63   :  { %4838 = vmatprep.mubr.msk.f32.mxu0 %vm142_vm0, %v5983_v35  ;;  %4921 = vmatpush3.msra.mxu1 %v4084_v16 }
  0x64   :  { %4922 = vmatprep.subr.mxu1 %v4083_v20  ;;  %4952 = vmatprep.subr.mxu0 %v5776_v21 }
  0x65   :  { %4872 = vmatmul.mubr.msk.f32.gmra.mxu1 %vm142_vm0, %v5978_v34 }
  0x66   :  { %4839 = vmatmul.mubr.msk.f32.gmra.mxu0 %vm142_vm0, %v6002_v38  ;;  %4874 = vmatprep.mubr.msk.f32.mxu1 %vm142_vm0, %v5983_v35 }
  0x67   :  { %4841 = vmatprep.mubr.msk.f32.mxu0 %vm142_vm0, %v6007_v39  ;;  %4923 = vmatpush3.msra.mxu1 %v4083_v20 }
  0x68   :  { %4924 = vmatprep.subr.mxu1 %v4082_v24 }
  0x69   :  { %4875 = vmatmul.mubr.msk.f32.gmra.mxu1 %vm142_vm0, %v6002_v38 }
  0x6a   :  { %4842 = vmatmul.mubr.msk.f32.gmra.mxu0 %vm142_vm0, %v6030_v43  ;;  %4877 = vmatprep.mubr.msk.f32.mxu1 %vm142_vm0, %v6007_v39 }
  0x6b   :  { %4892 = vmatprep.mubr.msk.f32.mxu0 %vm142_vm0, %v5838_v8  ;;  %4925 = vmatpush3.msra.mxu1 %v4082_v24 }
  0x6c   :  { %4926 = vmatprep.subr.mxu1 %v4081_v27 }
  0x6d   :  { %4878 = vmatmul.mubr.msk.f32.gmra.mxu1 %vm142_vm0, %v6030_v43 }
  0x6e   :  { %4893 = vmatmul.mubr.msk.f32.vlgmr.msra.gmra.mxu0 %vm142_vm0, %v5857_v13  ;;  %4927 = vmatpush3.msra.mxu1 %v4081_v27 }
  0x6f   :  { %4895 = vmatprep.mubr.msk.f32.mxu0 %vm142_vm0, %v5865_v15  ;;  %4928 = vmatprep.mubr.msk.f32.mxu1 %vm142_vm0, %v5838_v8  ;;  %v6338_v8 = vld [vmem:[%s7896_s4] sm:$0xff] }
  0x70   :  { %4953 = vmatpush3.msra.mxu0 %v5776_v21 }
  0x71   :  { %4929 = vmatmul.mubr.msk.f32.vlgmr.msra.gmra.mxu1 %vm142_vm0, %v5857_v13  ;;  %v6351_v13 = vld [vmem:[%s7896_s4 + $0x8] sm:$0xff] }
  0x72   :  { %4896 = vmatmul.mubr.msk.f32.gmra.mxu0 %vm142_vm0, %v5877_v17  ;;  %4931 = vmatprep.mubr.msk.f32.mxu1 %vm142_vm0, %v5865_v15  ;;  %v6356_v15 = vld [vmem:[%s7896_s4 + $0x10] sm:$0xff] }
  0x73   :  { %4898 = vmatprep.mubr.msk.f32.mxu0 %vm142_vm0, %v5884_v18 }
  0x75   :  { %4932 = vmatmul.mubr.msk.f32.gmra.mxu1 %vm142_vm0, %v5877_v17  ;;  %v6369_v17 = vld [vmem:[%s7896_s4 + $0x18] sm:$0xff] }
  0x76   :  { %4899 = vmatmul.mubr.msk.f32.gmra.mxu0 %vm142_vm0, %v5906_v22  ;;  %4934 = vmatprep.mubr.msk.f32.mxu1 %vm142_vm0, %v5884_v18  ;;  %v6374_v18 = vld [vmem:[%s7896_s4 + $0x20] sm:$0xff] }
  0x77   :  { %4901 = vmatprep.mubr.msk.f32.mxu0 %vm142_vm0, %v5911_v23 }
  0x79   :  { %4935 = vmatmul.mubr.msk.f32.gmra.mxu1 %vm142_vm0, %v5906_v22  ;;  %v6383_v22 = vld [vmem:[%s7896_s4 + $0x28] sm:$0xff] }
  0x7a   :  { %4902 = vmatmul.mubr.msk.f32.gmra.mxu0 %vm142_vm0, %v5927_v25  ;;  %4937 = vmatprep.mubr.msk.f32.mxu1 %vm142_vm0, %v5911_v23  ;;  %v6388_v23 = vld [vmem:[%s7896_s4 + $0x30] sm:$0xff] }
  0x7b   :  { %4904 = vmatprep.mubr.msk.f32.mxu0 %vm142_vm0, %v5932_v26 }
  0x7d   :  { %4938 = vmatmul.mubr.msk.f32.gmra.mxu1 %vm142_vm0, %v5927_v25  ;;  %v6397_v25 = vld [vmem:[%s7896_s4 + $0x38] sm:$0xff] }
  0x7e   :  { %4905 = vmatmul.mubr.msk.f32.gmra.mxu0 %vm142_vm0, %v5954_v30  ;;  %4940 = vmatprep.mubr.msk.f32.mxu1 %vm142_vm0, %v5932_v26  ;;  %v6402_v26 = vld [vmem:[%s7896_s4 + $0x40] sm:$0xff] }
  0x7f   :  { %4907 = vmatprep.mubr.msk.f32.mxu0 %vm142_vm0, %v5959_v31 }
  0x81   :  { %4941 = vmatmul.mubr.msk.f32.gmra.mxu1 %vm142_vm0, %v5954_v30  ;;  %v6425_v30 = vld [vmem:[%s7896_s4 + $0x58] sm:$0xff] }
  0x82   :  { %4908 = vmatmul.mubr.msk.f32.gmra.mxu0 %vm142_vm0, %v5978_v34  ;;  %4943 = vmatprep.mubr.msk.f32.mxu1 %vm142_vm0, %v5959_v31  ;;  %v6430_v31 = vld [vmem:[%s7896_s4 + $0x60] sm:$0xff] }
  0x83   :  { %4910 = vmatprep.mubr.msk.f32.mxu0 %vm142_vm0, %v5983_v35 }
  0x85   :  { %4944 = vmatmul.mubr.msk.f32.gmra.mxu1 %vm142_vm0, %v5978_v34  ;;  %v6453_v34 = vld [vmem:[%s7896_s4 + $0x78] sm:$0xff] }
  0x86   :  { %4911 = vmatmul.mubr.msk.f32.gmra.mxu0 %vm142_vm0, %v6002_v38  ;;  %4946 = vmatprep.mubr.msk.f32.mxu1 %vm142_vm0, %v5983_v35 }
  0x87   :  { %4913 = vmatprep.mubr.msk.f32.mxu0 %vm142_vm0, %v6007_v39 }
  0x89   :  { %4947 = vmatmul.mubr.msk.f32.gmra.mxu1 %vm142_vm0, %v6002_v38 }
  0x8a   :  { %4914 = vmatmul.mubr.msk.f32.gmra.mxu0 %vm142_vm0, %v6030_v43  ;;  %4949 = vmatprep.mubr.msk.f32.mxu1 %vm142_vm0, %v6007_v39 }
  0x8b   :  { %4954 = vmatprep.mubr.msk.f32.mxu0 %vm1568_vm1, %v6338_v8 }
  0x8d   :  { %4950 = vmatmul.mubr.msk.f32.gmra.mxu1 %vm142_vm0, %v6030_v43 }
  0x8e   :  { %4955 = vmatmul.mubr.msk.f32.vlgmr.msra.gmra.mxu0 %vm1568_vm1, %v6351_v13  ;;  %4986 = vmatprep.mubr.msk.f32.mxu1 %vm1568_vm1, %v6338_v8 }
  0x8f   :  { %4957 = vmatprep.mubr.msk.f32.mxu0 %vm1568_vm1, %v6356_v15 }
  0x92   :  { %4958 = vmatmul.mubr.msk.f32.gmra.mxu0 %vm1568_vm1, %v6369_v17 }
  0x93   :  { %4960 = vmatprep.mubr.msk.f32.mxu0 %vm1568_vm1, %v6374_v18 }
  0x96   :  { %4961 = vmatmul.mubr.msk.f32.gmra.mxu0 %vm1568_vm1, %v6383_v22 }
  0x97   :  { %4963 = vmatprep.mubr.msk.f32.mxu0 %vm1568_vm1, %v6388_v23 }
  0x9a   :  { %4964 = vmatmul.mubr.msk.f32.gmra.mxu0 %vm1568_vm1, %v6397_v25 }
  0x9b   :  { %4966 = vmatprep.mubr.msk.f32.mxu0 %vm1568_vm1, %v6402_v26 }
  0x9e   :  { %4967 = vmatmul.mubr.msk.f32.gmra.mxu0 %vm1568_vm1, %v6411_v28 }
  0x9f   :  { %4969 = vmatprep.mubr.msk.f32.mxu0 %vm1568_vm1, %v6416_v29 }
  0xa2   :  { %4970 = vmatmul.mubr.msk.f32.gmra.mxu0 %vm1568_vm1, %v6425_v30 }
  0xa3   :  { %4972 = vmatprep.mubr.msk.f32.mxu0 %vm1568_vm1, %v6430_v31 }
  0xa6   :  { %4973 = vmatmul.mubr.msk.f32.gmra.mxu0 %vm1568_vm1, %v6439_v32 }
  0xa7   :  { %4975 = vmatprep.mubr.msk.f32.mxu0 %vm1568_vm1, %v6444_v33 }
  0xaa   :  { %4976 = vmatmul.mubr.msk.f32.gmra.mxu0 %vm1568_vm1, %v6453_v34 }
  0xab   :  { %5018 = vmatprep.mubr.msk.f32.mxu0 %vm1568_vm1, %v6338_v8 }
  0xce   :  { %v6459_v35 = vpop.f32.mrf.mxu0 }
  0xd0   :  { %v6461_v36 = vpop.f32.mrf.mxu0 }
  0xd2   :  { %v6463_v37 = vpop.f32.mrf.mxu0 }
  0xd4   :  { %v6465_v38 = vpop.f32.mrf.mxu0 }
  0xd6   :  { %v6467_v39 = vpop.f32.mrf.mxu0 }
  0xd8   :  { %v6469_v40 = vpop.f32.mrf.mxu0 }
  0xda   :  { %v6471_v41 = vpop.f32.mrf.mxu0 }
  0xdc   :  { %v6473_v42 = vpop.f32.mrf.mxu0 }
  0xde   :  { %v6475_v43 = vpop.f32.mrf.mxu0 }
  0xe0   :  { %v6477_v44 = vpop.f32.mrf.mxu0 }
  0xe2   :  { %v6479_v45 = vpop.f32.mrf.mxu0 }
  0xe4   :  { %v6481_v46 = vpop.f32.mrf.mxu0 }
  0xe6   :  { %v6483_v47 = vpop.f32.mrf.mxu0 }
  0xe8   :  { %v6485_v48 = vpop.f32.mrf.mxu0 }
  0xea   :  { %v6487_v49 = vpop.f32.mrf.mxu0 }
  0xec   :  { %v6489_v50 = vpop.f32.mrf.mxu0 }
  0xee   :  { %v6491_v51 = vpop.f32.mrf.mxu0 }
  0xef   :  { %7912 = vst [vmem:[#allocation6_spill] sm:$0xff] %v6491_v51 }
  0xf0   :  { %v6493_v52 = vpop.f32.mrf.mxu0 }
  0xf1   :  { %7913 = vst [vmem:[#allocation7_spill] sm:$0xff] %v6493_v52 }
  0xf2   :  { %v6495_v53 = vpop.f32.mrf.mxu0 }
  0xf3   :  { %7914 = vst [vmem:[#allocation8_spill] sm:$0xff] %v6495_v53 }
  0xf4   :  { %v6497_v54 = vpop.f32.mrf.mxu0 }
  0xf5   :  { %7915 = vst [vmem:[#allocation9_spill] sm:$0xff] %v6497_v54 }
  0xf6   :  { %v6499_v55 = vpop.f32.mrf.mxu0 }
  0xf7   :  { %7916 = vst [vmem:[#allocation10_spill] sm:$0xff] %v6499_v55 }
  0xf8   :  { %v6501_v56 = vpop.f32.mrf.mxu0 }
  0xf9   :  { %7917 = vst [vmem:[#allocation11_spill] sm:$0xff] %v6501_v56 }
  0xfa   :  { %v6503_v57 = vpop.f32.mrf.mxu0 }
  0xfb   :  { %7918 = vst [vmem:[#allocation12_spill] sm:$0xff] %v6503_v57 }
  0xfc   :  { %v6505_v58 = vpop.f32.mrf.mxu0 }
  0xfd   :  { %7919 = vst [vmem:[#allocation13_spill] sm:$0xff] %v6505_v58 }
  0xfe   :  { %v6507_v59 = vpop.f32.mrf.mxu0 }
  0xff   :  { %7920 = vst [vmem:[#allocation14_spill] sm:$0xff] %v6507_v59 }
 0x100   :  { %v6509_v60 = vpop.f32.mrf.mxu0 }
 0x101   :  { %7921 = vst [vmem:[#allocation15_spill] sm:$0xff] %v6509_v60 }
 0x102   :  { %v6511_v61 = vpop.f32.mrf.mxu0 }
 0x103   :  { %7922 = vst [vmem:[#allocation16_spill] sm:$0xff] %v6511_v61 }
 0x104   :  { %v6513_v62 = vpop.f32.mrf.mxu0 }
 0x105   :  { %7923 = vst [vmem:[#allocation17_spill] sm:$0xff] %v6513_v62 }
 0x106   :  { %v6515_v63 = vpop.f32.mrf.mxu0 }
 0x107   :  { %7924 = vst [vmem:[#allocation18_spill] sm:$0xff] %v6515_v63 }
 0x108   :  { %v6517_v0 = vpop.f32.mrf.mxu0 }
 0x109   :  { %7925 = vst [vmem:[#allocation19_spill] sm:$0xff] %v6517_v0 }
 0x10a   :  { %v6519_v1 = vpop.f32.mrf.mxu0 }
 0x10b   :  { %7926 = vst [vmem:[#allocation20_spill] sm:$0xff] %v6519_v1 }
 0x10c   :  { %v6521_v2 = vpop.f32.mrf.mxu0 }
 0x10d   :  { %7927 = vst [vmem:[#allocation21_spill] sm:$0xff] %v6521_v2 }
 0x10e   :  { %v6523_v4 = vpop.f32.mrf.mxu0 }
 0x10f   :  { %7928 = vst [vmem:[#allocation22_spill] sm:$0xff] %v6523_v4 }
 0x110   :  { %v6525_v5 = vpop.f32.mrf.mxu0 }
 0x111   :  { %7929 = vst [vmem:[#allocation23_spill] sm:$0xff] %v6525_v5 }
 0x112   :  { %v6527_v6 = vpop.f32.mrf.mxu0 }
 0x113   :  { %7930 = vst [vmem:[#allocation24_spill] sm:$0xff] %v6527_v6 }
 0x114   :  { %v6529_v7 = vpop.f32.mrf.mxu0 }
 0x115   :  { %7931 = vst [vmem:[#allocation25_spill] sm:$0xff] %v6529_v7 }
 0x116   :  { %v6531_v9 = vpop.f32.mrf.mxu0 }
 0x117   :  { %7932 = vst [vmem:[#allocation26_spill] sm:$0xff] %v6531_v9 }
 0x118   :  { %v6533_v10 = vpop.f32.mrf.mxu0 }
 0x119   :  { %7933 = vst [vmem:[#allocation27_spill] sm:$0xff] %v6533_v10 }
 0x11a   :  { %v6535_v11 = vpop.f32.mrf.mxu0 }
 0x11b   :  { %7934 = vst [vmem:[#allocation28_spill] sm:$0xff] %v6535_v11 }
 0x11c   :  { %v6537_v12 = vpop.f32.mrf.mxu0 }
 0x11d   :  { %7935 = vst [vmem:[#allocation29_spill] sm:$0xff] %v6537_v12  ;;  %v6559_v12 = vpop.permute.xlu0 %79 }
 0x11e   :  { %v6539_v14 = vpop.f32.mrf.mxu0 }
 0x11f   :  { %7936 = vst [vmem:[#allocation30_spill] sm:$0xff] %v6539_v14 }
 0x120   :  { %v6541_v16 = vpop.f32.mrf.mxu0 }
 0x121   :  { %7937 = vst [vmem:[#allocation31_spill] sm:$0xff] %v6541_v16 }
 0x122   :  { %v6543_v19 = vpop.f32.mrf.mxu0 }
 0x123   :  { %7938 = vst [vmem:[#allocation32_spill] sm:$0xff] %v6543_v19 }
 0x124   :  { %v6545_v20 = vpop.f32.mrf.mxu0 }
 0x125   :  { %7939 = vst [vmem:[#allocation33_spill] sm:$0xff] %v6545_v20  ;;  %v6567_v20 = vpop.permute.xlu0 %99 }
 0x126   :  { %v6547_v21 = vpop.f32.mrf.mxu0  ;;  %7949 = vst [vmem:[#allocation43_spill] sm:$0xff] %v6567_v20 }
 0x127   :  { %7940 = vst [vmem:[#allocation34_spill] sm:$0xff] %v6547_v21 }
 0x128   :  { %v6549_v24 = vpop.f32.mrf.mxu0 }
 0x129   :  { %7941 = vst [vmem:[#allocation35_spill] sm:$0xff] %v6549_v24  ;;  %v6571_v24 = vpop.permute.xlu1 %74 }
 0x12a   :  { %v6551_v27 = vpop.f32.mrf.mxu0 }
 0x12b   :  { %7942 = vst [vmem:[#allocation36_spill] sm:$0xff] %v6551_v27 }
 0x12c   :  { %v6553_v3 = vpop.f32.mrf.mxu0 }
 0x12d   :  { %7943 = vst [vmem:[#allocation37_spill] sm:$0xff] %v6553_v3  ;;  %v6581_v9 = vpop.permute.xlu1 %94 }
 0x12e   :  { %v6555_v10 = vpop.f32.mrf.mxu0 }
 0x12f   :  { %7944 = vst [vmem:[#allocation38_spill] sm:$0xff] %v6555_v10  ;;  %v6577_v10 = vpop.permute.xlu0 %69 }
 0x130   :  { %v6557_v11 = vpop.f32.mrf.mxu0 }
 0x131   :  { %7945 = vst [vmem:[#allocation39_spill] sm:$0xff] %v6557_v11 }
 0x132   :  { %v6561_v14 = vpop.f32.mrf.mxu0 }
 0x133   :  { %7946 = vst [vmem:[#allocation40_spill] sm:$0xff] %v6561_v14 }
 0x134   :  { %v6563_v16 = vpop.f32.mrf.mxu0 }
 0x135   :  { %7947 = vst [vmem:[#allocation41_spill] sm:$0xff] %v6563_v16 }
 0x136   :  { %v6565_v19 = vpop.f32.mrf.mxu0 }
 0x137   :  { %7948 = vst [vmem:[#allocation42_spill] sm:$0xff] %v6565_v19  ;;  %v6587_v19 = vpop.permute.xlu0 %64 }
 0x138   :  { %v6569_v21 = vpop.f32.mrf.mxu0 }
 0x139   :  { %7950 = vst [vmem:[#allocation44_spill] sm:$0xff] %v6569_v21  ;;  %v6591_v21 = vpop.permute.xlu1 %89 }
 0x13a   :  { %v6573_v27 = vpop.f32.mrf.mxu0 }
 0x13b   :  { %7951 = vst [vmem:[#allocation45_spill] sm:$0xff] %v6573_v27 }
 0x13c   :  { %v6575_v3 = vpop.f32.mrf.mxu0 }
 0x13d   :  { %7952 = vst [vmem:[#allocation46_spill] sm:$0xff] %v6575_v3  ;;  %v6597_v3 = vpop.permute.xlu0 %119 }
 0x13e   :  { %v6579_v11 = vpop.f32.mrf.mxu0 }
 0x13f   :  { %7953 = vst [vmem:[#allocation47_spill] sm:$0xff] %v6579_v11  ;;  %v6601_v11 = vpop.permute.xlu1 %84 }
 0x140   :  { %v6583_v14 = vpop.f32.mrf.mxu0 }
 0x141   :  { %7954 = vst [vmem:[#allocation48_spill] sm:$0xff] %v6583_v14  ;;  %v6609_v1 = vpop.permute.xlu0 %114 }
 0x142   :  { %v6585_v16 = vpop.f32.mrf.mxu0 }
 0x143   :  { %7955 = vst [vmem:[#allocation49_spill] sm:$0xff] %v6585_v16  ;;  %v263_v16 = vadd.f32 %v6459_v35, %v6577_v10  ;;  %v6613_v63 = vpop.permute.xlu1 %139 }
 0x144   :  { %v6589_v7 = vpop.f32.mrf.mxu0  ;;  %7961 = vst [vmem:[#allocation55_spill] sm:$0xff] %v6613_v63 }
 0x145   :  { %7956 = vst [vmem:[#allocation50_spill] sm:$0xff] %v6589_v7  ;;  %v258_v7 = vadd.f32 %v6461_v36, %v6587_v19  ;;  %v283_v36 = vadd.f32 %v6467_v39, %v6591_v21  ;;  %v6619_v59 = vpop.permute.xlu0 %109 }
 0x146   :  { %v6593_v6 = vpop.f32.mrf.mxu0 }
 0x147   :  { %7957 = vst [vmem:[#allocation51_spill] sm:$0xff] %v6593_v6 }
 0x148   :  { %v6595_v27 = vpop.f32.mrf.mxu0 }
 0x149   :  { %7958 = vst [vmem:[#allocation52_spill] sm:$0xff] %v6595_v27  ;;  %v273_v27 = vadd.f32 %v6463_v37, %v6559_v12 }
 0x14a   :  { %v6599_v5 = vpop.f32.mrf.mxu0 }
 0x14b   :  { %7959 = vst [vmem:[#allocation53_spill] sm:$0xff] %v6599_v5 }
 0x14c   :  { %v6603_v4 = vpop.f32.mrf.mxu0 }
 0x14d   :  { %7960 = vst [vmem:[#allocation54_spill] sm:$0xff] %v6603_v4  ;;  %v268_v4 = vadd.f32 %v6465_v38, %v6571_v24  ;;  %v6623_v38 = vpop.permute.xlu1 %134 }
 0x14e   :  { %v4956_v14 = vpop.f32.mrf.mxu0  ;;  %7962 = vst [vmem:[#allocation56_spill] sm:$0xff] %v6623_v38  ;;  %v328_v58 = vadd.f32 %v6489_v50, %v6623_v38 }
 0x14f   :  { %v1763_v2 = vadd.f32 %v4956_v14, %v263_v16 }
 0x150   :  { %v1683_v6 = vpop.f32.mrf.mxu0 }
 0x151   :  { %v4120_v0 = vmul.f32 -1.442695, %v1763_v2  ;;  %v1762_v5 = vadd.f32 %v1683_v6, %v258_v7  ;;  %v278_v2 = vadd.f32 %v6469_v40, %v6601_v11 }
 0x152   :  { %v4959_v62 = vpop.f32.mrf.mxu0 }
 0x153   :  { %5207 = vpow2.f32 %v4120_v0  ;;  %v4119_v35 = vmul.f32 -1.442695, %v1762_v5  ;;  %v1765_v61 = vadd.f32 %v4959_v62, %v273_v27  ;;  %v293_v62 = vadd.f32 %v6471_v41, %v6567_v20 }
 0x154   :  { %v1693_v60 = vpop.f32.mrf.mxu0 }
 0x155   :  { %5209 = vpow2.f32 %v4119_v35  ;;  %v4122_v14 = vmul.f32 -1.442695, %v1765_v61  ;;  %v1764_v16 = vadd.f32 %v1693_v60, %v268_v4  ;;  %v6627_v60 = vpop.f32.mrf.mxu1  ;;  %v288_v4 = vadd.f32 %v6473_v42, %v6581_v9  ;;  %v6631_v35 = vpop.permute.xlu0 %104 }
 0x156   :  { %v4962_v37 = vpop.f32.mrf.mxu0  ;;  %v298_v42 = vadd.f32 %v6477_v44, %v6631_v35 }
 0x157   :  { %5211 = vpow2.f32 %v4122_v14  ;;  %v4121_v6 = vmul.f32 -1.442695, %v1764_v16  ;;  %v1767_v7 = vadd.f32 %v4962_v37, %v283_v36  ;;  %v303_v14 = vadd.f32 %v6475_v43, %v6619_v59  ;;  %v6635_v37 = vpop.permute.xlu1 %129 }
 0x158   :  { %v1703_v0 = vpop.f32.mrf.mxu0 }
 0x159   :  { %5213 = vpow2.f32 %v4121_v6  ;;  %v4124_v39 = vmul.f32 -1.442695, %v1767_v7  ;;  %v1766_v5 = vadd.f32 %v1703_v0, %v278_v2  ;;  %v6637_v6 = vpop.f32.mrf.mxu1 }
 0x15a   :  { %v4965_v61 = vpop.f32.mrf.mxu0 }
 0x15b   :  { %5215 = vpow2.f32 %v4124_v39  ;;  %v4123_v40 = vmul.f32 -1.442695, %v1766_v5  ;;  %v1769_v27 = vadd.f32 %v4965_v61, %v293_v62  ;;  %v313_v5 = vadd.f32 %v6479_v45, %v6597_v3 }
 0x15c   :  { %v1713_v36 = vpop.f32.mrf.mxu0  ;;  %v323_v45 = vadd.f32 %v6483_v47, %v6635_v37 }
 0x15d   :  { %5217 = vpow2.f32 %v4123_v40  ;;  %v4126_v41 = vmul.f32 -1.442695, %v1769_v27  ;;  %v1768_v16 = vadd.f32 %v1713_v36, %v288_v4  ;;  %v6643_v27 = vpop.f32.mrf.mxu1  ;;  %v308_v36 = vadd.f32 %v6481_v46, %v6609_v1 }
 0x15e   :  { %v4968_v2 = vpop.f32.mrf.mxu0 }
 0x15f   :  { %5219 = vpow2.f32 %v4126_v41  ;;  %v4125_v7 = vmul.f32 -1.442695, %v1768_v16  ;;  %v1771_v0 = vadd.f32 %v4968_v2, %v303_v14  ;;  %v6647_v14 = vpop.permute.xlu1 %124 }
 0x160   :  { %v5208_v62 = vpop.eup %5207  ;;  %v1723_v39 = vpop.f32.mrf.mxu0  ;;  %v318_v46 = vadd.f32 %v6485_v48, %v6647_v14 }
 0x161   :  { %v1791_v43 = vadd.f32 1.0, %v5208_v62  ;;  %5221 = vpow2.f32 %v4125_v7  ;;  %v1770_v61 = vadd.f32 %v1723_v39, %v298_v42  ;;  %v6651_v39 = vpop.f32.mrf.mxu1 }
 0x162   :  { %v5210_v4 = vpop.eup %5209  ;;  %5223 = vtanh.f32 %v1771_v0  ;;  %v4971_v40 = vpop.f32.mrf.mxu0 }
 0x163   :  { %5225 = vrcp.f32 %v1791_v43  ;;  %v1773_v44 = vadd.f32 %v4971_v40, %v313_v5  ;;  %v1790_v16 = vadd.f32 1.0, %v5210_v4  ;;  %v333_v4 = vadd.f32 %v6487_v49, %v6613_v63 }
 0x164   :  { %v5212_v41 = vpop.eup %5211  ;;  %v1733_v2 = vpop.f32.mrf.mxu0  ;;  %5227 = vtanh.f32 %v1770_v61 }
 0x165   :  { %v1793_v7 = vadd.f32 1.0, %v5212_v41  ;;  %v1772_v42 = vadd.f32 %v1733_v2, %v308_v36  ;;  %5229 = vtanh.f32 %v1773_v44  ;;  %v1876_v2 = vlaneseq }
 0x166   :  { %v5214_v0 = vpop.eup %5213  ;;  %v4974_v62 = vpop.f32.mrf.mxu0 }
 0x167   :  { %5231 = vrcp.f32 %v1793_v7  ;;  %v1792_v5 = vadd.f32 1.0, %v5214_v0  ;;  %v1775_v43 = vadd.f32 %v4974_v62, %v323_v45  ;;  %v6659_v7 = vpop.f32.mrf.mxu1 }
 0x168   :  { %v5216_v40 = vpop.eup %5215  ;;  %5233 = vrcp.f32 %v1790_v16  ;;  %v1743_v47 = vpop.f32.mrf.mxu0 }
 0x169   :  { %v1815_v41 = vadd.f32 1.0, %v5216_v40  ;;  %5235 = vtanh.f32 %v1772_v42  ;;  %v4128_v61 = vmul.f32 -1.442695, %v1775_v43  ;;  %v1774_v36 = vadd.f32 %v1743_v47, %v318_v46  ;;  %v6664_v42 = vld [vmem:[%s7893_s1] sm:$0x1] }
 0x16a   :  { %v5218_v44 = vpop.eup %5217  ;;  %5237 = vrcp.f32 %v1792_v5  ;;  %v4977_v48 = vpop.f32.mrf.mxu0  ;;  %7963 = vst [vmem:[#allocation57_spill] sm:$0xff] %v6664_v42  ;;  %v1877_v40 = vshrl.u32 %v1876_v2, 7  ;;  %vm1874_vm2 = vcmp.gt.s32.totalorder %v6664_v42, 0 }
 0x16b   :  { %5239 = vrcp.f32 %v1815_v41  ;;  %v1814_v45 = vadd.f32 1.0, %v5218_v44  ;;  %v4127_v0 = vmul.f32 -1.442695, %v1774_v36  ;;  %v1777_v62 = vadd.f32 %v4977_v48, %v333_v4  ;;  %v6666_v41 = vpop.f32.mrf.mxu1 }
 0x16c   :  { %v5220_v49 = vpop.eup %5219  ;;  %5241 = vpow2.f32 %v4128_v61  ;;  %v1753_v16 = vpop.f32.mrf.mxu0 }
 0x16d   :  { %5243 = vrcp.f32 %v1814_v45  ;;  %v1817_v46 = vadd.f32 1.0, %v5220_v49  ;;  %v4130_v43 = vmul.f32 -1.442695, %v1777_v62  ;;  %v1776_v50 = vadd.f32 %v1753_v16, %v328_v58 }
 0x16e   :  { %v5222_v5 = vpop.eup %5221  ;;  %5245 = vpow2.f32 %v4127_v0  ;;  %v6669_v45 = vsub.s32 0, %v1877_v40  ;;  %v7965_v62 = vmov 0   ;;  %v6672_v0 = vpop.f32.mrf.mxu1 }
 0x16f   :  { %v5224_v47 = vpop.eup %5223  ;;  %5247 = vrcp.f32 %v1817_v46  ;;  %v1816_v4 = vadd.f32 1.0, %v5222_v5  ;;  %v4129_v36 = vmul.f32 -1.442695, %v1776_v50  ;;  %v1875_v2 = vsel %vm1874_vm2, 1, %v7965_v62 }
 0x170   :  { %v5226_v61 = vpop.eup %5225  ;;  %5249 = vpow2.f32 %v4130_v43  ;;  %7964 = vst [vmem:[#allocation58_spill] sm:$0xff] %v6669_v45  ;;  %v1879_v50 = vrot.slane %v1875_v2, %v6669_v45  ;;  %v6675_v56 = vpop.f32.mrf.mxu1 }
 0x171   :  { %5251 = vrcp.f32 %v1816_v4  ;;  %v1859_v44 = vmul.f32 %v5226_v61, %v5224_v47  ;;  %v5228_v48 = vpop.eup %5227 }
 0x172   :  { %5253 = vpow2.f32 %v4129_v36  ;;  %v5230_v58 = vpop.eup %5229  ;;  %vm6677_vm3 = vcmp.eq.s32.totalorder %v1879_v50, 1  ;;  %v6681_v54 = vpop.f32.mrf.mxu1  ;;  %v6991_v36 = vld [vmem:[%s7896_s4 + $0x8] sm:$0xff] }
 0x174   :  { %v5232_v49 = vpop.eup %5231  ;;  %v6687_v63 = vpop.f32.mrf.mxu1 }
 0x175   :  { %v5234_v16 = vpop.eup %5233  ;;  %v1861_v46 = vmul.f32 %v5232_v49, %v5230_v58 }
 0x176   :  { %v5236_v5 = vpop.eup %5235  ;;  %v1858_v49 = vmul.f32 %v5234_v16, %v5228_v48 }
 0x177   :  { %v5238_v57 = vpop.eup %5237 }
 0x178   :  { %v5240_v43 = vpop.eup %5239  ;;  %v1860_v42 = vmul.f32 %v5238_v57, %v5236_v5 }
 0x179   :  { %v5242_v47 = vpop.eup %5241  ;;  %v1855_v4 = vmul.f32 0.0, %v5240_v43 }
 0x17a   :  { %v5244_v40 = vpop.eup %5243  ;;  %v1843_v61 = vadd.f32 1.0, %v5242_v47 }
 0x17b   :  { %v5246_v55 = vpop.eup %5245  ;;  %v1854_v53 = vmul.f32 0.0, %v5244_v40  ;;  %v1863_v58 = vadd.f32 %v1859_v44, %v1855_v4 }
 0x17c   :  { %v5248_v52 = vpop.eup %5247  ;;  %5255 = vrcp.f32 %v1843_v61  ;;  %v1842_v2 = vadd.f32 1.0, %v5246_v55 }
 0x17d   :  { %v5250_v51 = vpop.eup %5249  ;;  %v1857_v45 = vmul.f32 0.0, %v5248_v52  ;;  %5257 = vtanh.f32 %v1863_v58  ;;  %v6685_v43 = vsel %vm6677_vm3, %v1863_v58, 0.0  ;;  %v1862_v50 = vadd.f32 %v1858_v49, %v1854_v53 }
 0x17e   :  { %v5252_v62 = vpop.eup %5251  ;;  %5259 = vrcp.f32 %v1842_v2  ;;  %v1845_v47 = vadd.f32 1.0, %v5250_v51  ;;  %v6697_v51 = vpop.f32.mrf.mxu1 }
 0x17f   :  { %v5254_v38 = vpop.eup %5253  ;;  %v1856_v44 = vmul.f32 0.0, %v5252_v62  ;;  %5261 = vtanh.f32 %v1862_v50  ;;  %v6691_v55 = vsel %vm6677_vm3, %v1862_v50, 0.0  ;;  %v1865_v52 = vadd.f32 %v1861_v46, %v1857_v45 }
 0x180   :  { %5263 = vrcp.f32 %v1845_v47  ;;  %v1844_v48 = vadd.f32 1.0, %v5254_v38  ;;  %v6703_v16 = vpop.f32.mrf.mxu1 }
 0x181   :  { %5265 = vtanh.f32 %v1865_v52  ;;  %v6695_v53 = vsel %vm6677_vm3, %v1865_v52, 0.0  ;;  %v1864_v57 = vadd.f32 %v1860_v42, %v1856_v44 }
 0x182   :  { %5267 = vrcp.f32 %v1844_v48  ;;  %v6705_v38 = vpop.f32.mrf.mxu1 }
 0x183   :  { %5269 = vtanh.f32 %v1864_v57  ;;  %v6701_v62 = vsel %vm6677_vm3, %v1864_v57, 0.0 }
 0x184   :  { %v6714_v50 = vpop.f32.mrf.mxu1 }
 0x189   :  { %v5256_v5 = vpop.eup %5255 }
 0x18a   :  { %v5258_v45 = vpop.eup %5257 }
 0x18b   :  { %v5260_v46 = vpop.eup %5259  ;;  %v6707_v4 = vmul.f32 %v5258_v45, %v5256_v5  ;;  %v6732_v5 = vpop.f32.mrf.mxu1 }
 0x18c   :  { %v5262_v40 = vpop.eup %5261 }
 0x18d   :  { %v5264_v61 = vpop.eup %5263  ;;  %v6709_v42 = vmul.f32 %v5262_v40, %v5260_v46  ;;  %v6749_v46 = vpop.f32.mrf.mxu1 }
 0x18e   :  { %v5266_v49 = vpop.eup %5265 }
 0x18f   :  { %v5268_v2 = vpop.eup %5267  ;;  %v6716_v47 = vmul.f32 %v5266_v49, %v5264_v61  ;;  %v6761_v40 = vpop.f32.mrf.mxu1 }
 0x190   :  { %v5270_v52 = vpop.eup %5269 }
 0x191   :  { %4978 = vmatprep.subr.msk.mxu1 %vm6677_vm3, %v6716_v47  ;;  %v6724_v48 = vmul.f32 %v5270_v52, %v5268_v2  ;;  %v6767_v61 = vpop.f32.mrf.mxu1 }
 0x192   :  { %4979 = vmatpush3.msk.msra.mxu1 %vm6677_vm3, %v6716_v47 }
 0x193   :  { %4980 = vmatprep.subr.msk.mxu1 %vm6677_vm3, %v6724_v48 }
 0x194   :  { %4981 = vmatpush3.msk.msra.mxu1 %vm6677_vm3, %v6724_v48 }
 0x195   :  { %4982 = vmatprep.subr.msk.mxu1 %vm6677_vm3, %v6707_v4 }
 0x196   :  { %4983 = vmatpush3.msk.msra.mxu1 %vm6677_vm3, %v6707_v4 }
 0x197   :  { %4984 = vmatprep.subr.msk.mxu1 %vm6677_vm3, %v6709_v42 }
 0x198   :  { %4985 = vmatpush3.msk.msra.mxu1 %vm6677_vm3, %v6709_v42 }
 0x199   :  { %4987 = vmatmul.mubr.msk.f32.vlgmr.msra.gmra.mxu1 %vm1568_vm1, %v6351_v13  ;;  %v6773_v13 = vpop.f32.mrf.mxu1 }
 0x19a   :  { %4989 = vmatprep.mubr.msk.f32.mxu1 %vm1568_vm1, %v6356_v15  ;;  %7968 = vst [vmem:[#allocation59_spill] sm:$0xff] %v6773_v13  ;;  %v8030_v13 = vld [vmem:[#allocation11_spill] sm:$0xff] }
 0x19b   :  { %v6779_v15 = vpop.f32.mrf.mxu1 }
 0x19c   :  { %7969 = vst [vmem:[#allocation60_spill] sm:$0xff] %v6779_v15 }
 0x19d   :  { %4990 = vmatmul.mubr.msk.f32.gmra.mxu1 %vm1568_vm1, %v6369_v17  ;;  %v6785_v17 = vpop.f32.mrf.mxu1 }
 0x19e   :  { %4992 = vmatprep.mubr.msk.f32.mxu1 %vm1568_vm1, %v6374_v18  ;;  %7970 = vst [vmem:[#allocation61_spill] sm:$0xff] %v6785_v17 }
 0x19f   :  { %v6791_v18 = vpop.f32.mrf.mxu1 }
 0x1a0   :  { %7971 = vst [vmem:[#allocation62_spill] sm:$0xff] %v6791_v18 }
 0x1a1   :  { %4993 = vmatmul.mubr.msk.f32.gmra.mxu1 %vm1568_vm1, %v6383_v22  ;;  %v6797_v22 = vpop.f32.mrf.mxu1 }
 0x1a2   :  { %4995 = vmatprep.mubr.msk.f32.mxu1 %vm1568_vm1, %v6388_v23  ;;  %7972 = vst [vmem:[#allocation63_spill] sm:$0xff] %v6797_v22 }
 0x1a3   :  { %v6803_v23 = vpop.f32.mrf.mxu1 }
 0x1a4   :  { %7973 = vst [vmem:[#allocation64_spill] sm:$0xff] %v6803_v23 }
 0x1a5   :  { %4996 = vmatmul.mubr.msk.f32.gmra.mxu1 %vm1568_vm1, %v6397_v25  ;;  %v6805_v25 = vpop.f32.mrf.mxu1 }
 0x1a6   :  { %4998 = vmatprep.mubr.msk.f32.mxu1 %vm1568_vm1, %v6402_v26  ;;  %7974 = vst [vmem:[#allocation65_spill] sm:$0xff] %v6805_v25  ;;  %v8028_v25 = vld [vmem:[#allocation9_spill] sm:$0xff] }
 0x1a7   :  { %v6807_v26 = vpop.f32.mrf.mxu1  ;;  %v605_v23 = vadd.f32 %v8028_v25, %v6571_v24  ;;  %v8031_v25 = vld [vmem:[#allocation12_spill] sm:$0xff] }
 0x1a8   :  { %7975 = vst [vmem:[#allocation66_spill] sm:$0xff] %v6807_v26 }
 0x1a9   :  { %4999 = vmatmul.mubr.msk.f32.gmra.mxu1 %vm1568_vm1, %v6411_v28  ;;  %v6809_v28 = vpop.f32.mrf.mxu1 }
 0x1aa   :  { %5001 = vmatprep.mubr.msk.f32.mxu1 %vm1568_vm1, %v6416_v29  ;;  %7976 = vst [vmem:[#allocation67_spill] sm:$0xff] %v6809_v28 }
 0x1ab   :  { %v6811_v29 = vpop.f32.mrf.mxu1 }
 0x1ac   :  { %7977 = vst [vmem:[#allocation68_spill] sm:$0xff] %v6811_v29 }
 0x1ad   :  { %5002 = vmatmul.mubr.msk.f32.gmra.mxu1 %vm1568_vm1, %v6425_v30  ;;  %v6813_v30 = vpop.f32.mrf.mxu1 }
 0x1ae   :  { %5004 = vmatprep.mubr.msk.f32.mxu1 %vm1568_vm1, %v6430_v31  ;;  %7978 = vst [vmem:[#allocation69_spill] sm:$0xff] %v6813_v30 }
 0x1af   :  { %v6815_v31 = vpop.f32.mrf.mxu1 }
 0x1b0   :  { %7979 = vst [vmem:[#allocation70_spill] sm:$0xff] %v6815_v31 }
 0x1b1   :  { %5005 = vmatmul.mubr.msk.f32.gmra.mxu1 %vm1568_vm1, %v6439_v32  ;;  %v6817_v32 = vpop.f32.mrf.mxu1 }
 0x1b2   :  { %5007 = vmatprep.mubr.msk.f32.mxu1 %vm1568_vm1, %v6444_v33  ;;  %7980 = vst [vmem:[#allocation71_spill] sm:$0xff] %v6817_v32 }
 0x1b3   :  { %v6819_v33 = vpop.f32.mrf.mxu1 }
 0x1b4   :  { %7981 = vst [vmem:[#allocation72_spill] sm:$0xff] %v6819_v33 }
 0x1b5   :  { %5008 = vmatmul.mubr.msk.f32.gmra.mxu1 %vm1568_vm1, %v6453_v34  ;;  %v6821_v34 = vpop.f32.mrf.mxu1 }
 0x1b6   :  { %5050 = vmatprep.mubr.msk.f32.mxu1 %vm1568_vm1, %v6338_v8  ;;  %7982 = vst [vmem:[#allocation73_spill] sm:$0xff] %v6821_v34 }
 0x1b7   :  { %v6823_v8 = vpop.f32.mrf.mxu1 }
 0x1b8   :  { %7983 = vst [vmem:[#allocation74_spill] sm:$0xff] %v6823_v8 }
 0x1b9   :  { %v6825_v49 = vpop.f32.mrf.mxu1 }
 0x1ba   :  { %7984 = vst [vmem:[#allocation75_spill] sm:$0xff] %v6825_v49 }
 0x1bb   :  { %v6827_v2 = vpop.f32.mrf.mxu1 }
 0x1bc   :  { %7985 = vst [vmem:[#allocation76_spill] sm:$0xff] %v6827_v2 }
 0x1bd   :  { %v6829_v52 = vpop.f32.mrf.mxu1 }
 0x1be   :  { %7986 = vst [vmem:[#allocation77_spill] sm:$0xff] %v6829_v52 }
 0x1bf   :  { %v6831_v45 = vpop.f32.mrf.mxu1 }
 0x1c0   :  { %7987 = vst [vmem:[#allocation78_spill] sm:$0xff] %v6831_v45 }
 0x1c1   :  { %v6833_v57 = vpop.f32.mrf.mxu1 }
 0x1c2   :  { %7988 = vst [vmem:[#allocation79_spill] sm:$0xff] %v6833_v57 }
 0x1c3   :  { %v6835_v44 = vpop.f32.mrf.mxu1 }
 0x1c4   :  { %7989 = vst [vmem:[#allocation80_spill] sm:$0xff] %v6835_v44 }
 0x1c5   :  { %v6837_v58 = vpop.f32.mrf.mxu1 }
 0x1c6   :  { %7990 = vst [vmem:[#allocation81_spill] sm:$0xff] %v6837_v58 }
 0x1c7   :  { %v6839_v32 = vpop.f32.mrf.mxu1 }
 0x1c8   :  { %7991 = vst [vmem:[#allocation82_spill] sm:$0xff] %v6839_v32 }
 0x1c9   :  { %v6841_v33 = vpop.f32.mrf.mxu1 }
 0x1ca   :  { %7992 = vst [vmem:[#allocation83_spill] sm:$0xff] %v6841_v33 }
 0x1cb   :  { %v6843_v34 = vpop.f32.mrf.mxu1 }
 0x1cc   :  { %7993 = vst [vmem:[#allocation84_spill] sm:$0xff] %v6843_v34 }
 0x1cd   :  { %v6845_v8 = vpop.f32.mrf.mxu1 }
 0x1ce   :  { %7994 = vst [vmem:[#allocation85_spill] sm:$0xff] %v6845_v8 }
 0x1cf   :  { %v6847_v49 = vpop.f32.mrf.mxu1 }
 0x1d0   :  { %7995 = vst [vmem:[#allocation86_spill] sm:$0xff] %v6847_v49 }
 0x1d1   :  { %v6849_v2 = vpop.f32.mrf.mxu1 }
 0x1d2   :  { %7996 = vst [vmem:[#allocation87_spill] sm:$0xff] %v6849_v2 }
 0x1d3   :  { %v6851_v52 = vpop.f32.mrf.mxu1 }
 0x1d4   :  { %7997 = vst [vmem:[#allocation88_spill] sm:$0xff] %v6851_v52 }
 0x1d5   :  { %v6853_v45 = vpop.f32.mrf.mxu1 }
 0x1d6   :  { %7998 = vst [vmem:[#allocation89_spill] sm:$0xff] %v6853_v45 }
 0x1d7   :  { %v6855_v57 = vpop.f32.mrf.mxu1 }
 0x1d8   :  { %7999 = vst [vmem:[#allocation90_spill] sm:$0xff] %v6855_v57 }
 0x1d9   :  { %v6857_v44 = vpop.f32.mrf.mxu1 }
 0x1da   :  { %8000 = vst [vmem:[#allocation91_spill] sm:$0xff] %v6857_v44 }
 0x1db   :  { %v6859_v58 = vpop.f32.mrf.mxu1 }
 0x1dc   :  { %8001 = vst [vmem:[#allocation92_spill] sm:$0xff] %v6859_v58 }
 0x1dd   :  { %v6861_v32 = vpop.f32.mrf.mxu1 }
 0x1de   :  { %8002 = vst [vmem:[#allocation93_spill] sm:$0xff] %v6861_v32 }
 0x1df   :  { %v6863_v33 = vpop.f32.mrf.mxu1 }
 0x1e0   :  { %8003 = vst [vmem:[#allocation94_spill] sm:$0xff] %v6863_v33 }
 0x1e1   :  { %v6865_v34 = vpop.f32.mrf.mxu1 }
 0x1e2   :  { %8004 = vst [vmem:[#allocation95_spill] sm:$0xff] %v6865_v34  ;;  %v431_v34 = vadd.f32 %v6627_v60, %v6577_v10  ;;  %v451_v60 = vadd.f32 %v6659_v7, %v6591_v21  ;;  %v456_v7 = vadd.f32 %v6675_v56, %v6581_v9  ;;  %v481_v56 = vadd.f32 %v6697_v51, %v6597_v3 }
 0x1e3   :  { %v6867_v8 = vpop.f32.mrf.mxu1 }
 0x1e4   :  { %8005 = vst [vmem:[#allocation96_spill] sm:$0xff] %v6867_v8 }
 0x1e5   :  { %v6869_v49 = vpop.f32.mrf.mxu1 }
 0x1e6   :  { %8006 = vst [vmem:[#allocation97_spill] sm:$0xff] %v6869_v49  ;;  %v426_v49 = vadd.f32 %v6637_v6, %v6587_v19 }
 0x1e7   :  { %v6871_v2 = vpop.f32.mrf.mxu1 }
 0x1e8   :  { %8007 = vst [vmem:[#allocation98_spill] sm:$0xff] %v6871_v2 }
 0x1e9   :  { %v6873_v52 = vpop.f32.mrf.mxu1 }
 0x1ea   :  { %8008 = vst [vmem:[#allocation99_spill] sm:$0xff] %v6873_v52 }
 0x1eb   :  { %v6875_v45 = vpop.f32.mrf.mxu1 }
 0x1ec   :  { %8009 = vst [vmem:[#allocation100_spill] sm:$0xff] %v6875_v45  ;;  %v441_v45 = vadd.f32 %v6643_v27, %v6559_v12  ;;  %v446_v27 = vadd.f32 %v6666_v41, %v6601_v11  ;;  %v471_v41 = vadd.f32 %v6681_v54, %v6619_v59 }
 0x1ed   :  { %v6877_v57 = vpop.f32.mrf.mxu1 }
 0x1ee   :  { %8010 = vst [vmem:[#allocation101_spill] sm:$0xff] %v6877_v57 }
 0x1ef   :  { %v6879_v44 = vpop.f32.mrf.mxu1 }
 0x1f0   :  { %8011 = vst [vmem:[#allocation102_spill] sm:$0xff] %v6879_v44 }
 0x1f1   :  { %v6881_v58 = vpop.f32.mrf.mxu1 }
 0x1f2   :  { %8012 = vst [vmem:[#allocation103_spill] sm:$0xff] %v6881_v58  ;;  %v436_v58 = vadd.f32 %v6651_v39, %v6571_v24  ;;  %v461_v39 = vadd.f32 %v6672_v0, %v6567_v20  ;;  %v466_v0 = vadd.f32 %v6687_v63, %v6631_v35 }
 0x1f3   :  { %v6883_v32 = vpop.f32.mrf.mxu1 }
 0x1f4   :  { %8013 = vst [vmem:[#allocation104_spill] sm:$0xff] %v6883_v32 }
 0x259   :  { %v4988_v8 = vpop.f32.mrf.mxu1 }
 0x25a   :  { %v2051_v2 = vadd.f32 %v4988_v8, %v431_v34 }
 0x25b   :  { %v1971_v33 = vpop.f32.mrf.mxu1 }
 0x25c   :  { %v4152_v52 = vmul.f32 -1.442695, %v2051_v2  ;;  %v2050_v57 = vadd.f32 %v1971_v33, %v426_v49 }
 0x25d   :  { %v4991_v31 = vpop.f32.mrf.mxu1 }
 0x25e   :  { %5271 = vpow2.f32 %v4152_v52  ;;  %v4151_v32 = vmul.f32 -1.442695, %v2050_v57  ;;  %v2053_v44 = vadd.f32 %v4991_v31, %v441_v45 }
 0x25f   :  { %v1981_v30 = vpop.f32.mrf.mxu1 }
 0x260   :  { %5273 = vpow2.f32 %v4151_v32  ;;  %v4154_v6 = vmul.f32 -1.442695, %v2053_v44  ;;  %v2052_v34 = vadd.f32 %v1981_v30, %v436_v58 }
 0x261   :  { %v4994_v8 = vpop.f32.mrf.mxu1 }
 0x262   :  { %5275 = vpow2.f32 %v4154_v6  ;;  %v4153_v33 = vmul.f32 -1.442695, %v2052_v34  ;;  %v2055_v49 = vadd.f32 %v4994_v8, %v451_v60 }
 0x263   :  { %v1991_v2 = vpop.f32.mrf.mxu1 }
 0x264   :  { %5277 = vpow2.f32 %v4153_v33  ;;  %v4156_v57 = vmul.f32 -1.442695, %v2055_v49  ;;  %v2054_v45 = vadd.f32 %v1991_v2, %v446_v27 }
 0x265   :  { %v4997_v31 = vpop.f32.mrf.mxu1 }
 0x266   :  { %5279 = vpow2.f32 %v4156_v57  ;;  %v4155_v58 = vmul.f32 -1.442695, %v2054_v45  ;;  %v2057_v44 = vadd.f32 %v4997_v31, %v461_v39  ;;  %v476_v39 = vadd.f32 %v6703_v16, %v6609_v1 }
 0x267   :  { %v2001_v30 = vpop.f32.mrf.mxu1 }
 0x268   :  { %5281 = vpow2.f32 %v4155_v58  ;;  %v4158_v32 = vmul.f32 -1.442695, %v2057_v44  ;;  %v2056_v52 = vadd.f32 %v2001_v30, %v456_v7  ;;  %v491_v7 = vadd.f32 %v6705_v38, %v6635_v37 }
 0x269   :  { %v5000_v60 = vpop.f32.mrf.mxu1 }
 0x26a   :  { %5283 = vpow2.f32 %v4158_v32  ;;  %v4157_v6 = vmul.f32 -1.442695, %v2056_v52  ;;  %v2059_v34 = vadd.f32 %v5000_v60, %v471_v41  ;;  %v486_v41 = vadd.f32 %v6714_v50, %v6647_v14  ;;  %v8014_v60 = vld [vmem:[#allocation55_spill] sm:$0xff] }
 0x26b   :  { %v5272_v8 = vpop.eup %5271  ;;  %v2011_v27 = vpop.f32.mrf.mxu1 }
 0x26c   :  { %v2079_v33 = vadd.f32 1.0, %v5272_v8  ;;  %5285 = vpow2.f32 %v4157_v6  ;;  %v2058_v49 = vadd.f32 %v2011_v27, %v466_v0  ;;  %v501_v0 = vadd.f32 %v6732_v5, %v8014_v60 }
 0x26d   :  { %v5274_v2 = vpop.eup %5273  ;;  %5287 = vtanh.f32 %v2059_v34  ;;  %v5003_v54 = vpop.f32.mrf.mxu1 }
 0x26e   :  { %5289 = vrcp.f32 %v2079_v33  ;;  %v2061_v57 = vadd.f32 %v5003_v54, %v481_v56  ;;  %v2078_v45 = vadd.f32 1.0, %v5274_v2  ;;  %v8015_v56 = vld [vmem:[#allocation56_spill] sm:$0xff] }
 0x26f   :  { %v5276_v63 = vpop.eup %5275  ;;  %v2021_v31 = vpop.f32.mrf.mxu1  ;;  %5291 = vtanh.f32 %v2058_v49  ;;  %v496_v33 = vadd.f32 %v6749_v46, %v8015_v56 }
 0x270   :  { %v2081_v58 = vadd.f32 1.0, %v5276_v63  ;;  %v2060_v51 = vadd.f32 %v2021_v31, %v476_v39  ;;  %5293 = vtanh.f32 %v2061_v57 }
 0x271   :  { %v5278_v44 = vpop.eup %5277  ;;  %v5006_v30 = vpop.f32.mrf.mxu1 }
 0x272   :  { %5295 = vrcp.f32 %v2081_v58  ;;  %v2080_v32 = vadd.f32 1.0, %v5278_v44  ;;  %v2063_v16 = vadd.f32 %v5006_v30, %v491_v7  ;;  %v8016_v44 = vld [vmem:[#allocation57_spill] sm:$0xff] }
 0x273   :  { %v5280_v52 = vpop.eup %5279  ;;  %5297 = vrcp.f32 %v2078_v45  ;;  %v2031_v6 = vpop.f32.mrf.mxu1  ;;  %vm2162_vm4 = vcmp.gt.s32.totalorder %v8016_v44, 1  ;;  %vm2450_vm6 = vcmp.gt.s32.totalorder %v8016_v44, 2 }
 0x274   :  { %v2103_v34 = vadd.f32 1.0, %v5280_v52  ;;  %5299 = vtanh.f32 %v2060_v51  ;;  %v4160_v38 = vmul.f32 -1.442695, %v2063_v16  ;;  %v2062_v8 = vadd.f32 %v2031_v6, %v486_v41 }
 0x275   :  { %v5282_v27 = vpop.eup %5281  ;;  %5301 = vrcp.f32 %v2080_v32  ;;  %v5009_v49 = vpop.f32.mrf.mxu1  ;;  %v8017_v16 = vmov 0  }
 0x276   :  { %5303 = vrcp.f32 %v2103_v34  ;;  %v2102_v50 = vadd.f32 1.0, %v5282_v27  ;;  %v4159_v2 = vmul.f32 -1.442695, %v2062_v8  ;;  %v2065_v54 = vadd.f32 %v5009_v49, %v501_v0  ;;  %v8018_v8 = vld [vmem:[#allocation58_spill] sm:$0xff] }
 0x277   :  { %v5284_v39 = vpop.eup %5283  ;;  %5305 = vpow2.f32 %v4160_v38  ;;  %v2041_v57 = vpop.f32.mrf.mxu1  ;;  %v2163_v52 = vsel %vm2162_vm4, 1, %v8017_v16 }
 0x278   :  { %5307 = vrcp.f32 %v2102_v50  ;;  %v2105_v5 = vadd.f32 1.0, %v5284_v39  ;;  %v4162_v63 = vmul.f32 -1.442695, %v2065_v54  ;;  %v2064_v45 = vadd.f32 %v2041_v57, %v496_v33  ;;  %v7012_v57 = vld [vmem:[%s7896_s4 + $0x20] sm:$0xff] }
 0x279   :  { %v5286_v31 = vpop.eup %5285  ;;  %5309 = vpow2.f32 %v4159_v2  ;;  %v2167_v27 = vrot.slane %v2163_v52, %v8018_v8 }
 0x27a   :  { %v5288_v7 = vpop.eup %5287  ;;  %5311 = vrcp.f32 %v2105_v5  ;;  %v2104_v58 = vadd.f32 1.0, %v5286_v31  ;;  %v4161_v51 = vmul.f32 -1.442695, %v2064_v45 }
 0x27b   :  { %v5290_v46 = vpop.eup %5289  ;;  %5313 = vpow2.f32 %v4162_v63  ;;  %vm6921_vm5 = vcmp.eq.s32.totalorder %v2167_v27, 1 }
 0x27c   :  { %5315 = vrcp.f32 %v2104_v58  ;;  %v2147_v30 = vmul.f32 %v5290_v46, %v5288_v7  ;;  %v5292_v41 = vpop.eup %5291 }
 0x27d   :  { %5317 = vpow2.f32 %v4161_v51  ;;  %v5294_v32 = vpop.eup %5293 }
 0x27f   :  { %v5296_v0 = vpop.eup %5295 }
 0x280   :  { %v5298_v6 = vpop.eup %5297  ;;  %v2149_v34 = vmul.f32 %v5296_v0, %v5294_v32 }
 0x281   :  { %v5300_v38 = vpop.eup %5299  ;;  %v2146_v31 = vmul.f32 %v5298_v6, %v5292_v41 }
 0x282   :  { %v5302_v33 = vpop.eup %5301 }
 0x283   :  { %v5304_v49 = vpop.eup %5303  ;;  %v2148_v27 = vmul.f32 %v5302_v33, %v5300_v38 }
 0x284   :  { %v5306_v50 = vpop.eup %5305  ;;  %v2143_v2 = vmul.f32 %v5304_v49, %v6685_v43 }
 0x285   :  { %v5308_v54 = vpop.eup %5307  ;;  %v2131_v39 = vadd.f32 1.0, %v5306_v50 }
 0x286   :  { %v5310_v5 = vpop.eup %5309  ;;  %v2151_v63 = vadd.f32 %v2147_v30, %v2143_v2  ;;  %v2142_v45 = vmul.f32 %v5308_v54, %v6691_v55 }
 0x287   :  { %v5312_v7 = vpop.eup %5311  ;;  %5319 = vrcp.f32 %v2131_v39  ;;  %v2130_v58 = vadd.f32 1.0, %v5310_v5 }
 0x288   :  { %v5314_v51 = vpop.eup %5313  ;;  %5321 = vtanh.f32 %v2151_v63  ;;  %v2150_v46 = vadd.f32 %v2146_v31, %v2142_v45  ;;  %v2145_v32 = vmul.f32 %v5312_v7, %v6695_v53  ;;  %v6930_v52 = vsel %vm6921_vm5, %v2151_v63, %v6685_v43 }
 0x289   :  { %v5316_v0 = vpop.eup %5315  ;;  %5323 = vrcp.f32 %v2130_v58  ;;  %v2133_v30 = vadd.f32 1.0, %v5314_v51  ;;  %v8021_v45 = vsel %vm6677_vm3, %v6707_v4, 0.0  ;;  %v8023_v4 = vsel %vm6677_vm3, %v6716_v47, 0.0  ;;  %v6998_v47 = vld [vmem:[%s7896_s4 + $0x10] sm:$0xff] }
 0x28a   :  { %v5318_v49 = vpop.eup %5317  ;;  %5325 = vtanh.f32 %v2150_v46  ;;  %v2153_v41 = vadd.f32 %v2149_v34, %v2145_v32  ;;  %v2144_v6 = vmul.f32 %v5316_v0, %v6701_v62  ;;  %v6936_v50 = vsel %vm6921_vm5, %v2150_v46, %v6691_v55 }
 0x28b   :  { %5327 = vrcp.f32 %v2133_v30  ;;  %v2132_v2 = vadd.f32 1.0, %v5318_v49  ;;  %v7019_v49 = vld [vmem:[%s7896_s4 + $0x28] sm:$0xff] }
 0x28c   :  { %5329 = vtanh.f32 %v2153_v41  ;;  %v2152_v54 = vadd.f32 %v2148_v27, %v2144_v6  ;;  %v6941_v43 = vsel %vm6921_vm5, %v2153_v41, %v6695_v53  ;;  %v7026_v41 = vld [vmem:[%s7896_s4 + $0x30] sm:$0xff]  ;;  %v7033_v6 = vld [vmem:[%s7896_s4 + $0x38] sm:$0xff] }
 0x28d   :  { %5331 = vrcp.f32 %v2132_v2  ;;  %v7040_v2 = vld [vmem:[%s7896_s4 + $0x40] sm:$0xff] }
 0x28e   :  { %5333 = vtanh.f32 %v2152_v54  ;;  %v6946_v34 = vsel %vm6921_vm5, %v2152_v54, %v6701_v62  ;;  %v8022_v62 = vsel %vm6677_vm3, %v6709_v42, 0.0  ;;  %v8024_v42 = vsel %vm6677_vm3, %v6724_v48, 0.0  ;;  %v7005_v48 = vld [vmem:[%s7896_s4 + $0x18] sm:$0xff]  ;;  %v7047_v54 = vld [vmem:[%s7896_s4 + $0x48] sm:$0xff] }
 0x294   :  { %v5320_v38 = vpop.eup %5319 }
 0x295   :  { %v5322_v33 = vpop.eup %5321 }
 0x296   :  { %v5324_v55 = vpop.eup %5323  ;;  %v2159_v39 = vmul.f32 %v5322_v33, %v5320_v38  ;;  %v7054_v38 = vld [vmem:[%s7896_s4 + $0x50] sm:$0xff]  ;;  %v7061_v33 = vld [vmem:[%s7896_s4 + $0x58] sm:$0xff] }
 0x297   :  { %v5326_v5 = vpop.eup %5325 }
 0x298   :  { %v5328_v63 = vpop.eup %5327  ;;  %v6954_v53 = vsel %vm6921_vm5, %v2159_v39, %v8021_v45  ;;  %v2158_v31 = vmul.f32 %v5326_v5, %v5324_v55  ;;  %v7068_v55 = vld [vmem:[%s7896_s4 + $0x60] sm:$0xff]  ;;  %v7075_v39 = vld [vmem:[%s7896_s4 + $0x68] sm:$0xff]  ;;  %v7082_v5 = vld [vmem:[%s7896_s4 + $0x70] sm:$0xff] }
 0x299   :  { %v5330_v7 = vpop.eup %5329  ;;  %v7096_v45 = vld [vmem:[%s7896_s4] sm:$0xff] }
 0x29a   :  { %v5332_v58 = vpop.eup %5331  ;;  %v2161_v51 = vmul.f32 %v5330_v7, %v5328_v63  ;;  %v6962_v46 = vsel %vm6921_vm5, %v2158_v31, %v8022_v62  ;;  %v7089_v63 = vld [vmem:[%s7896_s4 + $0x78] sm:$0xff]  ;;  %v8025_v31 = vld [vmem:[#allocation6_spill] sm:$0xff] }
 0x29b   :  { %v5334_v32 = vpop.eup %5333  ;;  %v600_v7 = vadd.f32 %v8025_v31, %v6577_v10  ;;  %v8029_v31 = vld [vmem:[#allocation10_spill] sm:$0xff] }
 0x29c   :  { %v6970_v0 = vsel %vm6921_vm5, %v2161_v51, %v8023_v4  ;;  %v2160_v27 = vmul.f32 %v5334_v32, %v5332_v58  ;;  %v8026_v51 = vld [vmem:[#allocation7_spill] sm:$0xff]  ;;  %v620_v15 = vadd.f32 %v8029_v31, %v6591_v21  ;;  %v8032_v31 = vld [vmem:[#allocation13_spill] sm:$0xff] }
 0x29d   :  { %5010 = vmatprep.subr.mxu0 %v6970_v0  ;;  %v595_v62 = vadd.f32 %v8026_v51, %v6587_v19 }
 0x29e   :  { %5011 = vmatpush3.msra.mxu0 %v6970_v0  ;;  %v6980_v30 = vsel %vm6921_vm5, %v2160_v27, %v8024_v42  ;;  %v8027_v27 = vld [vmem:[#allocation8_spill] sm:$0xff] }
 0x29f   :  { %5012 = vmatprep.subr.mxu0 %v6980_v30  ;;  %v610_v42 = vadd.f32 %v8027_v27, %v6559_v12  ;;  %v615_v27 = vadd.f32 %v8030_v13, %v6601_v11  ;;  %v8033_v13 = vld [vmem:[#allocation14_spill] sm:$0xff] }
 0x2a0   :  { %5013 = vmatpush3.msra.mxu0 %v6980_v30 }
 0x2a1   :  { %5014 = vmatprep.subr.mxu0 %v6954_v53 }
 0x2a2   :  { %5015 = vmatpush3.msra.mxu0 %v6954_v53 }
 0x2a3   :  { %5016 = vmatprep.subr.mxu0 %v6962_v46 }
 0x2a4   :  { %5017 = vmatpush3.msra.mxu0 %v6962_v46 }
 0x2a5   :  { %5019 = vmatmul.mubr.msk.f32.vlgmr.msra.gmra.mxu0 %vm1568_vm1, %v6991_v36 }
 0x2a6   :  { %5021 = vmatprep.mubr.msk.f32.mxu0 %vm1568_vm1, %v6998_v47 }
 0x2a9   :  { %5022 = vmatmul.mubr.msk.f32.gmra.mxu0 %vm1568_vm1, %v7005_v48 }
 0x2aa   :  { %5024 = vmatprep.mubr.msk.f32.mxu0 %vm1568_vm1, %v7012_v57 }
 0x2ad   :  { %5025 = vmatmul.mubr.msk.f32.gmra.mxu0 %vm1568_vm1, %v7019_v49 }
 0x2ae   :  { %5027 = vmatprep.mubr.msk.f32.mxu0 %vm1568_vm1, %v7026_v41 }
 0x2b1   :  { %5028 = vmatmul.mubr.msk.f32.gmra.mxu0 %vm1568_vm1, %v7033_v6 }
 0x2b2   :  { %5030 = vmatprep.mubr.msk.f32.mxu0 %vm1568_vm1, %v7040_v2 }
 0x2b5   :  { %5031 = vmatmul.mubr.msk.f32.gmra.mxu0 %vm1568_vm1, %v7047_v54 }
 0x2b6   :  { %5033 = vmatprep.mubr.msk.f32.mxu0 %vm1568_vm1, %v7054_v38 }
 0x2b9   :  { %5034 = vmatmul.mubr.msk.f32.gmra.mxu0 %vm1568_vm1, %v7061_v33 }
 0x2ba   :  { %5036 = vmatprep.mubr.msk.f32.mxu0 %vm1568_vm1, %v7068_v55 }
 0x2bd   :  { %5037 = vmatmul.mubr.msk.f32.gmra.mxu0 %vm1568_vm1, %v7075_v39 }
 0x2be   :  { %5039 = vmatprep.mubr.msk.f32.mxu0 %vm1568_vm1, %v7082_v5 }
 0x2c1   :  { %5040 = vmatmul.mubr.msk.f32.gmra.mxu0 %vm1568_vm1, %v7089_v63 }
 0x2c2   :  { %5082 = vmatprep.mubr.msk.f32.mxu0 %vm1568_vm1, %v7096_v45 }
 0x365   :  { %v5020_v58 = vpop.f32.mrf.mxu0 }
 0x366   :  { %v2339_v32 = vadd.f32 %v5020_v58, %v600_v7 }
 0x367   :  { %v2259_v4 = vpop.f32.mrf.mxu0 }
 0x368   :  { %v4180_v29 = vmul.f32 -1.442695, %v2339_v32  ;;  %v2338_v28 = vadd.f32 %v2259_v4, %v595_v62 }
 0x369   :  { %v5023_v26 = vpop.f32.mrf.mxu0 }
 0x36a   :  { %5335 = vpow2.f32 %v4180_v29  ;;  %v4179_v22 = vmul.f32 -1.442695, %v2338_v28  ;;  %v2341_v18 = vadd.f32 %v5023_v26, %v610_v42  ;;  %v630_v29 = vadd.f32 %v8031_v25, %v6567_v20  ;;  %v8034_v25 = vld [vmem:[#allocation15_spill] sm:$0xff] }
 0x36b   :  { %v2269_v17 = vpop.f32.mrf.mxu0 }
 0x36c   :  { %5337 = vpow2.f32 %v4179_v22  ;;  %v4182_v51 = vmul.f32 -1.442695, %v2341_v18  ;;  %v2340_v7 = vadd.f32 %v2269_v17, %v605_v23  ;;  %v625_v22 = vadd.f32 %v8032_v31, %v6581_v9 }
 0x36d   :  { %v5026_v58 = vpop.f32.mrf.mxu0 }
 0x36e   :  { %5339 = vpow2.f32 %v4182_v51  ;;  %v4181_v62 = vmul.f32 -1.442695, %v2340_v7  ;;  %v2343_v32 = vadd.f32 %v5026_v58, %v620_v15  ;;  %v640_v51 = vadd.f32 %v8033_v13, %v6619_v59 }
 0x36f   :  { %v2279_v4 = vpop.f32.mrf.mxu0 }
 0x370   :  { %5341 = vpow2.f32 %v4181_v62  ;;  %v4184_v26 = vmul.f32 -1.442695, %v2343_v32  ;;  %v2342_v28 = vadd.f32 %v2279_v4, %v615_v27  ;;  %v635_v62 = vadd.f32 %v8034_v25, %v6631_v35 }
 0x371   :  { %v5029_v42 = vpop.f32.mrf.mxu0 }
 0x372   :  { %5343 = vpow2.f32 %v4184_v26  ;;  %v4183_v17 = vmul.f32 -1.442695, %v2342_v28  ;;  %v2345_v18 = vadd.f32 %v5029_v42, %v630_v29  ;;  %v8035_v26 = vld [vmem:[#allocation16_spill] sm:$0xff] }
 0x373   :  { %v2289_v23 = vpop.f32.mrf.mxu0  ;;  %v650_v28 = vadd.f32 %v8035_v26, %v6597_v3 }
 0x374   :  { %5345 = vpow2.f32 %v4183_v17  ;;  %v4186_v15 = vmul.f32 -1.442695, %v2345_v18  ;;  %v2344_v7 = vadd.f32 %v2289_v23, %v625_v22  ;;  %v8036_v22 = vld [vmem:[#allocation17_spill] sm:$0xff] }
 0x375   :  { %v5032_v58 = vpop.f32.mrf.mxu0  ;;  %v645_v18 = vadd.f32 %v8036_v22, %v6609_v1 }
 0x376   :  { %5347 = vpow2.f32 %v4186_v15  ;;  %v4185_v27 = vmul.f32 -1.442695, %v2344_v7  ;;  %v2347_v32 = vadd.f32 %v5032_v58, %v640_v51  ;;  %v8037_v7 = vld [vmem:[#allocation18_spill] sm:$0xff] }
 0x377   :  { %v5336_v4 = vpop.eup %5335  ;;  %v2299_v20 = vpop.f32.mrf.mxu0  ;;  %v660_v58 = vadd.f32 %v8037_v7, %v6635_v37 }
 0x378   :  { %v2367_v29 = vadd.f32 1.0, %v5336_v4  ;;  %5349 = vpow2.f32 %v4185_v27  ;;  %v2346_v42 = vadd.f32 %v2299_v20, %v635_v62  ;;  %v8038_v62 = vld [vmem:[#allocation19_spill] sm:$0xff] }
 0x379   :  { %v5338_v31 = vpop.eup %5337  ;;  %5351 = vtanh.f32 %v2347_v32  ;;  %v5035_v17 = vpop.f32.mrf.mxu0  ;;  %v655_v32 = vadd.f32 %v8038_v62, %v6647_v14 }
 0x37a   :  { %5353 = vrcp.f32 %v2367_v29  ;;  %v2366_v23 = vadd.f32 1.0, %v5338_v31  ;;  %v2349_v13 = vadd.f32 %v5035_v17, %v650_v28  ;;  %v8039_v28 = vld [vmem:[#allocation20_spill] sm:$0xff] }
 0x37b   :  { %v5340_v15 = vpop.eup %5339  ;;  %5355 = vtanh.f32 %v2346_v42  ;;  %v2309_v51 = vpop.f32.mrf.mxu0  ;;  %v670_v42 = vadd.f32 %v8039_v28, %v8014_v60 }
 0x37c   :  { %5357 = vrcp.f32 %v2366_v23  ;;  %v2369_v25 = vadd.f32 1.0, %v5340_v15  ;;  %v2348_v4 = vadd.f32 %v2309_v51, %v645_v18 }
 0x37d   :  { %v5342_v27 = vpop.eup %5341  ;;  %5359 = vtanh.f32 %v2349_v13  ;;  %v5038_v20 = vpop.f32.mrf.mxu0  ;;  %v8040_v13 = vld [vmem:[#allocation21_spill] sm:$0xff] }
 0x37e   :  { %5361 = vrcp.f32 %v2369_v25  ;;  %v2368_v26 = vadd.f32 1.0, %v5342_v27  ;;  %v2351_v29 = vadd.f32 %v5038_v20, %v660_v58  ;;  %v665_v51 = vadd.f32 %v8040_v13, %v8015_v56 }
 0x37f   :  { %v5344_v31 = vpop.eup %5343  ;;  %5363 = vtanh.f32 %v2348_v4  ;;  %v2319_v17 = vpop.f32.mrf.mxu0  ;;  %v2451_v13 = vsel %vm2450_vm6, 1, %v8017_v16 }
 0x380   :  { %5365 = vrcp.f32 %v2368_v26  ;;  %v2391_v22 = vadd.f32 1.0, %v5344_v31  ;;  %v4188_v23 = vmul.f32 -1.442695, %v2351_v29  ;;  %v2350_v15 = vadd.f32 %v2319_v17, %v655_v32 }
 0x381   :  { %v5346_v18 = vpop.eup %5345  ;;  %v5041_v7 = vpop.f32.mrf.mxu0 }
 0x382   :  { %5367 = vrcp.f32 %v2391_v22  ;;  %v2390_v62 = vadd.f32 1.0, %v5346_v18  ;;  %v4187_v25 = vmul.f32 -1.442695, %v2350_v15  ;;  %v2353_v27 = vadd.f32 %v5041_v7, %v670_v42 }
 0x383   :  { %v5348_v58 = vpop.eup %5347  ;;  %5369 = vpow2.f32 %v4188_v23  ;;  %v2329_v20 = vpop.f32.mrf.mxu0 }
 0x384   :  { %5371 = vrcp.f32 %v2390_v62  ;;  %v2393_v28 = vadd.f32 1.0, %v5348_v58  ;;  %v4190_v4 = vmul.f32 -1.442695, %v2353_v27  ;;  %v2352_v60 = vadd.f32 %v2329_v20, %v665_v51 }
 0x385   :  { %v5350_v26 = vpop.eup %5349  ;;  %5373 = vpow2.f32 %v4187_v25  ;;  %v2455_v27 = vrot.slane %v2451_v13, %v8018_v8 }
 0x386   :  { %v5352_v29 = vpop.eup %5351  ;;  %5375 = vrcp.f32 %v2393_v28  ;;  %v2392_v32 = vadd.f32 1.0, %v5350_v26  ;;  %v4189_v31 = vmul.f32 -1.442695, %v2352_v60 }
 0x387   :  { %v5354_v17 = vpop.eup %5353  ;;  %5377 = vpow2.f32 %v4190_v4  ;;  %vm7136_vm7 = vcmp.eq.s32.totalorder %v2455_v27, 1 }
 0x388   :  { %v5356_v22 = vpop.eup %5355  ;;  %5379 = vrcp.f32 %v2392_v32  ;;  %v2435_v42 = vmul.f32 %v5354_v17, %v5352_v29 }
 0x389   :  { %v5358_v15 = vpop.eup %5357  ;;  %5381 = vpow2.f32 %v4189_v31 }
 0x38a   :  { %v5360_v23 = vpop.eup %5359  ;;  %v2434_v18 = vmul.f32 %v5358_v15, %v5356_v22 }
 0x38b   :  { %v5362_v51 = vpop.eup %5361 }
 0x38c   :  { %v5364_v7 = vpop.eup %5363  ;;  %v2437_v62 = vmul.f32 %v5362_v51, %v5360_v23 }
 0x38d   :  { %v5366_v25 = vpop.eup %5365 }
 0x38e   :  { %v2436_v60 = vmul.f32 %v5366_v25, %v5364_v7 }
 0x38f   :  { %v5368_v58 = vpop.eup %5367 }
 0x390   :  { %v5370_v20 = vpop.eup %5369  ;;  %v2431_v44 = vmul.f32 %v5368_v58, %v6930_v52 }
 0x391   :  { %v5372_v28 = vpop.eup %5371  ;;  %v2419_v4 = vadd.f32 1.0, %v5370_v20 }
 0x392   :  { %v5374_v29 = vpop.eup %5373  ;;  %v2439_v32 = vadd.f32 %v2435_v42, %v2431_v44  ;;  %v2430_v31 = vmul.f32 %v5372_v28, %v6936_v50 }
 0x393   :  { %v5376_v17 = vpop.eup %5375  ;;  %5383 = vrcp.f32 %v2419_v4  ;;  %v2418_v22 = vadd.f32 1.0, %v5374_v29 }
 0x394   :  { %v5378_v15 = vpop.eup %5377  ;;  %5385 = vtanh.f32 %v2439_v32  ;;  %v2438_v23 = vadd.f32 %v2434_v18, %v2430_v31  ;;  %v2433_v13 = vmul.f32 %v5376_v17, %v6941_v43  ;;  %v7145_v51 = vsel %vm7136_vm7, %v2439_v32, %v6930_v52 }
 0x395   :  { %v5380_v7 = vpop.eup %5379  ;;  %5387 = vrcp.f32 %v2418_v22  ;;  %v2421_v25 = vadd.f32 1.0, %v5378_v15 }
 0x396   :  { %v5382_v27 = vpop.eup %5381  ;;  %5389 = vtanh.f32 %v2438_v23  ;;  %v2441_v42 = vadd.f32 %v2437_v62, %v2433_v13  ;;  %v2432_v58 = vmul.f32 %v5380_v7, %v6946_v34  ;;  %v7151_v20 = vsel %vm7136_vm7, %v2438_v23, %v6936_v50 }
 0x397   :  { %5391 = vrcp.f32 %v2421_v25  ;;  %v2420_v18 = vadd.f32 1.0, %v5382_v27  ;;  %v8043_v27 = vld [vmem:[#allocation59_spill] sm:$0xff] }
 0x398   :  { %5393 = vtanh.f32 %v2441_v42  ;;  %v2440_v44 = vadd.f32 %v2436_v60, %v2432_v58  ;;  %v7156_v52 = vsel %vm7136_vm7, %v2441_v42, %v6941_v43  ;;  %v779_v42 = vadd.f32 %v8043_v27, %v6559_v12 }
 0x399   :  { %5395 = vrcp.f32 %v2420_v18 }
 0x39a   :  { %5397 = vtanh.f32 %v2440_v44  ;;  %v7161_v62 = vsel %vm7136_vm7, %v2440_v44, %v6946_v34 }
 0x3a0   :  { %v5384_v28 = vpop.eup %5383 }
 0x3a1   :  { %v5386_v4 = vpop.eup %5385 }
 0x3a2   :  { %v5388_v50 = vpop.eup %5387  ;;  %v2447_v29 = vmul.f32 %v5386_v4, %v5384_v28  ;;  %v8044_v28 = vld [vmem:[#allocation60_spill] sm:$0xff] }
 0x3a3   :  { %v5390_v32 = vpop.eup %5389  ;;  %v774_v4 = vadd.f32 %v8044_v28, %v6571_v24 }
 0x3a4   :  { %v5392_v31 = vpop.eup %5391  ;;  %v2446_v17 = vmul.f32 %v5390_v32, %v5388_v50  ;;  %v7180_v7 = vsel %vm7136_vm7, %v2447_v29, %v6954_v53  ;;  %v769_v53 = vadd.f32 %v6761_v40, %v6577_v10  ;;  %v8045_v40 = vld [vmem:[#allocation61_spill] sm:$0xff] }
 0x3a5   :  { %v5394_v60 = vpop.eup %5393 }
 0x3a6   :  { %v5396_v22 = vpop.eup %5395  ;;  %v2449_v15 = vmul.f32 %v5394_v60, %v5392_v31  ;;  %v789_v31 = vadd.f32 %v8045_v40, %v6591_v21 }
 0x3a7   :  { %v5398_v23 = vpop.eup %5397 }
 0x3a8   :  { %v7166_v43 = vsel %vm7136_vm7, %v2449_v15, %v6970_v0  ;;  %v2448_v13 = vmul.f32 %v5398_v23, %v5396_v22  ;;  %v7187_v0 = vsel %vm7136_vm7, %v2446_v17, %v6962_v46  ;;  %v8046_v22 = vld [vmem:[#allocation62_spill] sm:$0xff] }
 0x3a9   :  { %5042 = vmatprep.subr.mxu1 %v7166_v43  ;;  %v784_v15 = vadd.f32 %v8046_v22, %v6601_v11 }
 0x3aa   :  { %5043 = vmatpush3.msra.mxu1 %v7166_v43  ;;  %v7173_v34 = vsel %vm7136_vm7, %v2448_v13, %v6980_v30  ;;  %v764_v30 = vadd.f32 %v6767_v61, %v6587_v19 }
 0x3ab   :  { %5044 = vmatprep.subr.mxu1 %v7173_v34 }
 0x3ac   :  { %5045 = vmatpush3.msra.mxu1 %v7173_v34 }
 0x3ad   :  { %5046 = vmatprep.subr.mxu1 %v7180_v7 }
 0x3ae   :  { %5047 = vmatpush3.msra.mxu1 %v7180_v7 }
 0x3af   :  { %5048 = vmatprep.subr.mxu1 %v7187_v0 }
 0x3b0   :  { %5049 = vmatpush3.msra.mxu1 %v7187_v0 }
 0x3b1   :  { %5051 = vmatmul.mubr.msk.f32.vlgmr.msra.gmra.mxu1 %vm1568_vm1, %v6991_v36 }
 0x3b2   :  { %5053 = vmatprep.mubr.msk.f32.mxu1 %vm1568_vm1, %v6998_v47 }
 0x3b5   :  { %5054 = vmatmul.mubr.msk.f32.gmra.mxu1 %vm1568_vm1, %v7005_v48 }
 0x3b6   :  { %5056 = vmatprep.mubr.msk.f32.mxu1 %vm1568_vm1, %v7012_v57 }
 0x3b9   :  { %5057 = vmatmul.mubr.msk.f32.gmra.mxu1 %vm1568_vm1, %v7019_v49 }
 0x3ba   :  { %5059 = vmatprep.mubr.msk.f32.mxu1 %vm1568_vm1, %v7026_v41 }
 0x3bd   :  { %5060 = vmatmul.mubr.msk.f32.gmra.mxu1 %vm1568_vm1, %v7033_v6 }
 0x3be   :  { %5062 = vmatprep.mubr.msk.f32.mxu1 %vm1568_vm1, %v7040_v2 }
 0x3c1   :  { %5063 = vmatmul.mubr.msk.f32.gmra.mxu1 %vm1568_vm1, %v7047_v54 }
 0x3c2   :  { %5065 = vmatprep.mubr.msk.f32.mxu1 %vm1568_vm1, %v7054_v38 }
 0x3c5   :  { %5066 = vmatmul.mubr.msk.f32.gmra.mxu1 %vm1568_vm1, %v7061_v33 }
 0x3c6   :  { %5068 = vmatprep.mubr.msk.f32.mxu1 %vm1568_vm1, %v7068_v55 }
 0x3c9   :  { %5069 = vmatmul.mubr.msk.f32.gmra.mxu1 %vm1568_vm1, %v7075_v39 }
 0x3ca   :  { %5071 = vmatprep.mubr.msk.f32.mxu1 %vm1568_vm1, %v7082_v5 }
 0x3cd   :  { %5072 = vmatmul.mubr.msk.f32.gmra.mxu1 %vm1568_vm1, %v7089_v63 }
 0x3ce   :  { %5114 = vmatprep.mubr.msk.f32.mxu1 %vm1568_vm1, %v7096_v45 }
 0x471   :  { %v5052_v46 = vpop.f32.mrf.mxu1 }
 0x472   :  { %v2627_v26 = vadd.f32 %v5052_v46, %v769_v53  ;;  %v8047_v46 = vld [vmem:[#allocation43_spill] sm:$0xff] }
 0x473   :  { %v2547_v25 = vpop.f32.mrf.mxu1 }
 0x474   :  { %v4208_v58 = vmul.f32 -1.442695, %v2627_v26  ;;  %v2626_v18 = vadd.f32 %v2547_v25, %v764_v30  ;;  %v8048_v30 = vld [vmem:[#allocation63_spill] sm:$0xff] }
 0x475   :  { %v5055_v44 = vpop.f32.mrf.mxu1  ;;  %v799_v26 = vadd.f32 %v8048_v30, %v8047_v46 }
 0x476   :  { %5399 = vpow2.f32 %v4208_v58  ;;  %v4207_v50 = vmul.f32 -1.442695, %v2626_v18  ;;  %v2629_v29 = vadd.f32 %v5055_v44, %v779_v42  ;;  %v8049_v58 = vld [vmem:[#allocation64_spill] sm:$0xff] }
 0x477   :  { %v2557_v32 = vpop.f32.mrf.mxu1  ;;  %v794_v18 = vadd.f32 %v8049_v58, %v6581_v9 }
 0x478   :  { %5401 = vpow2.f32 %v4207_v50  ;;  %v4210_v61 = vmul.f32 -1.442695, %v2629_v29  ;;  %v2628_v17 = vadd.f32 %v2557_v32, %v774_v4  ;;  %v8050_v50 = vld [vmem:[#allocation65_spill] sm:$0xff] }
 0x479   :  { %v5058_v60 = vpop.f32.mrf.mxu1  ;;  %v809_v29 = vadd.f32 %v8050_v50, %v6619_v59  ;;  %v8054_v50 = vld [vmem:[#allocation69_spill] sm:$0xff] }
 0x47a   :  { %5403 = vpow2.f32 %v4210_v61  ;;  %v4209_v23 = vmul.f32 -1.442695, %v2628_v17  ;;  %v2631_v13 = vadd.f32 %v5058_v60, %v789_v31  ;;  %v8051_v61 = vld [vmem:[#allocation66_spill] sm:$0xff] }
 0x47b   :  { %v2567_v53 = vpop.f32.mrf.mxu1  ;;  %v804_v17 = vadd.f32 %v8051_v61, %v6631_v35 }
 0x47c   :  { %5405 = vpow2.f32 %v4209_v23  ;;  %v4212_v25 = vmul.f32 -1.442695, %v2631_v13  ;;  %v2630_v27 = vadd.f32 %v2567_v53, %v784_v15  ;;  %v8052_v13 = vld [vmem:[#allocation67_spill] sm:$0xff] }
 0x47d   :  { %v5061_v42 = vpop.f32.mrf.mxu1  ;;  %v819_v53 = vadd.f32 %v8052_v13, %v6597_v3  ;;  %v8056_v13 = vld [vmem:[#allocation55_spill] sm:$0xff] }
 0x47e   :  { %5407 = vpow2.f32 %v4212_v25  ;;  %v4211_v44 = vmul.f32 -1.442695, %v2630_v27  ;;  %v2633_v28 = vadd.f32 %v5061_v42, %v799_v26  ;;  %v8053_v42 = vld [vmem:[#allocation68_spill] sm:$0xff] }
 0x47f   :  { %v2577_v4 = vpop.f32.mrf.mxu1  ;;  %v814_v58 = vadd.f32 %v8053_v42, %v6609_v1 }
 0x480   :  { %5409 = vpow2.f32 %v4211_v44  ;;  %v4214_v32 = vmul.f32 -1.442695, %v2633_v28  ;;  %v2632_v40 = vadd.f32 %v2577_v4, %v794_v18 }
 0x481   :  { %v5064_v31 = vpop.f32.mrf.mxu1 }
 0x482   :  { %5411 = vpow2.f32 %v4214_v32  ;;  %v4213_v60 = vmul.f32 -1.442695, %v2632_v40  ;;  %v2635_v22 = vadd.f32 %v5064_v31, %v809_v29  ;;  %v829_v29 = vadd.f32 %v8054_v50, %v6635_v37 }
 0x483   :  { %v5400_v15 = vpop.eup %5399  ;;  %v2587_v23 = vpop.f32.mrf.mxu1 }
 0x484   :  { %v2655_v30 = vadd.f32 1.0, %v5400_v15  ;;  %5413 = vpow2.f32 %v4213_v60  ;;  %v2634_v26 = vadd.f32 %v2587_v23, %v804_v17  ;;  %v8055_v17 = vld [vmem:[#allocation70_spill] sm:$0xff] }
 0x485   :  { %v5402_v25 = vpop.eup %5401  ;;  %5415 = vtanh.f32 %v2635_v22  ;;  %v5067_v27 = vpop.f32.mrf.mxu1  ;;  %v824_v60 = vadd.f32 %v8055_v17, %v6647_v14 }
 0x486   :  { %5417 = vrcp.f32 %v2655_v30  ;;  %v2654_v18 = vadd.f32 1.0, %v5402_v25  ;;  %v2637_v44 = vadd.f32 %v5067_v27, %v819_v53  ;;  %v8057_v53 = vld [vmem:[#allocation71_spill] sm:$0xff] }
 0x487   :  { %v5404_v28 = vpop.eup %5403  ;;  %5419 = vtanh.f32 %v2634_v26  ;;  %v2597_v4 = vpop.f32.mrf.mxu1  ;;  %v839_v30 = vadd.f32 %v8057_v53, %v8056_v13 }
 0x488   :  { %5421 = vrcp.f32 %v2654_v18  ;;  %v2657_v32 = vadd.f32 1.0, %v5404_v28  ;;  %v2636_v40 = vadd.f32 %v2597_v4, %v814_v58  ;;  %v8058_v18 = vld [vmem:[#allocation72_spill] sm:$0xff] }
 0x489   :  { %v5406_v31 = vpop.eup %5405  ;;  %5423 = vtanh.f32 %v2637_v44  ;;  %v5070_v61 = vpop.f32.mrf.mxu1  ;;  %v834_v44 = vadd.f32 %v8058_v18, %v8015_v56 }
 0x48a   :  { %5425 = vrcp.f32 %v2657_v32  ;;  %v2656_v22 = vadd.f32 1.0, %v5406_v31  ;;  %v2639_v15 = vadd.f32 %v5070_v61, %v829_v29 }
 0x48b   :  { %v5408_v23 = vpop.eup %5407  ;;  %5427 = vtanh.f32 %v2636_v40  ;;  %v2607_v26 = vpop.f32.mrf.mxu1 }
 0x48c   :  { %5429 = vrcp.f32 %v2656_v22  ;;  %v2679_v25 = vadd.f32 1.0, %v5408_v23  ;;  %v4216_v27 = vmul.f32 -1.442695, %v2639_v15  ;;  %v2638_v42 = vadd.f32 %v2607_v26, %v824_v60  ;;  %v7258_v26 = vld [vmem:[%s7893_s1] sm:$0x1] }
 0x48d   :  { %v5410_v58 = vpop.eup %5409  ;;  %v5073_v28 = vpop.f32.mrf.mxu1  ;;  %vm2738_vm8 = vcmp.gt.s32.totalorder %v7258_v26, 3  ;;  %vm3026_vm10 = vcmp.gt.s32.totalorder %v7258_v26, 4  ;;  %vm3314_vm12 = vcmp.gt.s32.totalorder %v7258_v26, 5 }
 0x48e   :  { %5431 = vrcp.f32 %v2679_v25  ;;  %v2678_v4 = vadd.f32 1.0, %v5410_v58  ;;  %v4215_v50 = vmul.f32 -1.442695, %v2638_v42  ;;  %v2641_v32 = vadd.f32 %v5073_v28, %v839_v30 }
 0x48f   :  { %v5412_v29 = vpop.eup %5411  ;;  %5433 = vpow2.f32 %v4216_v27  ;;  %v2617_v31 = vpop.f32.mrf.mxu1  ;;  %v2739_v18 = vsel %vm2738_vm8, 1, %v8017_v16 }
 0x490   :  { %5435 = vrcp.f32 %v2678_v4  ;;  %v2681_v61 = vadd.f32 1.0, %v5412_v29  ;;  %v4218_v40 = vmul.f32 -1.442695, %v2641_v32  ;;  %v2640_v17 = vadd.f32 %v2617_v31, %v834_v44 }
 0x491   :  { %v5414_v22 = vpop.eup %5413  ;;  %5437 = vpow2.f32 %v4215_v50  ;;  %v2743_v32 = vrot.slane %v2739_v18, %v8018_v8 }
 0x492   :  { %v5416_v15 = vpop.eup %5415  ;;  %5439 = vrcp.f32 %v2681_v61  ;;  %v2680_v60 = vadd.f32 1.0, %v5414_v22  ;;  %v4217_v23 = vmul.f32 -1.442695, %v2640_v17 }
 0x493   :  { %v5418_v53 = vpop.eup %5417  ;;  %5441 = vpow2.f32 %v4218_v40  ;;  %vm7264_vm9 = vcmp.eq.s32.totalorder %v2743_v32, 1 }
 0x494   :  { %v5420_v30 = vpop.eup %5419  ;;  %5443 = vrcp.f32 %v2680_v60  ;;  %v2723_v25 = vmul.f32 %v5418_v53, %v5416_v15 }
 0x495   :  { %v5422_v27 = vpop.eup %5421  ;;  %5445 = vpow2.f32 %v4217_v23 }
 0x496   :  { %v5424_v42 = vpop.eup %5423  ;;  %v2722_v58 = vmul.f32 %v5422_v27, %v5420_v30 }
 0x497   :  { %v5426_v44 = vpop.eup %5425 }
 0x498   :  { %v5428_v28 = vpop.eup %5427  ;;  %v2725_v4 = vmul.f32 %v5426_v44, %v5424_v42 }
 0x499   :  { %v5430_v50 = vpop.eup %5429 }
 0x49a   :  { %v2724_v29 = vmul.f32 %v5430_v50, %v5428_v28 }
 0x49b   :  { %v5432_v31 = vpop.eup %5431 }
 0x49c   :  { %v5434_v61 = vpop.eup %5433  ;;  %v2719_v40 = vmul.f32 %v5432_v31, %v7145_v51 }
 0x49d   :  { %v5436_v17 = vpop.eup %5435  ;;  %v2707_v22 = vadd.f32 1.0, %v5434_v61 }
 0x49e   :  { %v5438_v60 = vpop.eup %5437  ;;  %v2727_v23 = vadd.f32 %v2723_v25, %v2719_v40  ;;  %v2718_v53 = vmul.f32 %v5436_v17, %v7151_v20 }
 0x49f   :  { %v5440_v30 = vpop.eup %5439  ;;  %5447 = vrcp.f32 %v2707_v22  ;;  %v2706_v27 = vadd.f32 1.0, %v5438_v60 }
 0x4a0   :  { %v5442_v42 = vpop.eup %5441  ;;  %5449 = vtanh.f32 %v2727_v23  ;;  %v2726_v18 = vadd.f32 %v2722_v58, %v2718_v53  ;;  %v2721_v44 = vmul.f32 %v5440_v30, %v7156_v52  ;;  %v7273_v28 = vsel %vm7264_vm9, %v2727_v23, %v7145_v51 }
 0x4a1   :  { %v5444_v50 = vpop.eup %5443  ;;  %5451 = vrcp.f32 %v2706_v27  ;;  %v2709_v32 = vadd.f32 1.0, %v5442_v42 }
 0x4a2   :  { %v5446_v31 = vpop.eup %5445  ;;  %5453 = vtanh.f32 %v2726_v18  ;;  %v2729_v25 = vadd.f32 %v2725_v4, %v2721_v44  ;;  %v2720_v61 = vmul.f32 %v5444_v50, %v7161_v62  ;;  %v7279_v40 = vsel %vm7264_vm9, %v2726_v18, %v7151_v20 }
 0x4a3   :  { %5455 = vrcp.f32 %v2709_v32  ;;  %v2708_v58 = vadd.f32 1.0, %v5446_v31 }
 0x4a4   :  { %5457 = vtanh.f32 %v2729_v25  ;;  %v2728_v17 = vadd.f32 %v2724_v29, %v2720_v61  ;;  %v7284_v51 = vsel %vm7264_vm9, %v2729_v25, %v7156_v52  ;;  %v8066_v61 = vld [vmem:[#allocation27_spill] sm:$0xff] }
 0x4a5   :  { %5459 = vrcp.f32 %v2708_v58  ;;  %v953_v58 = vadd.f32 %v8066_v61, %v6601_v11 }
 0x4a6   :  { %5461 = vtanh.f32 %v2728_v17  ;;  %v7289_v4 = vsel %vm7264_vm9, %v2728_v17, %v7161_v62 }
 0x4ac   :  { %v5448_v22 = vpop.eup %5447 }
 0x4ad   :  { %v5450_v60 = vpop.eup %5449 }
 0x4ae   :  { %v5452_v20 = vpop.eup %5451  ;;  %v2735_v23 = vmul.f32 %v5450_v60, %v5448_v22 }
 0x4af   :  { %v5454_v53 = vpop.eup %5453 }
 0x4b0   :  { %v5456_v30 = vpop.eup %5455  ;;  %v2734_v27 = vmul.f32 %v5454_v53, %v5452_v20  ;;  %v7308_v32 = vsel %vm7264_vm9, %v2735_v23, %v7180_v7  ;;  %v8065_v7 = vld [vmem:[#allocation26_spill] sm:$0xff]  ;;  %v8067_v20 = vld [vmem:[#allocation28_spill] sm:$0xff] }
 0x4b1   :  { %v5458_v29 = vpop.eup %5457  ;;  %v968_v23 = vadd.f32 %v8067_v20, %v8047_v46 }
 0x4b2   :  { %v5460_v42 = vpop.eup %5459  ;;  %v2737_v18 = vmul.f32 %v5458_v29, %v5456_v30  ;;  %v8068_v29 = vld [vmem:[#allocation29_spill] sm:$0xff] }
 0x4b3   :  { %v5462_v44 = vpop.eup %5461 }
 0x4b4   :  { %v7294_v52 = vsel %vm7264_vm9, %v2737_v18, %v7166_v43  ;;  %v2736_v50 = vmul.f32 %v5462_v44, %v5460_v42  ;;  %v7315_v43 = vsel %vm7264_vm9, %v2734_v27, %v7187_v0  ;;  %v958_v0 = vadd.f32 %v8065_v7, %v6591_v21  ;;  %v8072_v7 = vld [vmem:[#allocation33_spill] sm:$0xff] }
 0x4b5   :  { %5074 = vmatprep.subr.mxu0 %v7294_v52  ;;  %v963_v42 = vadd.f32 %v8068_v29, %v6581_v9 }
 0x4b6   :  { %5075 = vmatpush3.msra.mxu0 %v7294_v52  ;;  %v7301_v62 = vsel %vm7264_vm9, %v2736_v50, %v7173_v34 }
 0x4b7   :  { %5076 = vmatprep.subr.mxu0 %v7301_v62 }
 0x4b8   :  { %5077 = vmatpush3.msra.mxu0 %v7301_v62 }
 0x4b9   :  { %5078 = vmatprep.subr.mxu0 %v7308_v32 }
 0x4ba   :  { %5079 = vmatpush3.msra.mxu0 %v7308_v32 }
 0x4bb   :  { %5080 = vmatprep.subr.mxu0 %v7315_v43 }
 0x4bc   :  { %5081 = vmatpush3.msra.mxu0 %v7315_v43 }
 0x4bd   :  { %5083 = vmatmul.mubr.msk.f32.vlgmr.msra.gmra.mxu0 %vm1568_vm1, %v6991_v36  ;;  %v8061_v36 = vld [vmem:[#allocation22_spill] sm:$0xff] }
 0x4be   :  { %5085 = vmatprep.mubr.msk.f32.mxu0 %vm1568_vm1, %v6998_v47  ;;  %v938_v47 = vadd.f32 %v8061_v36, %v6577_v10  ;;  %v8069_v36 = vld [vmem:[#allocation30_spill] sm:$0xff] }
 0x4c1   :  { %5086 = vmatmul.mubr.msk.f32.gmra.mxu0 %vm1568_vm1, %v7005_v48 }
 0x4c2   :  { %5088 = vmatprep.mubr.msk.f32.mxu0 %vm1568_vm1, %v7012_v57  ;;  %v8062_v57 = vld [vmem:[#allocation23_spill] sm:$0xff] }
 0x4c5   :  { %5089 = vmatmul.mubr.msk.f32.gmra.mxu0 %vm1568_vm1, %v7019_v49  ;;  %v933_v49 = vadd.f32 %v8062_v57, %v6587_v19 }
 0x4c6   :  { %5091 = vmatprep.mubr.msk.f32.mxu0 %vm1568_vm1, %v7026_v41 }
 0x4c9   :  { %5092 = vmatmul.mubr.msk.f32.gmra.mxu0 %vm1568_vm1, %v7033_v6 }
 0x4ca   :  { %5094 = vmatprep.mubr.msk.f32.mxu0 %vm1568_vm1, %v7040_v2  ;;  %v8063_v2 = vld [vmem:[#allocation24_spill] sm:$0xff] }
 0x4cd   :  { %5095 = vmatmul.mubr.msk.f32.gmra.mxu0 %vm1568_vm1, %v7047_v54  ;;  %v948_v54 = vadd.f32 %v8063_v2, %v6559_v12 }
 0x4ce   :  { %5097 = vmatprep.mubr.msk.f32.mxu0 %vm1568_vm1, %v7054_v38 }
 0x4d1   :  { %5098 = vmatmul.mubr.msk.f32.gmra.mxu0 %vm1568_vm1, %v7061_v33 }
 0x4d2   :  { %5100 = vmatprep.mubr.msk.f32.mxu0 %vm1568_vm1, %v7068_v55 }
 0x4d5   :  { %5101 = vmatmul.mubr.msk.f32.gmra.mxu0 %vm1568_vm1, %v7075_v39  ;;  %v8064_v39 = vld [vmem:[#allocation25_spill] sm:$0xff] }
 0x4d6   :  { %5103 = vmatprep.mubr.msk.f32.mxu0 %vm1568_vm1, %v7082_v5  ;;  %v943_v5 = vadd.f32 %v8064_v39, %v6571_v24 }
 0x4d9   :  { %5104 = vmatmul.mubr.msk.f32.gmra.mxu0 %vm1568_vm1, %v7089_v63 }
 0x4da   :  { %5146 = vmatprep.mubr.msk.f32.mxu0 %vm1568_vm1, %v7096_v45 }
 0x57d   :  { %v5084_v48 = vpop.f32.mrf.mxu0 }
 0x57e   :  { %v2915_v41 = vadd.f32 %v5084_v48, %v938_v47  ;;  %v978_v47 = vadd.f32 %v8069_v36, %v6619_v59 }
 0x57f   :  { %v2835_v6 = vpop.f32.mrf.mxu0 }
 0x580   :  { %v4236_v38 = vmul.f32 -1.442695, %v2915_v41  ;;  %v2914_v33 = vadd.f32 %v2835_v6, %v933_v49  ;;  %v8070_v41 = vld [vmem:[#allocation31_spill] sm:$0xff] }
 0x581   :  { %v5087_v55 = vpop.f32.mrf.mxu0  ;;  %v973_v6 = vadd.f32 %v8070_v41, %v6631_v35 }
 0x582   :  { %5463 = vpow2.f32 %v4236_v38  ;;  %v4235_v63 = vmul.f32 -1.442695, %v2914_v33  ;;  %v2917_v45 = vadd.f32 %v5087_v55, %v948_v54  ;;  %v8071_v55 = vld [vmem:[#allocation32_spill] sm:$0xff] }
 0x583   :  { %v2845_v34 = vpop.f32.mrf.mxu0  ;;  %v988_v39 = vadd.f32 %v8071_v55, %v6597_v3 }
 0x584   :  { %5465 = vpow2.f32 %v4235_v63  ;;  %v4238_v15 = vmul.f32 -1.442695, %v2917_v45  ;;  %v2916_v31 = vadd.f32 %v2845_v34, %v943_v5 }
 0x585   :  { %v5090_v25 = vpop.f32.mrf.mxu0 }
 0x586   :  { %5467 = vpow2.f32 %v4238_v15  ;;  %v4237_v17 = vmul.f32 -1.442695, %v2916_v31  ;;  %v2919_v22 = vadd.f32 %v5090_v25, %v958_v0  ;;  %v983_v0 = vadd.f32 %v8072_v7, %v6609_v1 }
 0x587   :  { %v2855_v60 = vpop.f32.mrf.mxu0 }
 0x588   :  { %5469 = vpow2.f32 %v4237_v17  ;;  %v4240_v53 = vmul.f32 -1.442695, %v2919_v22  ;;  %v2918_v30 = vadd.f32 %v2855_v60, %v953_v58  ;;  %v8073_v58 = vld [vmem:[#allocation34_spill] sm:$0xff] }
 0x589   :  { %v5093_v27 = vpop.f32.mrf.mxu0  ;;  %v998_v17 = vadd.f32 %v8073_v58, %v6635_v37 }
 0x58a   :  { %5471 = vpow2.f32 %v4240_v53  ;;  %v4239_v18 = vmul.f32 -1.442695, %v2918_v30  ;;  %v2921_v44 = vadd.f32 %v5093_v27, %v968_v23  ;;  %v8074_v53 = vld [vmem:[#allocation35_spill] sm:$0xff] }
 0x58b   :  { %v2865_v50 = vpop.f32.mrf.mxu0  ;;  %v993_v30 = vadd.f32 %v8074_v53, %v6647_v14 }
 0x58c   :  { %5473 = vpow2.f32 %v4239_v18  ;;  %v4242_v48 = vmul.f32 -1.442695, %v2921_v44  ;;  %v2920_v57 = vadd.f32 %v2865_v50, %v963_v42  ;;  %v8075_v18 = vld [vmem:[#allocation36_spill] sm:$0xff] }
 0x58d   :  { %v5096_v49 = vpop.f32.mrf.mxu0  ;;  %v1008_v44 = vadd.f32 %v8075_v18, %v8056_v13 }
 0x58e   :  { %5475 = vpow2.f32 %v4242_v48  ;;  %v4241_v2 = vmul.f32 -1.442695, %v2920_v57  ;;  %v2923_v54 = vadd.f32 %v5096_v49, %v978_v47  ;;  %v8076_v49 = vld [vmem:[#allocation37_spill] sm:$0xff] }
 0x58f   :  { %v5464_v38 = vpop.eup %5463  ;;  %v2875_v33 = vpop.f32.mrf.mxu0  ;;  %v1003_v41 = vadd.f32 %v8076_v49, %v8015_v56 }
 0x590   :  { %v2943_v5 = vadd.f32 1.0, %v5464_v38  ;;  %5477 = vpow2.f32 %v4241_v2  ;;  %v2922_v63 = vadd.f32 %v2875_v33, %v973_v6 }
 0x591   :  { %v5466_v45 = vpop.eup %5465  ;;  %5479 = vtanh.f32 %v2923_v54  ;;  %v5099_v34 = vpop.f32.mrf.mxu0 }
 0x592   :  { %5481 = vrcp.f32 %v2943_v5  ;;  %v2942_v15 = vadd.f32 1.0, %v5466_v45  ;;  %v2925_v31 = vadd.f32 %v5099_v34, %v988_v39 }
 0x593   :  { %v5468_v25 = vpop.eup %5467  ;;  %5483 = vtanh.f32 %v2922_v63  ;;  %v2885_v61 = vpop.f32.mrf.mxu0 }
 0x594   :  { %5485 = vrcp.f32 %v2942_v15  ;;  %v2945_v22 = vadd.f32 1.0, %v5468_v25  ;;  %v2924_v60 = vadd.f32 %v2885_v61, %v983_v0 }
 0x595   :  { %v5470_v20 = vpop.eup %5469  ;;  %5487 = vtanh.f32 %v2925_v31  ;;  %v5102_v23 = vpop.f32.mrf.mxu0 }
 0x596   :  { %5489 = vrcp.f32 %v2945_v22  ;;  %v2944_v27 = vadd.f32 1.0, %v5470_v20  ;;  %v2927_v29 = vadd.f32 %v5102_v23, %v998_v17  ;;  %v3027_v22 = vsel %vm3026_vm10, 1, %v8017_v16 }
 0x597   :  { %v5472_v42 = vpop.eup %5471  ;;  %5491 = vtanh.f32 %v2924_v60  ;;  %v2895_v50 = vpop.f32.mrf.mxu0 }
 0x598   :  { %5493 = vrcp.f32 %v2944_v27  ;;  %v2967_v36 = vadd.f32 1.0, %v5472_v42  ;;  %v4244_v47 = vmul.f32 -1.442695, %v2927_v29  ;;  %v2926_v48 = vadd.f32 %v2895_v50, %v993_v30 }
 0x599   :  { %v5474_v57 = vpop.eup %5473  ;;  %v5105_v6 = vpop.f32.mrf.mxu0  ;;  %v3031_v30 = vrot.slane %v3027_v22, %v8018_v8 }
 0x59a   :  { %5495 = vrcp.f32 %v2967_v36  ;;  %v2966_v2 = vadd.f32 1.0, %v5474_v57  ;;  %v4243_v54 = vmul.f32 -1.442695, %v2926_v48  ;;  %v2929_v38 = vadd.f32 %v5105_v6, %v1008_v44  ;;  %v7508_v36 = vld [vmem:[%s7896_s4 + $0x50] sm:$0xff] }
 0x59b   :  { %v5476_v33 = vpop.eup %5475  ;;  %5497 = vpow2.f32 %v4244_v47  ;;  %v2905_v55 = vpop.f32.mrf.mxu0  ;;  %vm7387_vm11 = vcmp.eq.s32.totalorder %v3031_v30, 1 }
 0x59c   :  { %5499 = vrcp.f32 %v2966_v2  ;;  %v2969_v39 = vadd.f32 1.0, %v5476_v33  ;;  %v4246_v5 = vmul.f32 -1.442695, %v2929_v38  ;;  %v2928_v63 = vadd.f32 %v2905_v55, %v1003_v41 }
 0x59d   :  { %v5478_v45 = vpop.eup %5477  ;;  %5501 = vpow2.f32 %v4243_v54 }
 0x59e   :  { %v5480_v34 = vpop.eup %5479  ;;  %5503 = vrcp.f32 %v2969_v39  ;;  %v2968_v7 = vadd.f32 1.0, %v5478_v45  ;;  %v4245_v0 = vmul.f32 -1.442695, %v2928_v63 }
 0x59f   :  { %v5482_v15 = vpop.eup %5481  ;;  %5505 = vpow2.f32 %v4246_v5 }
 0x5a0   :  { %v5484_v31 = vpop.eup %5483  ;;  %5507 = vrcp.f32 %v2968_v7  ;;  %v3011_v25 = vmul.f32 %v5482_v15, %v5480_v34 }
 0x5a1   :  { %v5486_v61 = vpop.eup %5485  ;;  %5509 = vpow2.f32 %v4245_v0 }
 0x5a2   :  { %v5488_v58 = vpop.eup %5487  ;;  %v3010_v17 = vmul.f32 %v5486_v61, %v5484_v31 }
 0x5a3   :  { %v5490_v60 = vpop.eup %5489 }
 0x5a4   :  { %v5492_v20 = vpop.eup %5491  ;;  %v3013_v23 = vmul.f32 %v5490_v60, %v5488_v58 }
 0x5a5   :  { %v5494_v53 = vpop.eup %5493 }
 0x5a6   :  { %v3012_v27 = vmul.f32 %v5494_v53, %v5492_v20 }
 0x5a7   :  { %v5496_v29 = vpop.eup %5495 }
 0x5a8   :  { %v5498_v42 = vpop.eup %5497  ;;  %v3007_v18 = vmul.f32 %v5496_v29, %v7273_v28  ;;  %v7473_v29 = vld [vmem:[%s7896_s4 + $0x28] sm:$0xff] }
 0x5a9   :  { %v5500_v44 = vpop.eup %5499  ;;  %v2995_v50 = vadd.f32 1.0, %v5498_v42  ;;  %v7480_v42 = vld [vmem:[%s7896_s4 + $0x30] sm:$0xff] }
 0x5aa   :  { %v5502_v47 = vpop.eup %5501  ;;  %v3015_v48 = vadd.f32 %v3011_v25, %v3007_v18  ;;  %v3006_v57 = vmul.f32 %v5500_v44, %v7279_v40  ;;  %v7487_v18 = vld [vmem:[%s7896_s4 + $0x38] sm:$0xff]  ;;  %v7494_v44 = vld [vmem:[%s7896_s4 + $0x40] sm:$0xff] }
 0x5ab   :  { %v5504_v49 = vpop.eup %5503  ;;  %5511 = vrcp.f32 %v2995_v50  ;;  %v2994_v41 = vadd.f32 1.0, %v5502_v47  ;;  %v7501_v50 = vld [vmem:[%s7896_s4 + $0x48] sm:$0xff]  ;;  %v7515_v47 = vld [vmem:[%s7896_s4 + $0x58] sm:$0xff] }
 0x5ac   :  { %v5506_v6 = vpop.eup %5505  ;;  %5513 = vtanh.f32 %v3015_v48  ;;  %v3014_v2 = vadd.f32 %v3010_v17, %v3006_v57  ;;  %v3009_v54 = vmul.f32 %v5504_v49, %v7284_v51  ;;  %v7396_v38 = vsel %vm7387_vm11, %v3015_v48, %v7273_v28  ;;  %v7522_v48 = vld [vmem:[%s7896_s4 + $0x60] sm:$0xff]  ;;  %v7529_v57 = vld [vmem:[%s7896_s4 + $0x68] sm:$0xff]  ;;  %v7536_v49 = vld [vmem:[%s7896_s4 + $0x70] sm:$0xff] }
 0x5ad   :  { %v5508_v33 = vpop.eup %5507  ;;  %5515 = vrcp.f32 %v2994_v41  ;;  %v2997_v55 = vadd.f32 1.0, %v5506_v6  ;;  %v7543_v41 = vld [vmem:[%s7896_s4 + $0x78] sm:$0xff]  ;;  %v5751_v6 = vld [vmem:[%s7896_s4] sm:$0xff] }
 0x5ae   :  { %v5510_v39 = vpop.eup %5509  ;;  %5517 = vtanh.f32 %v3014_v2  ;;  %v3017_v5 = vadd.f32 %v3013_v23, %v3009_v54  ;;  %v3008_v63 = vmul.f32 %v5508_v33, %v7289_v4  ;;  %v7402_v45 = vsel %vm7387_vm11, %v3014_v2, %v7279_v40  ;;  %v8079_v2 = vld [vmem:[#allocation73_spill] sm:$0xff] }
 0x5af   :  { %5519 = vrcp.f32 %v2997_v55  ;;  %v2996_v34 = vadd.f32 1.0, %v5510_v39  ;;  %v1107_v54 = vadd.f32 %v8079_v2, %v6577_v10  ;;  %v8080_v55 = vld [vmem:[#allocation74_spill] sm:$0xff] }
 0x5b0   :  { %5521 = vtanh.f32 %v3017_v5  ;;  %v3016_v7 = vadd.f32 %v3012_v27, %v3008_v63  ;;  %v7407_v28 = vsel %vm7387_vm11, %v3017_v5, %v7284_v51  ;;  %v7466_v27 = vld [vmem:[%s7896_s4 + $0x20] sm:$0xff]  ;;  %v1102_v39 = vadd.f32 %v8080_v55, %v6587_v19 }
 0x5b1   :  { %5523 = vrcp.f32 %v2996_v34  ;;  %v8081_v34 = vld [vmem:[#allocation75_spill] sm:$0xff]  ;;  %v8084_v2 = vld [vmem:[#allocation78_spill] sm:$0xff] }
 0x5b2   :  { %5525 = vtanh.f32 %v3016_v7  ;;  %v7412_v0 = vsel %vm7387_vm11, %v3016_v7, %v7289_v4  ;;  %v1117_v7 = vadd.f32 %v8081_v34, %v6559_v12 }
 0x5b8   :  { %v5512_v15 = vpop.eup %5511 }
 0x5b9   :  { %v5514_v31 = vpop.eup %5513 }
 0x5ba   :  { %v5516_v40 = vpop.eup %5515  ;;  %v3023_v25 = vmul.f32 %v5514_v31, %v5512_v15 }
 0x5bb   :  { %v5518_v61 = vpop.eup %5517 }
 0x5bc   :  { %v5520_v58 = vpop.eup %5519  ;;  %v3022_v17 = vmul.f32 %v5518_v61, %v5516_v40  ;;  %v7431_v30 = vsel %vm7387_vm11, %v3023_v25, %v7308_v32  ;;  %v7452_v32 = vld [vmem:[%s7896_s4 + $0x10] sm:$0xff] }
 0x5bd   :  { %v5522_v22 = vpop.eup %5521  ;;  %v8082_v25 = vld [vmem:[#allocation76_spill] sm:$0xff] }
 0x5be   :  { %v5524_v60 = vpop.eup %5523  ;;  %v3025_v20 = vmul.f32 %v5522_v22, %v5520_v58  ;;  %v1112_v61 = vadd.f32 %v8082_v25, %v6571_v24 }
 0x5bf   :  { %v5526_v23 = vpop.eup %5525 }
 0x5c0   :  { %v7417_v51 = vsel %vm7387_vm11, %v3025_v20, %v7294_v52  ;;  %v3024_v53 = vmul.f32 %v5526_v23, %v5524_v60  ;;  %v7438_v52 = vsel %vm7387_vm11, %v3022_v17, %v7315_v43  ;;  %v7459_v43 = vld [vmem:[%s7896_s4 + $0x18] sm:$0xff] }
 0x5c1   :  { %5106 = vmatprep.subr.mxu1 %v7417_v51  ;;  %v8083_v60 = vld [vmem:[#allocation77_spill] sm:$0xff] }
 0x5c2   :  { %5107 = vmatpush3.msra.mxu1 %v7417_v51  ;;  %v7424_v4 = vsel %vm7387_vm11, %v3024_v53, %v7301_v62  ;;  %v7445_v62 = vld [vmem:[%s7896_s4 + $0x8] sm:$0xff]  ;;  %v1127_v20 = vadd.f32 %v8083_v60, %v6591_v21 }
 0x5c3   :  { %5108 = vmatprep.subr.mxu1 %v7424_v4 }
 0x5c4   :  { %5109 = vmatpush3.msra.mxu1 %v7424_v4 }
 0x5c5   :  { %5110 = vmatprep.subr.mxu1 %v7431_v30 }
 0x5c6   :  { %5111 = vmatpush3.msra.mxu1 %v7431_v30 }
 0x5c7   :  { %5112 = vmatprep.subr.mxu1 %v7438_v52 }
 0x5c8   :  { %5113 = vmatpush3.msra.mxu1 %v7438_v52 }
 0x5c9   :  { %5115 = vmatmul.mubr.msk.f32.vlgmr.msra.gmra.mxu1 %vm1568_vm1, %v7445_v62 }
 0x5ca   :  { %5117 = vmatprep.mubr.msk.f32.mxu1 %vm1568_vm1, %v7452_v32 }
 0x5cd   :  { %5118 = vmatmul.mubr.msk.f32.gmra.mxu1 %vm1568_vm1, %v7459_v43 }
 0x5ce   :  { %5120 = vmatprep.mubr.msk.f32.mxu1 %vm1568_vm1, %v7466_v27 }
 0x5d1   :  { %5121 = vmatmul.mubr.msk.f32.gmra.mxu1 %vm1568_vm1, %v7473_v29 }
 0x5d2   :  { %5123 = vmatprep.mubr.msk.f32.mxu1 %vm1568_vm1, %v7480_v42 }
 0x5d5   :  { %5124 = vmatmul.mubr.msk.f32.gmra.mxu1 %vm1568_vm1, %v7487_v18 }
 0x5d6   :  { %5126 = vmatprep.mubr.msk.f32.mxu1 %vm1568_vm1, %v7494_v44 }
 0x5d9   :  { %5127 = vmatmul.mubr.msk.f32.gmra.mxu1 %vm1568_vm1, %v7501_v50 }
 0x5da   :  { %5129 = vmatprep.mubr.msk.f32.mxu1 %vm1568_vm1, %v7508_v36 }
 0x5dd   :  { %5130 = vmatmul.mubr.msk.f32.gmra.mxu1 %vm1568_vm1, %v7515_v47 }
 0x5de   :  { %5132 = vmatprep.mubr.msk.f32.mxu1 %vm1568_vm1, %v7522_v48 }
 0x5e1   :  { %5133 = vmatmul.mubr.msk.f32.gmra.mxu1 %vm1568_vm1, %v7529_v57 }
 0x5e2   :  { %5135 = vmatprep.mubr.msk.f32.mxu1 %vm1568_vm1, %v7536_v49 }
 0x5e5   :  { %5136 = vmatmul.mubr.msk.f32.gmra.mxu1 %vm1568_vm1, %v7543_v41 }
 0x5e6   :  { %5178 = vmatprep.mubr.msk.f32.mxu1 %vm1568_vm1, %v5751_v6 }
 0x689   :  { %v5116_v33 = vpop.f32.mrf.mxu1 }
 0x68a   :  { %v3203_v5 = vadd.f32 %v5116_v33, %v1107_v54  ;;  %v1122_v54 = vadd.f32 %v8084_v2, %v6601_v11 }
 0x68b   :  { %v3123_v63 = vpop.f32.mrf.mxu1 }
 0x68c   :  { %v4264_v15 = vmul.f32 -1.442695, %v3203_v5  ;;  %v3202_v31 = vadd.f32 %v3123_v63, %v1102_v39  ;;  %v8085_v5 = vld [vmem:[#allocation79_spill] sm:$0xff] }
 0x68d   :  { %v5119_v40 = vpop.f32.mrf.mxu1  ;;  %v1137_v63 = vadd.f32 %v8085_v5, %v8047_v46 }
 0x68e   :  { %5527 = vpow2.f32 %v4264_v15  ;;  %v4263_v58 = vmul.f32 -1.442695, %v3202_v31  ;;  %v3205_v17 = vadd.f32 %v5119_v40, %v1117_v7  ;;  %v8086_v31 = vld [vmem:[#allocation80_spill] sm:$0xff] }
 0x68f   :  { %v3133_v22 = vpop.f32.mrf.mxu1  ;;  %v1132_v40 = vadd.f32 %v8086_v31, %v6581_v9  ;;  %v8090_v31 = vld [vmem:[#allocation84_spill] sm:$0xff] }
 0x690   :  { %5529 = vpow2.f32 %v4263_v58  ;;  %v4266_v23 = vmul.f32 -1.442695, %v3205_v17  ;;  %v3204_v53 = vadd.f32 %v3133_v22, %v1112_v61  ;;  %v8087_v17 = vld [vmem:[#allocation81_spill] sm:$0xff] }
 0x691   :  { %v5122_v6 = vpop.f32.mrf.mxu1  ;;  %v1147_v22 = vadd.f32 %v8087_v17, %v6619_v59 }
 0x692   :  { %5531 = vpow2.f32 %v4266_v23  ;;  %v4265_v33 = vmul.f32 -1.442695, %v3204_v53  ;;  %v3207_v55 = vadd.f32 %v5122_v6, %v1127_v20  ;;  %v8088_v53 = vld [vmem:[#allocation82_spill] sm:$0xff] }
 0x693   :  { %v3143_v39 = vpop.f32.mrf.mxu1  ;;  %v1142_v6 = vadd.f32 %v8088_v53, %v6631_v35 }
 0x694   :  { %5533 = vpow2.f32 %v4265_v33  ;;  %v4268_v34 = vmul.f32 -1.442695, %v3207_v55  ;;  %v3206_v7 = vadd.f32 %v3143_v39, %v1122_v54  ;;  %v8089_v39 = vld [vmem:[#allocation83_spill] sm:$0xff] }
 0x695   :  { %v5125_v15 = vpop.f32.mrf.mxu1  ;;  %v1157_v5 = vadd.f32 %v8089_v39, %v6597_v3 }
 0x696   :  { %5535 = vpow2.f32 %v4268_v34  ;;  %v4267_v25 = vmul.f32 -1.442695, %v3206_v7  ;;  %v3209_v61 = vadd.f32 %v5125_v15, %v1137_v63 }
 0x697   :  { %v3153_v58 = vpop.f32.mrf.mxu1 }
 0x698   :  { %5537 = vpow2.f32 %v4267_v25  ;;  %v4270_v60 = vmul.f32 -1.442695, %v3209_v61  ;;  %v3208_v20 = vadd.f32 %v3153_v58, %v1132_v40  ;;  %v1152_v40 = vadd.f32 %v8090_v31, %v6609_v1 }
 0x699   :  { %v5128_v23 = vpop.f32.mrf.mxu1 }
 0x69a   :  { %5539 = vpow2.f32 %v4270_v60  ;;  %v4269_v2 = vmul.f32 -1.442695, %v3208_v20  ;;  %v3211_v54 = vadd.f32 %v5128_v23, %v1147_v22  ;;  %v8091_v22 = vld [vmem:[#allocation85_spill] sm:$0xff] }
 0x69b   :  { %v5528_v33 = vpop.eup %5527  ;;  %v3163_v55 = vpop.f32.mrf.mxu1  ;;  %v1167_v60 = vadd.f32 %v8091_v22, %v6635_v37 }
 0x69c   :  { %v3231_v63 = vadd.f32 1.0, %v5528_v33  ;;  %5541 = vpow2.f32 %v4269_v2  ;;  %v3210_v34 = vadd.f32 %v3163_v55, %v1142_v6  ;;  %v8092_v2 = vld [vmem:[#allocation86_spill] sm:$0xff] }
 0x69d   :  { %v5530_v7 = vpop.eup %5529  ;;  %5543 = vtanh.f32 %v3211_v54  ;;  %v5131_v15 = vpop.f32.mrf.mxu1  ;;  %v1162_v54 = vadd.f32 %v8092_v2, %v6647_v14 }
 0x69e   :  { %5545 = vrcp.f32 %v3231_v63  ;;  %v3230_v25 = vadd.f32 1.0, %v5530_v7  ;;  %v3213_v61 = vadd.f32 %v5131_v15, %v1157_v5  ;;  %v8093_v5 = vld [vmem:[#allocation87_spill] sm:$0xff] }
 0x69f   :  { %v5532_v58 = vpop.eup %5531  ;;  %5547 = vtanh.f32 %v3210_v34  ;;  %v3173_v17 = vpop.f32.mrf.mxu1  ;;  %v1177_v63 = vadd.f32 %v8093_v5, %v8056_v13 }
 0x6a0   :  { %5549 = vrcp.f32 %v3230_v25  ;;  %v3233_v20 = vadd.f32 1.0, %v5532_v58  ;;  %v3212_v23 = vadd.f32 %v3173_v17, %v1152_v40  ;;  %v8094_v25 = vld [vmem:[#allocation88_spill] sm:$0xff] }
 0x6a1   :  { %v5534_v53 = vpop.eup %5533  ;;  %5551 = vtanh.f32 %v3213_v61  ;;  %v5134_v6 = vpop.f32.mrf.mxu1  ;;  %v1172_v61 = vadd.f32 %v8094_v25, %v8015_v56 }
 0x6a2   :  { %5553 = vrcp.f32 %v3233_v20  ;;  %v3232_v33 = vadd.f32 1.0, %v5534_v53  ;;  %v3215_v55 = vadd.f32 %v5134_v6, %v1167_v60 }
 0x6a3   :  { %v5536_v39 = vpop.eup %5535  ;;  %5555 = vtanh.f32 %v3212_v23  ;;  %v3183_v34 = vpop.f32.mrf.mxu1 }
 0x6a4   :  { %5557 = vrcp.f32 %v3232_v33  ;;  %v3255_v7 = vadd.f32 1.0, %v5536_v39  ;;  %v4272_v15 = vmul.f32 -1.442695, %v3215_v55  ;;  %v3214_v31 = vadd.f32 %v3183_v34, %v1162_v54 }
 0x6a5   :  { %v5538_v40 = vpop.eup %5537  ;;  %v5137_v58 = vpop.f32.mrf.mxu1 }
 0x6a6   :  { %5559 = vrcp.f32 %v3255_v7  ;;  %v3254_v17 = vadd.f32 1.0, %v5538_v40  ;;  %v4271_v22 = vmul.f32 -1.442695, %v3214_v31  ;;  %v3217_v20 = vadd.f32 %v5137_v58, %v1177_v63 }
 0x6a7   :  { %v5540_v60 = vpop.eup %5539  ;;  %5561 = vpow2.f32 %v4272_v15  ;;  %v3193_v53 = vpop.f32.mrf.mxu1  ;;  %v3315_v40 = vsel %vm3314_vm12, 1, %v8017_v16 }
 0x6a8   :  { %5563 = vrcp.f32 %v3254_v17  ;;  %v3257_v6 = vadd.f32 1.0, %v5540_v60  ;;  %v4274_v23 = vmul.f32 -1.442695, %v3217_v20  ;;  %v3216_v2 = vadd.f32 %v3193_v53, %v1172_v61 }
 0x6a9   :  { %v5542_v33 = vpop.eup %5541  ;;  %5565 = vpow2.f32 %v4271_v22  ;;  %v3319_v22 = vrot.slane %v3315_v40, %v8018_v8 }
 0x6aa   :  { %v5544_v55 = vpop.eup %5543  ;;  %5567 = vrcp.f32 %v3257_v6  ;;  %v3256_v54 = vadd.f32 1.0, %v5542_v33  ;;  %v4273_v39 = vmul.f32 -1.442695, %v3216_v2  ;;  %v8098_v2 = vld [vmem:[#allocation39_spill] sm:$0xff] }
 0x6ab   :  { %v5546_v5 = vpop.eup %5545  ;;  %5569 = vpow2.f32 %v4274_v23  ;;  %vm7587_vm13 = vcmp.eq.s32.totalorder %v3319_v22, 1 }
 0x6ac   :  { %v5548_v34 = vpop.eup %5547  ;;  %5571 = vrcp.f32 %v3256_v54  ;;  %v3299_v63 = vmul.f32 %v5546_v5, %v5544_v55 }
 0x6ad   :  { %v5550_v7 = vpop.eup %5549  ;;  %5573 = vpow2.f32 %v4273_v39 }
 0x6ae   :  { %v5552_v15 = vpop.eup %5551  ;;  %v3298_v31 = vmul.f32 %v5550_v7, %v5548_v34 }
 0x6af   :  { %v5554_v25 = vpop.eup %5553 }
 0x6b0   :  { %v5556_v61 = vpop.eup %5555  ;;  %v3301_v58 = vmul.f32 %v5554_v25, %v5552_v15 }
 0x6b1   :  { %v5558_v17 = vpop.eup %5557 }
 0x6b2   :  { %v3300_v20 = vmul.f32 %v5558_v17, %v5556_v61 }
 0x6b3   :  { %v5560_v60 = vpop.eup %5559 }
 0x6b4   :  { %v5562_v53 = vpop.eup %5561  ;;  %v3295_v26 = vmul.f32 %v5560_v60, %v7396_v38 }
 0x6b5   :  { %v5564_v6 = vpop.eup %5563  ;;  %v3283_v23 = vadd.f32 1.0, %v5562_v53 }
 0x6b6   :  { %v5566_v33 = vpop.eup %5565  ;;  %v3303_v55 = vadd.f32 %v3299_v63, %v3295_v26  ;;  %v3294_v54 = vmul.f32 %v5564_v6, %v7402_v45 }
 0x6b7   :  { %v5568_v39 = vpop.eup %5567  ;;  %5575 = vrcp.f32 %v3283_v23  ;;  %v3282_v5 = vadd.f32 1.0, %v5566_v33 }
 0x6b8   :  { %v5570_v34 = vpop.eup %5569  ;;  %5577 = vtanh.f32 %v3303_v55  ;;  %v3302_v7 = vadd.f32 %v3298_v31, %v3294_v54  ;;  %v3297_v15 = vmul.f32 %v5568_v39, %v7407_v28  ;;  %v7596_v40 = vsel %vm7587_vm13, %v3303_v55, %v7396_v38 }
 0x6b9   :  { %v5572_v25 = vpop.eup %5571  ;;  %5579 = vrcp.f32 %v3282_v5  ;;  %v3285_v61 = vadd.f32 1.0, %v5570_v34 }
 0x6ba   :  { %v5574_v17 = vpop.eup %5573  ;;  %5581 = vtanh.f32 %v3302_v7  ;;  %v3305_v63 = vadd.f32 %v3301_v58, %v3297_v15  ;;  %v3296_v22 = vmul.f32 %v5572_v25, %v7412_v0  ;;  %v7602_v60 = vsel %vm7587_vm13, %v3302_v7, %v7402_v45 }
 0x6bb   :  { %5583 = vrcp.f32 %v3285_v61  ;;  %v3284_v31 = vadd.f32 1.0, %v5574_v17  ;;  %v1271_v25 = vadd.f32 %v8098_v2, %v6587_v19 }
 0x6bc   :  { %5585 = vtanh.f32 %v3305_v63  ;;  %v3304_v53 = vadd.f32 %v3300_v20, %v3296_v22  ;;  %v7607_v38 = vsel %vm7587_vm13, %v3305_v63, %v7407_v28  ;;  %v8099_v63 = vld [vmem:[#allocation40_spill] sm:$0xff] }
 0x6bd   :  { %5587 = vrcp.f32 %v3284_v31  ;;  %v1286_v22 = vadd.f32 %v8099_v63, %v6559_v12 }
 0x6be   :  { %5589 = vtanh.f32 %v3304_v53  ;;  %v7612_v58 = vsel %vm7587_vm13, %v3304_v53, %v7412_v0 }
 0x6c4   :  { %v5576_v26 = vpop.eup %5575 }
 0x6c5   :  { %v5578_v6 = vpop.eup %5577 }
 0x6c6   :  { %v5580_v45 = vpop.eup %5579  ;;  %v3311_v23 = vmul.f32 %v5578_v6, %v5576_v26  ;;  %v8100_v6 = vld [vmem:[#allocation41_spill] sm:$0xff] }
 0x6c7   :  { %v5582_v33 = vpop.eup %5581 }
 0x6c8   :  { %v5584_v55 = vpop.eup %5583  ;;  %v3310_v54 = vmul.f32 %v5582_v33, %v5580_v45  ;;  %v7631_v15 = vsel %vm7587_vm13, %v3311_v23, %v7431_v30  ;;  %v1281_v45 = vadd.f32 %v8100_v6, %v6571_v24 }
 0x6c9   :  { %v5586_v20 = vpop.eup %5585 }
 0x6ca   :  { %v5588_v39 = vpop.eup %5587  ;;  %v3313_v5 = vmul.f32 %v5586_v20, %v5584_v55 }
 0x6cb   :  { %v5590_v34 = vpop.eup %5589 }
 0x6cc   :  { %v7617_v28 = vsel %vm7587_vm13, %v3313_v5, %v7417_v51  ;;  %v3312_v7 = vmul.f32 %v5590_v34, %v5588_v39  ;;  %v7638_v51 = vsel %vm7587_vm13, %v3310_v54, %v7438_v52  ;;  %v8101_v54 = vld [vmem:[#allocation42_spill] sm:$0xff] }
 0x6cd   :  { %5138 = vmatprep.subr.mxu0 %v7617_v28  ;;  %v1296_v20 = vadd.f32 %v8101_v54, %v6591_v21 }
 0x6ce   :  { %5139 = vmatpush3.msra.mxu0 %v7617_v28  ;;  %v7624_v0 = vsel %vm7587_vm13, %v3312_v7, %v7424_v4  ;;  %v8097_v4 = vld [vmem:[#allocation38_spill] sm:$0xff]  ;;  %v8102_v7 = vld [vmem:[#allocation44_spill] sm:$0xff] }
 0x6cf   :  { %5140 = vmatprep.subr.mxu0 %v7624_v0  ;;  %v1276_v30 = vadd.f32 %v8097_v4, %v6577_v10  ;;  %v1291_v4 = vadd.f32 %v8102_v7, %v6601_v11 }
 0x6d0   :  { %5141 = vmatpush3.msra.mxu0 %v7624_v0 }
 0x6d1   :  { %5142 = vmatprep.subr.mxu0 %v7631_v15 }
 0x6d2   :  { %5143 = vmatpush3.msra.mxu0 %v7631_v15 }
 0x6d3   :  { %5144 = vmatprep.subr.mxu0 %v7638_v51 }
 0x6d4   :  { %5145 = vmatpush3.msra.mxu0 %v7638_v51 }
 0x6d5   :  { %5147 = vmatmul.mubr.msk.f32.vlgmr.msra.gmra.mxu0 %vm1568_vm1, %v7445_v62 }
 0x6d6   :  { %5149 = vmatprep.mubr.msk.f32.mxu0 %vm1568_vm1, %v7452_v32 }
 0x6d9   :  { %5150 = vmatmul.mubr.msk.f32.gmra.mxu0 %vm1568_vm1, %v7459_v43 }
 0x6da   :  { %5152 = vmatprep.mubr.msk.f32.mxu0 %vm1568_vm1, %v7466_v27 }
 0x6dd   :  { %5153 = vmatmul.mubr.msk.f32.gmra.mxu0 %vm1568_vm1, %v7473_v29 }
 0x6de   :  { %5155 = vmatprep.mubr.msk.f32.mxu0 %vm1568_vm1, %v7480_v42 }
 0x6e1   :  { %5156 = vmatmul.mubr.msk.f32.gmra.mxu0 %vm1568_vm1, %v7487_v18 }
 0x6e2   :  { %5158 = vmatprep.mubr.msk.f32.mxu0 %vm1568_vm1, %v7494_v44 }
 0x6e5   :  { %5159 = vmatmul.mubr.msk.f32.gmra.mxu0 %vm1568_vm1, %v7501_v50 }
 0x6e6   :  { %5161 = vmatprep.mubr.msk.f32.mxu0 %vm1568_vm1, %v7508_v36 }
 0x6e9   :  { %5162 = vmatmul.mubr.msk.f32.gmra.mxu0 %vm1568_vm1, %v7515_v47 }
 0x6ea   :  { %5164 = vmatprep.mubr.msk.f32.mxu0 %vm1568_vm1, %v7522_v48 }
 0x6ed   :  { %5165 = vmatmul.mubr.msk.f32.gmra.mxu0 %vm1568_vm1, %v7529_v57 }
 0x6ee   :  { %5167 = vmatprep.mubr.msk.f32.mxu0 %vm1568_vm1, %v7536_v49 }
 0x6f1   :  { %5168 = vmatmul.mubr.msk.f32.gmra.mxu0 %vm1568_vm1, %v7543_v41 }
 0x795   :  { %v5148_v52 = vpop.f32.mrf.mxu0 }
 0x796   :  { %v3491_v61 = vadd.f32 %v5148_v52, %v1276_v30 }
 0x797   :  { %v3411_v17 = vpop.f32.mrf.mxu0 }
 0x798   :  { %v4292_v31 = vmul.f32 -1.442695, %v3491_v61  ;;  %v3490_v53 = vadd.f32 %v3411_v17, %v1271_v25  ;;  %v8103_v25 = vld [vmem:[#allocation45_spill] sm:$0xff] }
 0x799   :  { %v5151_v26 = vpop.f32.mrf.mxu0  ;;  %v1306_v61 = vadd.f32 %v8103_v25, %v8047_v46 }
 0x79a   :  { %5591 = vpow2.f32 %v4292_v31  ;;  %v4291_v23 = vmul.f32 -1.442695, %v3490_v53  ;;  %v3493_v33 = vadd.f32 %v5151_v26, %v1286_v22  ;;  %v8104_v31 = vld [vmem:[#allocation46_spill] sm:$0xff] }
 0x79b   :  { %v3421_v55 = vpop.f32.mrf.mxu0  ;;  %v1301_v53 = vadd.f32 %v8104_v31, %v6581_v9 }
 0x79c   :  { %5593 = vpow2.f32 %v4291_v23  ;;  %v4294_v39 = vmul.f32 -1.442695, %v3493_v33  ;;  %v3492_v5 = vadd.f32 %v3421_v55, %v1281_v45  ;;  %v8105_v23 = vld [vmem:[#allocation47_spill] sm:$0xff] }
 0x79d   :  { %v5154_v34 = vpop.f32.mrf.mxu0  ;;  %v1316_v33 = vadd.f32 %v8105_v23, %v6619_v59  ;;  %v8109_v23 = vld [vmem:[#allocation51_spill] sm:$0xff] }
 0x79e   :  { %5595 = vpow2.f32 %v4294_v39  ;;  %v4293_v30 = vmul.f32 -1.442695, %v3492_v5  ;;  %v3495_v52 = vadd.f32 %v5154_v34, %v1296_v20  ;;  %v8106_v39 = vld [vmem:[#allocation48_spill] sm:$0xff] }
 0x79f   :  { %v3431_v2 = vpop.f32.mrf.mxu0  ;;  %v1311_v5 = vadd.f32 %v8106_v39, %v6631_v35 }
 0x7a0   :  { %5597 = vpow2.f32 %v4293_v30  ;;  %v4296_v17 = vmul.f32 -1.442695, %v3495_v52  ;;  %v3494_v63 = vadd.f32 %v3431_v2, %v1291_v4  ;;  %v8107_v52 = vld [vmem:[#allocation49_spill] sm:$0xff] }
 0x7a1   :  { %v5157_v22 = vpop.f32.mrf.mxu0  ;;  %v1326_v2 = vadd.f32 %v8107_v52, %v6597_v3  ;;  %v8111_v52 = vld [vmem:[#allocation53_spill] sm:$0xff] }
 0x7a2   :  { %5599 = vpow2.f32 %v4296_v17  ;;  %v4295_v26 = vmul.f32 -1.442695, %v3494_v63  ;;  %v3497_v6 = vadd.f32 %v5157_v22, %v1306_v61  ;;  %v8108_v22 = vld [vmem:[#allocation50_spill] sm:$0xff] }
 0x7a3   :  { %v3441_v45 = vpop.f32.mrf.mxu0  ;;  %v1321_v31 = vadd.f32 %v8108_v22, %v6609_v1 }
 0x7a4   :  { %5601 = vpow2.f32 %v4295_v26  ;;  %v4298_v55 = vmul.f32 -1.442695, %v3497_v6  ;;  %v3496_v54 = vadd.f32 %v3441_v45, %v1301_v53 }
 0x7a5   :  { %v5160_v20 = vpop.f32.mrf.mxu0 }
 0x7a6   :  { %5603 = vpow2.f32 %v4298_v55  ;;  %v4297_v34 = vmul.f32 -1.442695, %v3496_v54  ;;  %v3499_v7 = vadd.f32 %v5160_v20, %v1316_v33  ;;  %v1336_v33 = vadd.f32 %v8109_v23, %v6635_v37 }
 0x7a7   :  { %v5592_v4 = vpop.eup %5591  ;;  %v3451_v30 = vpop.f32.mrf.mxu0 }
 0x7a8   :  { %v3519_v25 = vadd.f32 1.0, %v5592_v4  ;;  %5605 = vpow2.f32 %v4297_v34  ;;  %v3498_v61 = vadd.f32 %v3451_v30, %v1311_v5  ;;  %v8110_v5 = vld [vmem:[#allocation52_spill] sm:$0xff] }
 0x7a9   :  { %v5594_v17 = vpop.eup %5593  ;;  %5607 = vtanh.f32 %v3499_v7  ;;  %v5163_v63 = vpop.f32.mrf.mxu0  ;;  %v1331_v34 = vadd.f32 %v8110_v5, %v6647_v14 }
 0x7aa   :  { %5609 = vrcp.f32 %v3519_v25  ;;  %v3518_v53 = vadd.f32 1.0, %v5594_v17  ;;  %v3501_v26 = vadd.f32 %v5163_v63, %v1326_v2  ;;  %v1346_v2 = vadd.f32 %v8111_v52, %v8056_v13  ;;  %v7707_v52 = vld [vmem:[%s7893_s1] sm:$0x1] }
 0x7ab   :  { %v5596_v6 = vpop.eup %5595  ;;  %5611 = vtanh.f32 %v3498_v61  ;;  %v3461_v45 = vpop.f32.mrf.mxu0  ;;  %vm3602_vm14 = vcmp.gt.s32.totalorder %v7707_v52, 6  ;;  %vm3890_vm0 = vcmp.gt.s32.totalorder %v7707_v52, 7 }
 0x7ac   :  { %5613 = vrcp.f32 %v3518_v53  ;;  %v3521_v55 = vadd.f32 1.0, %v5596_v6  ;;  %v3500_v54 = vadd.f32 %v3461_v45, %v1321_v31  ;;  %v8112_v31 = vld [vmem:[#allocation54_spill] sm:$0xff] }
 0x7ad   :  { %v5598_v20 = vpop.eup %5597  ;;  %5615 = vtanh.f32 %v3501_v26  ;;  %v5166_v39 = vpop.f32.mrf.mxu0  ;;  %v1341_v53 = vadd.f32 %v8112_v31, %v8015_v56 }
 0x7ae   :  { %5617 = vrcp.f32 %v3521_v55  ;;  %v3520_v7 = vadd.f32 1.0, %v5598_v20  ;;  %v3503_v4 = vadd.f32 %v5166_v39, %v1336_v33 }
 0x7af   :  { %v5600_v30 = vpop.eup %5599  ;;  %5619 = vtanh.f32 %v3500_v54  ;;  %v3471_v25 = vpop.f32.mrf.mxu0 }
 0x7b0   :  { %5621 = vrcp.f32 %v3520_v7  ;;  %v3543_v61 = vadd.f32 1.0, %v5600_v30  ;;  %v4300_v17 = vmul.f32 -1.442695, %v3503_v4  ;;  %v3502_v63 = vadd.f32 %v3471_v25, %v1331_v34 }
 0x7b1   :  { %v5602_v22 = vpop.eup %5601  ;;  %v5169_v26 = vpop.f32.mrf.mxu0 }
 0x7b2   :  { %5623 = vrcp.f32 %v3543_v61  ;;  %v3542_v6 = vadd.f32 1.0, %v5602_v22  ;;  %v4299_v45 = vmul.f32 -1.442695, %v3502_v63  ;;  %v3505_v23 = vadd.f32 %v5169_v26, %v1346_v2 }
 0x7b3   :  { %v5604_v33 = vpop.eup %5603  ;;  %5625 = vpow2.f32 %v4300_v17  ;;  %v3481_v55 = vpop.f32.mrf.mxu0  ;;  %v3603_v22 = vsel %vm3602_vm14, 1, %v8017_v16 }
 0x7b4   :  { %5627 = vrcp.f32 %v3542_v6  ;;  %v3545_v20 = vadd.f32 1.0, %v5604_v33  ;;  %v4302_v54 = vmul.f32 -1.442695, %v3505_v23  ;;  %v3504_v39 = vadd.f32 %v3481_v55, %v1341_v53 }
 0x7b5   :  { %v5606_v5 = vpop.eup %5605  ;;  %5629 = vpow2.f32 %v4299_v45  ;;  %v3607_v45 = vrot.slane %v3603_v22, %v8018_v8 }
 0x7b6   :  { %v5608_v7 = vpop.eup %5607  ;;  %5631 = vrcp.f32 %v3545_v20  ;;  %v3544_v34 = vadd.f32 1.0, %v5606_v5  ;;  %v4301_v4 = vmul.f32 -1.442695, %v3504_v39 }
 0x7b7   :  { %v5610_v30 = vpop.eup %5609  ;;  %5633 = vpow2.f32 %v4302_v54  ;;  %vm7713_vm15 = vcmp.eq.s32.totalorder %v3607_v45, 1 }
 0x7b8   :  { %v5612_v2 = vpop.eup %5611  ;;  %5635 = vrcp.f32 %v3544_v34  ;;  %v3587_v25 = vmul.f32 %v5610_v30, %v5608_v7 }
 0x7b9   :  { %v5614_v61 = vpop.eup %5613  ;;  %5637 = vpow2.f32 %v4301_v4 }
 0x7ba   :  { %v5616_v17 = vpop.eup %5615  ;;  %v3586_v63 = vmul.f32 %v5614_v61, %v5612_v2 }
 0x7bb   :  { %v5618_v31 = vpop.eup %5617 }
 0x7bc   :  { %v5620_v53 = vpop.eup %5619  ;;  %v3589_v26 = vmul.f32 %v5618_v31, %v5616_v17 }
 0x7bd   :  { %v5622_v6 = vpop.eup %5621 }
 0x7be   :  { %v3588_v23 = vmul.f32 %v5622_v6, %v5620_v53 }
 0x7bf   :  { %v5624_v33 = vpop.eup %5623 }
 0x7c0   :  { %v5626_v55 = vpop.eup %5625  ;;  %v3583_v20 = vmul.f32 %v5624_v33, %v7596_v40 }
 0x7c1   :  { %v5628_v54 = vpop.eup %5627  ;;  %v3571_v39 = vadd.f32 1.0, %v5626_v55 }
 0x7c2   :  { %v5630_v7 = vpop.eup %5629  ;;  %v7717_v34 = vadd.f32 %v3587_v25, %v3583_v20  ;;  %v3582_v4 = vmul.f32 %v5628_v54, %v7602_v60 }
 0x7c3   :  { %v5632_v30 = vpop.eup %5631  ;;  %5639 = vrcp.f32 %v3571_v39  ;;  %v3570_v2 = vadd.f32 1.0, %v5630_v7 }
 0x7c4   :  { %v5634_v61 = vpop.eup %5633  ;;  %5641 = vtanh.f32 %v7717_v34  ;;  %v7721_v17 = vadd.f32 %v3586_v63, %v3582_v4  ;;  %v3585_v22 = vmul.f32 %v5632_v30, %v7607_v38  ;;  %v3614_v31 = vsel %vm7713_vm15, %v7717_v34, %v7596_v40 }
 0x7c5   :  { %v5636_v53 = vpop.eup %5635  ;;  %5643 = vrcp.f32 %v3570_v2  ;;  %v3573_v25 = vadd.f32 1.0, %v5634_v61 }
 0x7c6   :  { %v5638_v6 = vpop.eup %5637  ;;  %5645 = vtanh.f32 %v7721_v17  ;;  %v7729_v45 = vadd.f32 %v3589_v26, %v3585_v22  ;;  %v3584_v33 = vmul.f32 %v5636_v53, %v7612_v58  ;;  %v3613_v63 = vsel %vm7713_vm15, %v7721_v17, %v7602_v60 }
 0x7c7   :  { %5647 = vrcp.f32 %v3573_v25  ;;  %v3572_v55 = vadd.f32 1.0, %v5638_v6 }
 0x7c8   :  { %5649 = vtanh.f32 %v7729_v45  ;;  %v7737_v20 = vadd.f32 %v3588_v23, %v3584_v33  ;;  %v3616_v54 = vsel %vm7713_vm15, %v7729_v45, %v7607_v38  ;;  %v3891_v38 = vsel %vm3890_vm0, 1, %v8017_v16  ;;  %v3901_v16 = vld [vmem:[%s7894_s2] sm:$0xff] }
 0x7c9   :  { %5651 = vrcp.f32 %v3572_v55  ;;  %v3895_v45 = vrot.slane %v3891_v38, %v8018_v8  ;;  %v3902_v8 = vld [vmem:[%s7894_s2 + $0x8] sm:$0xff] }
 0x7ca   :  { %5653 = vtanh.f32 %v7737_v20  ;;  %v3615_v26 = vsel %vm7713_vm15, %v7737_v20, %v7612_v58 }
 0x7d0   :  { %v5640_v39 = vpop.eup %5639 }
 0x7d1   :  { %v5642_v7 = vpop.eup %5641 }
 0x7d2   :  { %v5644_v4 = vpop.eup %5643  ;;  %v3599_v30 = vmul.f32 %v5642_v7, %v5640_v39 }
 0x7d3   :  { %v5646_v2 = vpop.eup %5645 }
 0x7d4   :  { %v5648_v23 = vpop.eup %5647  ;;  %v3598_v61 = vmul.f32 %v5646_v2, %v5644_v4  ;;  %v7765_v7 = vsel %vm7713_vm15, %v3599_v30, %v7631_v15  ;;  %v8120_v2 = vld [vmem:[#allocation94_spill] sm:$0xff] }
 0x7d5   :  { %v5650_v22 = vpop.eup %5649 }
 0x7d6   :  { %v5652_v53 = vpop.eup %5651  ;;  %v3601_v25 = vmul.f32 %v5650_v22, %v5648_v23 }
 0x7d7   :  { %v5654_v6 = vpop.eup %5653 }
 0x7d8   :  { %v7751_v33 = vsel %vm7713_vm15, %v3601_v25, %v7617_v28  ;;  %v3600_v55 = vmul.f32 %v5654_v6, %v5652_v53  ;;  %v7772_v28 = vsel %vm7713_vm15, %v3598_v61, %v7638_v51 }
 0x7d9   :  { %5170 = vmatprep.subr.mxu1 %v7751_v33 }
 0x7da   :  { %5171 = vmatpush3.msra.mxu1 %v7751_v33  ;;  %v7758_v39 = vsel %vm7713_vm15, %v3600_v55, %v7624_v0 }
 0x7db   :  { %5172 = vmatprep.subr.mxu1 %v7758_v39 }
 0x7dc   :  { %5173 = vmatpush3.msra.mxu1 %v7758_v39 }
 0x7dd   :  { %5174 = vmatprep.subr.mxu1 %v7765_v7 }
 0x7de   :  { %5175 = vmatpush3.msra.mxu1 %v7765_v7 }
 0x7df   :  { %5176 = vmatprep.subr.mxu1 %v7772_v28 }
 0x7e0   :  { %5177 = vmatpush3.msra.mxu1 %v7772_v28 }
 0x7e1   :  { %5179 = vmatmul.mubr.msk.f32.vlgmr.msra.gmra.mxu1 %vm1568_vm1, %v7445_v62  ;;  %v8115_v62 = vld [vmem:[#allocation89_spill] sm:$0xff] }
 0x7e2   :  { %5181 = vmatprep.mubr.msk.f32.mxu1 %vm1568_vm1, %v7452_v32  ;;  %v1445_v32 = vadd.f32 %v8115_v62, %v6577_v10  ;;  %v8119_v10 = vld [vmem:[#allocation93_spill] sm:$0xff] }
 0x7e3   :  { %v1465_v51 = vadd.f32 %v8119_v10, %v6591_v21  ;;  %v8122_v21 = vld [vmem:[#allocation96_spill] sm:$0xff] }
 0x7e4   :  { %v1470_v62 = vadd.f32 %v8122_v21, %v6581_v9  ;;  %v8125_v9 = vld [vmem:[#allocation99_spill] sm:$0xff]  ;;  %v8126_v10 = vld [vmem:[#allocation100_spill] sm:$0xff] }
 0x7e5   :  { %5182 = vmatmul.mubr.msk.f32.gmra.mxu1 %vm1568_vm1, %v7459_v43 }
 0x7e6   :  { %5184 = vmatprep.mubr.msk.f32.mxu1 %vm1568_vm1, %v7466_v27  ;;  %v8116_v27 = vld [vmem:[#allocation90_spill] sm:$0xff] }
 0x7e9   :  { %5185 = vmatmul.mubr.msk.f32.gmra.mxu1 %vm1568_vm1, %v7473_v29  ;;  %v1440_v29 = vadd.f32 %v8116_v27, %v6587_v19 }
 0x7ea   :  { %5187 = vmatprep.mubr.msk.f32.mxu1 %vm1568_vm1, %v7480_v42 }
 0x7ed   :  { %5188 = vmatmul.mubr.msk.f32.gmra.mxu1 %vm1568_vm1, %v7487_v18 }
 0x7ee   :  { %5190 = vmatprep.mubr.msk.f32.mxu1 %vm1568_vm1, %v7494_v44  ;;  %v8117_v44 = vld [vmem:[#allocation91_spill] sm:$0xff] }
 0x7f1   :  { %5191 = vmatmul.mubr.msk.f32.gmra.mxu1 %vm1568_vm1, %v7501_v50  ;;  %v1455_v50 = vadd.f32 %v8117_v44, %v6559_v12  ;;  %v1460_v12 = vadd.f32 %v8120_v2, %v6601_v11  ;;  %v8123_v11 = vld [vmem:[#allocation97_spill] sm:$0xff] }
 0x7f2   :  { %5193 = vmatprep.mubr.msk.f32.mxu1 %vm1568_vm1, %v7508_v36  ;;  %v8127_v2 = vld [vmem:[#allocation101_spill] sm:$0xff] }
 0x7f5   :  { %5194 = vmatmul.mubr.msk.f32.gmra.mxu1 %vm1568_vm1, %v7515_v47 }
 0x7f6   :  { %5196 = vmatprep.mubr.msk.f32.mxu1 %vm1568_vm1, %v7522_v48 }
 0x7f9   :  { %5197 = vmatmul.mubr.msk.f32.gmra.mxu1 %vm1568_vm1, %v7529_v57  ;;  %v8118_v57 = vld [vmem:[#allocation92_spill] sm:$0xff] }
 0x7fa   :  { %5199 = vmatprep.mubr.msk.f32.mxu1 %vm1568_vm1, %v7536_v49  ;;  %v1450_v49 = vadd.f32 %v8118_v57, %v6571_v24  ;;  %v8121_v24 = vld [vmem:[#allocation95_spill] sm:$0xff] }
 0x7fb   :  { %v1475_v53 = vadd.f32 %v8121_v24, %v8047_v46  ;;  %v8124_v46 = vld [vmem:[#allocation98_spill] sm:$0xff] }
 0x7fc   :  { %v8128_v24 = vld [vmem:[#allocation102_spill] sm:$0xff] }
 0x7fd   :  { %5200 = vmatmul.mubr.msk.f32.gmra.mxu1 %vm1568_vm1, %v7543_v41  ;;  %vm7861_vm1 = vcmp.eq.s32.totalorder %v3895_v45, 1 }
 0x8a1   :  { %v5180_v43 = vpop.f32.mrf.mxu1 }
 0x8a2   :  { %v3779_v42 = vadd.f32 %v5180_v43, %v1445_v32 }
 0x8a3   :  { %v3699_v18 = vpop.f32.mrf.mxu1 }
 0x8a4   :  { %v4320_v36 = vmul.f32 -1.442695, %v3779_v42  ;;  %v3778_v47 = vadd.f32 %v3699_v18, %v1440_v29  ;;  %v1485_v29 = vadd.f32 %v8123_v11, %v6619_v59  ;;  %v8130_v11 = vld [vmem:[#allocation104_spill] sm:$0xff] }
 0x8a5   :  { %v5183_v48 = vpop.f32.mrf.mxu1 }
 0x8a6   :  { %5655 = vpow2.f32 %v4320_v36  ;;  %v4319_v41 = vmul.f32 -1.442695, %v3778_v47  ;;  %v3781_v0 = vadd.f32 %v5183_v48, %v1455_v50  ;;  %v1480_v50 = vadd.f32 %v8124_v46, %v6631_v35 }
 0x8a7   :  { %v3709_v15 = vpop.f32.mrf.mxu1 }
 0x8a8   :  { %5657 = vpow2.f32 %v4319_v41  ;;  %v4322_v19 = vmul.f32 -1.442695, %v3781_v0  ;;  %v3780_v4 = vadd.f32 %v3709_v15, %v1450_v49  ;;  %v1495_v49 = vadd.f32 %v8125_v9, %v6597_v3 }
 0x8a9   :  { %v5186_v30 = vpop.f32.mrf.mxu1 }
 0x8aa   :  { %5659 = vpow2.f32 %v4322_v19  ;;  %v4321_v23 = vmul.f32 -1.442695, %v3780_v4  ;;  %v3783_v61 = vadd.f32 %v5186_v30, %v1465_v51  ;;  %v1490_v51 = vadd.f32 %v8126_v10, %v6609_v1 }
 0x8ab   :  { %v3719_v22 = vpop.f32.mrf.mxu1 }
 0x8ac   :  { %5661 = vpow2.f32 %v4321_v23  ;;  %v4324_v25 = vmul.f32 -1.442695, %v3783_v61  ;;  %v3782_v6 = vadd.f32 %v3719_v22, %v1460_v12  ;;  %v1505_v12 = vadd.f32 %v8127_v2, %v6635_v37 }
 0x8ad   :  { %v5189_v55 = vpop.f32.mrf.mxu1 }
 0x8ae   :  { %5663 = vpow2.f32 %v4324_v25  ;;  %v4323_v32 = vmul.f32 -1.442695, %v3782_v6  ;;  %v3785_v43 = vadd.f32 %v5189_v55, %v1475_v53  ;;  %v1500_v53 = vadd.f32 %v8128_v24, %v6647_v14  ;;  %v8129_v55 = vld [vmem:[#allocation103_spill] sm:$0xff] }
 0x8af   :  { %v3729_v27 = vpop.f32.mrf.mxu1  ;;  %v1515_v21 = vadd.f32 %v8129_v55, %v8056_v13 }
 0x8b0   :  { %5665 = vpow2.f32 %v4323_v32  ;;  %v4326_v42 = vmul.f32 -1.442695, %v3785_v43  ;;  %v3784_v18 = vadd.f32 %v3729_v27, %v1470_v62 }
 0x8b1   :  { %v5192_v44 = vpop.f32.mrf.mxu1 }
 0x8b2   :  { %5667 = vpow2.f32 %v4326_v42  ;;  %v4325_v36 = vmul.f32 -1.442695, %v3784_v18  ;;  %v3787_v47 = vadd.f32 %v5192_v44, %v1485_v29  ;;  %v1510_v29 = vadd.f32 %v8130_v11, %v8015_v56 }
 0x8b3   :  { %v5656_v48 = vpop.eup %5655  ;;  %v3739_v57 = vpop.f32.mrf.mxu1 }
 0x8b4   :  { %v3807_v41 = vadd.f32 1.0, %v5656_v48  ;;  %5669 = vpow2.f32 %v4325_v36  ;;  %v3786_v0 = vadd.f32 %v3739_v57, %v1480_v50 }
 0x8b5   :  { %v5658_v15 = vpop.eup %5657  ;;  %5671 = vtanh.f32 %v3787_v47  ;;  %v5195_v59 = vpop.f32.mrf.mxu1 }
 0x8b6   :  { %5673 = vrcp.f32 %v3807_v41  ;;  %v3806_v19 = vadd.f32 1.0, %v5658_v15  ;;  %v3789_v35 = vadd.f32 %v5195_v59, %v1495_v49 }
 0x8b7   :  { %v5660_v4 = vpop.eup %5659  ;;  %5675 = vtanh.f32 %v3786_v0  ;;  %v3749_v30 = vpop.f32.mrf.mxu1 }
 0x8b8   :  { %5677 = vrcp.f32 %v3806_v19  ;;  %v3809_v3 = vadd.f32 1.0, %v5660_v4  ;;  %v3788_v23 = vadd.f32 %v3749_v30, %v1490_v51 }
 0x8b9   :  { %v5662_v61 = vpop.eup %5661  ;;  %5679 = vtanh.f32 %v3789_v35  ;;  %v5198_v22 = vpop.f32.mrf.mxu1 }
 0x8ba   :  { %5681 = vrcp.f32 %v3809_v3  ;;  %v3808_v1 = vadd.f32 1.0, %v5662_v61  ;;  %v3791_v25 = vadd.f32 %v5198_v22, %v1505_v12 }
 0x8bb   :  { %v5664_v6 = vpop.eup %5663  ;;  %5683 = vtanh.f32 %v3788_v23  ;;  %v3759_v62 = vpop.f32.mrf.mxu1 }
 0x8bc   :  { %5685 = vrcp.f32 %v3808_v1  ;;  %v3831_v37 = vadd.f32 1.0, %v5664_v6  ;;  %v4328_v32 = vmul.f32 -1.442695, %v3791_v25  ;;  %v3790_v43 = vadd.f32 %v3759_v62, %v1500_v53 }
 0x8bd   :  { %v5666_v27 = vpop.eup %5665  ;;  %v5201_v42 = vpop.f32.mrf.mxu1 }
 0x8be   :  { %5687 = vrcp.f32 %v3831_v37  ;;  %v3830_v14 = vadd.f32 1.0, %v5666_v27  ;;  %v4327_v18 = vmul.f32 -1.442695, %v3790_v43  ;;  %v3793_v44 = vadd.f32 %v5201_v42, %v1515_v21 }
 0x8bf   :  { %v5668_v46 = vpop.eup %5667  ;;  %5689 = vpow2.f32 %v4328_v32  ;;  %v3769_v50 = vpop.f32.mrf.mxu1 }
 0x8c0   :  { %5691 = vrcp.f32 %v3830_v14  ;;  %v3833_v13 = vadd.f32 1.0, %v5668_v46  ;;  %v4330_v36 = vmul.f32 -1.442695, %v3793_v44  ;;  %v3792_v47 = vadd.f32 %v3769_v50, %v1510_v29 }
 0x8c1   :  { %v5670_v48 = vpop.eup %5669  ;;  %5693 = vpow2.f32 %v4327_v18 }
 0x8c2   :  { %v5672_v57 = vpop.eup %5671  ;;  %5695 = vrcp.f32 %v3833_v13  ;;  %v3832_v9 = vadd.f32 1.0, %v5670_v48  ;;  %v4329_v49 = vmul.f32 -1.442695, %v3792_v47 }
 0x8c3   :  { %v5674_v41 = vpop.eup %5673  ;;  %5697 = vpow2.f32 %v4330_v36 }
 0x8c4   :  { %v5676_v56 = vpop.eup %5675  ;;  %5699 = vrcp.f32 %v3832_v9  ;;  %v3875_v0 = vmul.f32 %v5674_v41, %v5672_v57 }
 0x8c5   :  { %v5678_v15 = vpop.eup %5677  ;;  %5701 = vpow2.f32 %v4329_v49 }
 0x8c6   :  { %v5680_v59 = vpop.eup %5679  ;;  %v3874_v10 = vmul.f32 %v5678_v15, %v5676_v56 }
 0x8c7   :  { %v5682_v51 = vpop.eup %5681 }
 0x8c8   :  { %v5684_v19 = vpop.eup %5683  ;;  %v3877_v35 = vmul.f32 %v5682_v51, %v5680_v59 }
 0x8c9   :  { %v5686_v4 = vpop.eup %5685 }
 0x8ca   :  { %v3876_v30 = vmul.f32 %v5686_v4, %v5684_v19 }
 0x8cb   :  { %v5688_v2 = vpop.eup %5687 }
 0x8cc   :  { %v5690_v12 = vpop.eup %5689  ;;  %v3871_v3 = vmul.f32 %v5688_v2, %v3614_v31 }
 0x8cd   :  { %v5692_v23 = vpop.eup %5691  ;;  %v3859_v61 = vadd.f32 1.0, %v5690_v12 }
 0x8ce   :  { %v5694_v22 = vpop.eup %5693  ;;  %v3879_v24 = vadd.f32 %v3875_v0, %v3871_v3  ;;  %v3870_v53 = vmul.f32 %v5692_v23, %v3613_v63 }
 0x8cf   :  { %v5696_v1 = vpop.eup %5695  ;;  %5703 = vrcp.f32 %v3859_v61  ;;  %v3858_v25 = vadd.f32 1.0, %v5694_v22 }
 0x8d0   :  { %v5698_v6 = vpop.eup %5697  ;;  %5705 = vtanh.f32 %v3879_v24  ;;  %v3878_v55 = vadd.f32 %v3874_v10, %v3870_v53  ;;  %v3873_v40 = vmul.f32 %v5696_v1, %v3616_v54 }
 0x8d1   :  { %v5700_v34 = vpop.eup %5699  ;;  %5707 = vrcp.f32 %v3858_v25  ;;  %v3861_v31 = vadd.f32 1.0, %v5698_v6 }
 0x8d2   :  { %v5702_v21 = vpop.eup %5701  ;;  %5709 = vtanh.f32 %v3878_v55  ;;  %v3881_v62 = vadd.f32 %v3877_v35, %v3873_v40  ;;  %v3872_v60 = vmul.f32 %v5700_v34, %v3615_v26 }
 0x8d3   :  { %5711 = vrcp.f32 %v3861_v31  ;;  %v3860_v17 = vadd.f32 1.0, %v5702_v21 }
 0x8d4   :  { %5713 = vtanh.f32 %v3881_v62  ;;  %v3880_v63 = vadd.f32 %v3876_v30, %v3872_v60 }
 0x8d5   :  { %5715 = vrcp.f32 %v3860_v17 }
 0x8d6   :  { %5717 = vtanh.f32 %v3880_v63 }
 0x8dc   :  { %v5704_v54 = vpop.eup %5703 }
 0x8dd   :  { %v5706_v37 = vpop.eup %5705 }
 0x8de   :  { %v5708_v58 = vpop.eup %5707  ;;  %v3887_v20 = vmul.f32 %v5706_v37, %v5704_v54 }
 0x8df   :  { %v5710_v26 = vpop.eup %5709 }
 0x8e0   :  { %v5712_v32 = vpop.eup %5711  ;;  %v3886_v43 = vmul.f32 %v5710_v26, %v5708_v58  ;;  %v3898_v52 = vsel %vm7861_vm1, %v3887_v20, %v7765_v7  ;;  %v3903_v7 = vld [vmem:[%s7894_s2 + $0x10] sm:$0xff] }
 0x8e1   :  { %v5714_v27 = vpop.eup %5713  ;;  %v3906_v44 = vmul.f32 %v3902_v8, %v3898_v52 }
 0x8e2   :  { %v5716_v11 = vpop.eup %5715  ;;  %v3889_v29 = vmul.f32 %v5714_v27, %v5712_v32  ;;  %v3897_v42 = vsel %vm7861_vm1, %v3886_v43, %v7772_v28  ;;  %v3904_v28 = vld [vmem:[%s7894_s2 + $0x18] sm:$0xff] }
 0x8e3   :  { %v5718_v14 = vpop.eup %5717  ;;  %v3905_v18 = vmul.f32 %v3901_v16, %v3897_v42 }
 0x8e4   :  { %v3888_v46 = vmul.f32 %v5718_v14, %v5716_v11  ;;  %v3900_v36 = vsel %vm7861_vm1, %v3889_v29, %v7751_v33 }
 0x8e5   :  { %v3909_v50 = vadd.f32 %v3906_v44, %v3905_v18  ;;  %v3908_v48 = vmul.f32 %v3904_v28, %v3900_v36 }
 0x8e6   :  { %v3899_v13 = vsel %vm7861_vm1, %v3888_v46, %v7758_v39 }
 0x8e7   :  { %v3907_v47 = vmul.f32 %v3903_v7, %v3899_v13 }
 0x8e9   :  { %v3910_v57 = vadd.f32 %v3909_v50, %v3907_v47 }
 0x8eb   :  { %v3911_v9 = vadd.f32 %v3910_v57, %v3908_v48 }
 0x8ed   :  { %v3912_v49 = vrot.slane %v3911_v9, 4 }
 0x8ef   :  { %v3913_v41 = vadd.f32 %v3912_v49, %v3911_v9 }
 0x8f1   :  { %v3914_v56 = vrot.slane %v3913_v41, 2 }
 0x8f3   :  { %v3915_v0 = vadd.f32 %v3914_v56, %v3913_v41 }
 0x8f5   :  { %v3916_v15 = vrot.slane %v3915_v0, 1 }
 0x8f7   :  { %v3917_v39 = vadd.f32 %v3916_v15, %v3915_v0 }
 0x8f9   :  { %3918 = vst [vmem:[#allocation3] sm:$0x1] %v3917_v39 }
 0x8fa   :  { %5764 = shalt.err (!%p5761_p4)
}
 0x8fb   :  { %3928 = dma.vmem_to_hbm [thread:$0]  %s3926_s9, 16, %s7898_s6, [#allocation4]  }
 0x8fc   :  { %5773 = dma.done.wait [#allocation4], 16  }
 0x8fd   :  { %5774 = vsyncadd [#allocation4], 4294967280 }
 0x8fe   :  { %3932 = vsyncpa [#allocation4], 1 }

</bundles_post_ra>
